<compile_context>
chip_gen: v7x
topology: tpu7x:2x2x1
jax: 0.10.0
libtpu: 0.0.40
codegen_flags: <defaults>
</compile_context>

<pallas_src>
import functools

import jax
import jax.numpy as jnp
from jax.experimental import pallas as pl
from jax.experimental.pallas import tpu as pltpu

BN_EPS = 1e-5
BF16 = jnp.bfloat16

K_TILE_CAP = 512        # reduction tile over fmri_dim in the input projection
TIME_CHUNK_CAP = 16     # LSTM timesteps handled per recurrent grid step


def _tpu_budget():
    """(row_tile_cap, vmem_limit_bytes), tuned per TPU generation.

    v5e/v6e have 128 MiB physical VMEM -> bigger row tiles and a ~100 MiB
    scoped limit (the v5e default scoped limit is only 16 MiB).  v7x (64 MiB)
    and unknown targets get the conservative setting.
    """
    try:
        vmem = pltpu.get_tpu_info().vmem_capacity_bytes
        if vmem >= 100 * 1024 * 1024:
            return 512, 100 * 1024 * 1024
    except Exception:   # best-effort query; fall back to the safe budget
        pass
    return 256, 56 * 1024 * 1024


ROW_TILE_CAP, VMEM_LIMIT = _tpu_budget()


def _round_up(x, m):
    return ((x + m - 1) // m) * m


def _row_tile(n, cap=None):
    cap = ROW_TILE_CAP if cap is None else cap
    tile = min(cap, _round_up(n, 8))
    return tile, _round_up(n, tile)


def _pad_rows(x, n_pad):
    n = x.shape[0]
    return x if n_pad == n else jnp.pad(x, ((0, n_pad - n), (0, 0)))


def _chunk_divisor(n, cap, align):
    """Largest divisor of n that is <= cap and (a multiple of align or == n)."""
    best = None
    for c in range(1, min(cap, n) + 1):
        if n % c == 0 and (c % align == 0 or c == n):
            best = c
    return best if best is not None else n


def _compiler_params(semantics):
    return pltpu.CompilerParams(dimension_semantics=semantics,
                                vmem_limit_bytes=VMEM_LIMIT)


# --------------------------------------------------------------------------
# Kernels
# --------------------------------------------------------------------------
def input_proj_kernel(x_ref, w_ref, b_ref, s_ref, t_ref, o_ref, acc_ref):
    """K-tiled Linear + BN(eval) + ReLU: acc += x_blk @ w_blk over the
    reduction grid axis; bias/BN/ReLU + bf16 store at the last K step."""
    k = pl.program_id(1)

    @pl.when(k == 0)
    def _():
        acc_ref[...] = jnp.zeros_like(acc_ref)

    acc_ref[...] += jnp.dot(x_ref[...], w_ref[...],
                            preferred_element_type=jnp.float32)

    @pl.when(k == pl.num_programs(1) - 1)
    def _():
        y = acc_ref[...] + b_ref[...]
        o_ref[...] = jnp.maximum(y * s_ref[...] + t_ref[...],
                                 0.0).astype(o_ref.dtype)


def gate_linear_kernel(x_ref, w_ref, b_ref, o_ref):
    """Gates for both LSTM directions at once: y = x @ [Wf|Wb] + b (bf16 out)."""
    o_ref[...] = (jnp.dot(x_ref[...], w_ref[...],
                          preferred_element_type=jnp.float32)
                  + b_ref[...]).astype(o_ref.dtype)


def dual_gate_linear_kernel(x1_ref, w1_ref, x2_ref, w2_ref, b_ref, o_ref):
    """y = x1 @ w1 + x2 @ w2 + b  (== concat(x1,x2) @ W without the concat)."""
    o_ref[...] = (jnp.dot(x1_ref[...], w1_ref[...],
                          preferred_element_type=jnp.float32)
                  + jnp.dot(x2_ref[...], w2_ref[...],
                            preferred_element_type=jnp.float32)
                  + b_ref[...]).astype(o_ref.dtype)


def output_head_kernel(xf_ref, xb_ref, w1a_ref, w1b_ref, b1_ref, s_ref, t_ref,
                       w2_ref, b2_ref, o_ref):
    """relu(bn(fwd@W1a + bwd@W1b + b1)) @ W2 + b2, fused in one kernel."""
    h = (jnp.dot(xf_ref[...], w1a_ref[...], preferred_element_type=jnp.float32)
         + jnp.dot(xb_ref[...], w1b_ref[...], preferred_element_type=jnp.float32)
         + b1_ref[...])
    h = jnp.maximum(h * s_ref[...] + t_ref[...], 0.0)
    o_ref[...] = jnp.dot(h.astype(BF16), w2_ref[...],
                         preferred_element_type=jnp.float32) + b2_ref[...]


def bilstm_chunk_kernel(gf_ref, gb_ref, whf_ref, whb_ref, of_ref, ob_ref,
                        hf_sc, cf_sc, hb_sc, cb_sc, *, hidden, chunk):
    """`chunk` timesteps of BOTH directions per grid step (PyTorch gate order
    i, f, g, o).  gf_ref holds precomputed x@W_ih + b for the forward time
    chunk, gb_ref for the mirrored backward chunk.  Only h@W_hh runs here;
    (h, c) state stays in f32 VMEM scratch, outputs are stored in bf16.
    """
    # TODO(synk): v7x could run the two directions on separate TensorCores
    # (CORE_PARALLEL leading grid axis); kept fused on one core for portability.
    @pl.when(pl.program_id(0) == 0)
    def _():
        hf_sc[...] = jnp.zeros_like(hf_sc)
        cf_sc[...] = jnp.zeros_like(cf_sc)
        hb_sc[...] = jnp.zeros_like(hb_sc)
        cb_sc[...] = jnp.zeros_like(cb_sc)

    H = hidden

    def cell(gates_in, h_prev, c_prev, whh_ref):
        # TODO(synk): for H >= 2048 the (H, 4H) W_hh should be gate-tiled to
        # fit v7x VMEM; full-width is fine for H <= 1024.
        gates = gates_in.astype(jnp.float32) + jnp.dot(
            h_prev.astype(BF16), whh_ref[...],
            preferred_element_type=jnp.float32)
        i_g = jax.nn.sigmoid(gates[:, 0:H])
        f_g = jax.nn.sigmoid(gates[:, H:2 * H])
        g_g = jnp.tanh(gates[:, 2 * H:3 * H])
        o_g = jax.nn.sigmoid(gates[:, 3 * H:4 * H])
        c_new = f_g * c_prev + i_g * g_g
        h_new = o_g * jnp.tanh(c_new)
        return h_new, c_new

    # Statically unrolled time loop over the chunk (all indices constant).
    for j in range(chunk):
        # Forward direction: local chunk index j.
        h_new, c_new = cell(gf_ref[j], hf_sc[...], cf_sc[...], whf_ref)
        hf_sc[...] = h_new
        cf_sc[...] = c_new
        of_ref[j] = h_new.astype(of_ref.dtype)

        # Backward direction: walk the chunk in reverse time order.
        jb = chunk - 1 - j
        h_new, c_new = cell(gb_ref[jb], hb_sc[...], cb_sc[...], whb_ref)
        hb_sc[...] = h_new
        cb_sc[...] = c_new
        ob_ref[jb] = h_new.astype(ob_ref.dtype)


# --------------------------------------------------------------------------
# Wrappers around pallas_call
# --------------------------------------------------------------------------
def input_projection(x_flat, w, b, scale, shift):
    """(N, D) f32 -> (N, H) bf16: Linear + BN(eval) + ReLU, K-tiled over D."""
    n, d = x_flat.shape
    hdim = w.shape[1]
    dk = min(K_TILE_CAP, _round_up(d, 128))
    d_pad = _round_up(d, dk)
    x = x_flat.astype(BF16)
    if d_pad != d:                      # zero-pad the voxel dim (no-op math)
        x = jnp.pad(x, ((0, 0), (0, d_pad - d)))
        w = jnp.pad(w, ((0, d_pad - d), (0, 0)))
    tile, n_pad = _row_tile(n)
    x = _pad_rows(x, n_pad)
    out = pl.pallas_call(
        input_proj_kernel,
        out_shape=jax.ShapeDtypeStruct((n_pad, hdim), BF16),
        grid=(n_pad // tile, d_pad // dk),
        in_specs=[pl.BlockSpec((tile, dk), lambda i, k: (i, k)),
                  pl.BlockSpec((dk, hdim), lambda i, k: (k, 0)),
                  pl.BlockSpec((1, hdim), lambda i, k: (0, 0)),
                  pl.BlockSpec((1, hdim), lambda i, k: (0, 0)),
                  pl.BlockSpec((1, hdim), lambda i, k: (0, 0))],
        out_specs=pl.BlockSpec((tile, hdim), lambda i, k: (i, 0)),
        scratch_shapes=[pltpu.VMEM((tile, hdim), jnp.float32)],
        compiler_params=_compiler_params(("parallel", "arbitrary")),
    )(x, w.astype(BF16), b.reshape(1, -1).astype(jnp.float32),
      scale.reshape(1, -1).astype(jnp.float32),
      shift.reshape(1, -1).astype(jnp.float32))
    return out[:n]


def gate_precompute_l0(x_flat, w8, b8):
    """Layer-0 gates for both directions: (N, H) bf16 -> (N, 8H) bf16."""
    n, d = x_flat.shape
    m = w8.shape[1]
    tile, n_pad = _row_tile(n)
    x = _pad_rows(x_flat, n_pad)
    out = pl.pallas_call(
        gate_linear_kernel,
        out_shape=jax.ShapeDtypeStruct((n_pad, m), BF16),
        grid=(n_pad // tile,),
        in_specs=[pl.BlockSpec((tile, d), lambda i: (i, 0)),
                  pl.BlockSpec((d, m), lambda i: (0, 0)),
                  pl.BlockSpec((1, m), lambda i: (0, 0))],
        out_specs=pl.BlockSpec((tile, m), lambda i: (i, 0)),
        compiler_params=_compiler_params(("parallel",)),
    )(x, w8.astype(BF16), b8.reshape(1, -1).astype(jnp.float32))
    return out[:n]


def gate_precompute_fused(xf_flat, xb_flat, w8, b8):
    """Layer>=1 gates for both directions without concat(fwd, bwd)."""
    n, hdim = xf_flat.shape
    m = w8.shape[1]
    tile, n_pad = _row_tile(n)
    xf = _pad_rows(xf_flat, n_pad)
    xb = _pad_rows(xb_flat, n_pad)
    out = pl.pallas_call(
        dual_gate_linear_kernel,
        out_shape=jax.ShapeDtypeStruct((n_pad, m), BF16),
        grid=(n_pad // tile,),
        in_specs=[pl.BlockSpec((tile, hdim), lambda i: (i, 0)),
                  pl.BlockSpec((hdim, m), lambda i: (0, 0)),
                  pl.BlockSpec((tile, hdim), lambda i: (i, 0)),
                  pl.BlockSpec((hdim, m), lambda i: (0, 0)),
                  pl.BlockSpec((1, m), lambda i: (0, 0))],
        out_specs=pl.BlockSpec((tile, m), lambda i: (i, 0)),
        compiler_params=_compiler_params(("parallel",)),
    )(xf, w8[:hdim].astype(BF16), xb, w8[hdim:].astype(BF16),
      b8.reshape(1, -1).astype(jnp.float32))
    return out[:n]


def bilstm_layer(gates_all, w_hh_f, w_hh_b):
    """Fused bidirectional LSTM layer over precomputed gates.

    gates_all: (T, B, 8H) bf16, columns = [fwd gates 4H | bwd gates 4H].
    Returns (out_fwd, out_bwd), each (T, B, H) bf16, time-major.
    """
    T, B, _ = gates_all.shape
    H = w_hh_f.shape[0]
    G4 = 4 * H
    tc = _chunk_divisor(T, TIME_CHUNK_CAP, 1)
    n_chunks = T // tc

    def gate_spec(index_map):
        # Deeper prefetch on the serial gate stream once the grid is long
        # enough for it to matter (skipped for tiny grids).
        if n_chunks >= 3:
            return pl.BlockSpec((tc, B, G4), index_map,
                                pipeline_mode=pl.Buffered(3))
        return pl.BlockSpec((tc, B, G4), index_map)

    out_f, out_b = pl.pallas_call(
        functools.partial(bilstm_chunk_kernel, hidden=H, chunk=tc),
        out_shape=(jax.ShapeDtypeStruct((T, B, H), BF16),
                   jax.ShapeDtypeStruct((T, B, H), BF16)),
        grid=(n_chunks,),
        in_specs=[
            gate_spec(lambda c: (c, 0, 0)),                   # fwd gate chunk
            gate_spec(lambda c: (n_chunks - 1 - c, 0, 1)),    # bwd gate chunk
            pl.BlockSpec((H, G4), lambda c: (0, 0)),          # W_hh fwd (resident)
            pl.BlockSpec((H, G4), lambda c: (0, 0)),          # W_hh bwd (resident)
        ],
        out_specs=(pl.BlockSpec((tc, B, H), lambda c: (c, 0, 0)),
                   pl.BlockSpec((tc, B, H), lambda c: (n_chunks - 1 - c, 0, 0))),
        scratch_shapes=[pltpu.VMEM((B, H), jnp.float32),   # h fwd
                        pltpu.VMEM((B, H), jnp.float32),   # c fwd
                        pltpu.VMEM((B, H), jnp.float32),   # h bwd
                        pltpu.VMEM((B, H), jnp.float32)],  # c bwd
        compiler_params=_compiler_params(("arbitrary",)),
    )(gates_all, gates_all, w_hh_f.astype(BF16), w_hh_b.astype(BF16))
    return out_f, out_b


def output_head(xf_flat, xb_flat, w1a, w1b, b1, scale, shift, w2, b2):
    n, hdim = xf_flat.shape
    hd = w1a.shape[1]
    e = w2.shape[1]
    tile, n_pad = _row_tile(n)
    xf = _pad_rows(xf_flat, n_pad)
    xb = _pad_rows(xb_flat, n_pad)
    out = pl.pallas_call(
        output_head_kernel,
        out_shape=jax.ShapeDtypeStruct((n_pad, e), jnp.float32),
        grid=(n_pad // tile,),
        in_specs=[pl.BlockSpec((tile, hdim), lambda i: (i, 0)),
                  pl.BlockSpec((tile, hdim), lambda i: (i, 0)),
                  pl.BlockSpec((hdim, hd), lambda i: (0, 0)),
                  pl.BlockSpec((hdim, hd), lambda i: (0, 0)),
                  pl.BlockSpec((1, hd), lambda i: (0, 0)),
                  pl.BlockSpec((1, hd), lambda i: (0, 0)),
                  pl.BlockSpec((1, hd), lambda i: (0, 0)),
                  pl.BlockSpec((hd, e), lambda i: (0, 0)),
                  pl.BlockSpec((1, e), lambda i: (0, 0))],
        out_specs=pl.BlockSpec((tile, e), lambda i: (i, 0)),
        compiler_params=_compiler_params(("parallel",)),
    )(xf, xb, w1a.astype(BF16), w1b.astype(BF16),
      b1.reshape(1, -1).astype(jnp.float32),
      scale.reshape(1, -1).astype(jnp.float32),
      shift.reshape(1, -1).astype(jnp.float32),
      w2.astype(BF16), b2.reshape(1, -1).astype(jnp.float32))
    return out[:n]


# --------------------------------------------------------------------------
# Parameters (deterministic, synthetic) and BN folding
# --------------------------------------------------------------------------
def init_params(key, fmri_dim, video_embed_dim, hidden, num_layers=2):
    keys = iter(jax.random.split(key, 64))
    nrm = lambda shape, s=0.1: s * jax.random.normal(next(keys), shape, jnp.float32)

    def bn(dim):
        return dict(gamma=1.0 + nrm((dim,), 0.05),
                    beta=nrm((dim,), 0.05),
                    mean=nrm((dim,), 0.05),
                    var=1.0 + 0.1 * jax.random.uniform(next(keys), (dim,),
                                                       jnp.float32))

    p = dict(
        w_in=nrm((fmri_dim, hidden)), b_in=nrm((hidden,)), bn_in=bn(hidden),
        w_o1=nrm((2 * hidden, hidden)), b_o1=nrm((hidden,)), bn_out=bn(hidden),
        w_o2=nrm((hidden, video_embed_dim)), b_o2=nrm((video_embed_dim,)),
        lstm=[],
    )
    for layer in range(num_layers):
        in_dim = hidden if layer == 0 else 2 * hidden
        p["lstm"].append(dict(
            # Fused input->gate weights for BOTH directions: cols [fwd 4H|bwd 4H],
            # rows (layer>=1) [fwd-input H | bwd-input H].  Already transposed.
            w_ih8=nrm((in_dim, 8 * hidden)),
            b8=nrm((8 * hidden,)),                 # (b_ih + b_hh) per direction
            w_hh_f=nrm((hidden, 4 * hidden)),
            w_hh_b=nrm((hidden, 4 * hidden)),
        ))
    return p


def bn_scale_shift(bn):
    scale = bn["gamma"] / jnp.sqrt(bn["var"] + BN_EPS)
    shift = bn["beta"] - bn["mean"] * scale
    return scale, shift


# --------------------------------------------------------------------------
# Full forward pass (Pallas) and pure-JAX reference
# --------------------------------------------------------------------------
def model_forward(fmri, p):
    single = fmri.ndim == 2
    if single:
        fmri = fmri[:, None, :]
    B, T, D = fmri.shape
    N = B * T

    # Input projection: Linear + BN(eval) + ReLU (Dropout is identity).
    # TODO(synk): Dropout layers are identity (eval mode); no stochastic masking.
    s1, sh1 = bn_scale_shift(p["bn_in"])
    h = input_projection(fmri.reshape(N, D), p["w_in"], p["b_in"], s1, sh1)
    Hd = h.shape[1]

    # One relayout to time-major; cheap XLA transpose on the bf16 tensor.
    x = h.reshape(B, T, Hd).transpose(1, 0, 2)                     # (T, B, H)

    x_fwd = x_bwd = None
    for li, lp in enumerate(p["lstm"]):
        # Hoisted gate precompute for BOTH directions in one kernel.
        if li == 0:
            g = gate_precompute_l0(x.reshape(T * B, Hd), lp["w_ih8"], lp["b8"])
        else:
            g = gate_precompute_fused(x_fwd.reshape(T * B, Hd),
                                      x_bwd.reshape(T * B, Hd),
                                      lp["w_ih8"], lp["b8"])
        gates_all = g.reshape(T, B, 8 * Hd)
        x_fwd, x_bwd = bilstm_layer(gates_all, lp["w_hh_f"], lp["w_hh_b"])

    # Output head: (Linear + BN + ReLU) and final Linear fused in one kernel.
    s2, sh2 = bn_scale_shift(p["bn_out"])
    E = p["w_o2"].shape[1]
    E_pad = _round_up(E, 128)
    w2, b2 = p["w_o2"], p["b_o2"]
    if E_pad != E:
        w2 = jnp.pad(w2, ((0, 0), (0, E_pad - E)))
        b2 = jnp.pad(b2, ((0, E_pad - E),))
    out_flat = output_head(x_fwd.reshape(T * B, Hd), x_bwd.reshape(T * B, Hd),
                           p["w_o1"][:Hd], p["w_o1"][Hd:], p["b_o1"], s2, sh2,
                           w2, b2)                                # (T*B, E_pad)
    out = out_flat[:, :E].reshape(T, B, E).transpose(1, 0, 2)     # (B, T, E)
    if single:
        out = out[:, 0, :]
    return out


def ref_forward(fmri, p):
    """Pure-JAX reference mirroring the kernel's precision recipe
    (bf16 matmul operands, f32 accumulation, bf16 stored intermediates)."""
    mm = lambda a, b: jnp.dot(a.astype(BF16), b.astype(BF16),
                              preferred_element_type=jnp.float32)
    single = fmri.ndim == 2
    if single:
        fmri = fmri[:, None, :]
    B, T, D = fmri.shape
    flat = fmri.reshape(-1, D)

    s1, sh1 = bn_scale_shift(p["bn_in"])
    h = jnp.maximum((mm(flat, p["w_in"]) + p["b_in"]) * s1 + sh1, 0.0)
    x = h.astype(BF16).reshape(B, T, -1).transpose(1, 0, 2)        # (T, B, H)
    H = x.shape[-1]

    def lstm_dir(gates_tb, w_hh, reverse):
        Tn, Bn, _ = gates_tb.shape
        hs = jnp.zeros((Bn, H), jnp.float32)
        cs = jnp.zeros((Bn, H), jnp.float32)
        order = range(Tn - 1, -1, -1) if reverse else range(Tn)
        outs = [None] * Tn
        for t in order:
            g = gates_tb[t].astype(jnp.float32) + mm(hs, w_hh)
            i_g = jax.nn.sigmoid(g[:, 0:H])
            f_g = jax.nn.sigmoid(g[:, H:2 * H])
            g_g = jnp.tanh(g[:, 2 * H:3 * H])
            o_g = jax.nn.sigmoid(g[:, 3 * H:4 * H])
            cs = f_g * cs + i_g * g_g
            hs = o_g * jnp.tanh(cs)
            outs[t] = hs.astype(BF16)
        return jnp.stack(outs, axis=0)

    xf = xb = None
    for li, lp in enumerate(p["lstm"]):
        if li == 0:
            g = (mm(x.reshape(T * B, H), lp["w_ih8"]) + lp["b8"]).astype(BF16)
        else:
            g = (mm(xf.reshape(T * B, H), lp["w_ih8"][:H])
                 + mm(xb.reshape(T * B, H), lp["w_ih8"][H:])
                 + lp["b8"]).astype(BF16)
        g = g.reshape(T, B, 8 * H)
        xf = lstm_dir(g[..., :4 * H], lp["w_hh_f"], False)
        xb = lstm_dir(g[..., 4 * H:], lp["w_hh_b"], True)

    s2, sh2 = bn_scale_shift(p["bn_out"])
    h2 = (mm(xf.reshape(T * B, H), p["w_o1"][:H])
          + mm(xb.reshape(T * B, H), p["w_o1"][H:]) + p["b_o1"])
    h2 = jnp.maximum(h2 * s2 + sh2, 0.0)
    out = mm(h2, p["w_o2"]) + p["b_o2"]
    out = out.reshape(T, B, -1).transpose(1, 0, 2)
    if single:
        out = out[:, 0, :]
    return out


# --------------------------------------------------------------------------
if __name__ == "__main__":
    FMRI_DIM, VIDEO_DIM, HIDDEN = 64, 16, 32
    BATCH, SEQ = 2, 8

    key = jax.random.PRNGKey(0)
    k_param, k_data = jax.random.split(key)
    params = init_params(k_param, FMRI_DIM, VIDEO_DIM, HIDDEN)
    fmri = jax.random.normal(k_data, (BATCH, SEQ, FMRI_DIM), jnp.float32)

    fwd = jax.jit(model_forward)
    out = jax.block_until_ready(fwd(fmri, params))
    ref = jax.block_until_ready(ref_forward(fmri, params))

    assert out.shape == (BATCH, SEQ, VIDEO_DIM), out.shape
    max_err = float(jnp.max(jnp.abs(out - ref)))
    assert jnp.allclose(out, ref, atol=2e-2, rtol=2e-2), max_err
    print("KERNEL_OK")
</pallas_src>

<mosaic_0001>
module attributes {stable_mosaic.version = 11 : i64} {
  func.func @gate_linear_kernel(%arg0: i32, %arg1: memref<16x32xbf16, #tpu.memory_space<vmem>>, %arg2: memref<32x256xbf16, #tpu.memory_space<vmem>>, %arg3: memref<1x256xf32, #tpu.memory_space<vmem>>, %arg4: memref<16x256xbf16, #tpu.memory_space<vmem>>) attributes {dimension_semantics = [#tpu.dimension_semantics<parallel>], iteration_bounds = array<i64: 1>, scalar_prefetch = 0 : i64, scratch_operands = 0 : i64, tpu.core_type = #tpu.core_type<tc>, window_params = [{transform_indices = @transform_0, window_bounds = array<i64: 16, 32>}, {pipeline_mode = #tpu.pipeline_mode<synchronous>, transform_indices = @transform_1, window_bounds = array<i64: 32, 256>}, {pipeline_mode = #tpu.pipeline_mode<synchronous>, transform_indices = @transform_2, window_bounds = array<i64: 1, 256>}, {transform_indices = @transform_3, window_bounds = array<i64: 16, 256>}]} {
    %c0 = arith.constant 0 : index
    %c0_0 = arith.constant 0 : index
    %0 = vector.load %arg1[%c0, %c0_0] : memref<16x32xbf16, #tpu.memory_space<vmem>>, vector<16x32xbf16>
    %c0_1 = arith.constant 0 : index
    %c0_2 = arith.constant 0 : index
    %1 = vector.load %arg2[%c0_1, %c0_2] : memref<32x256xbf16, #tpu.memory_space<vmem>>, vector<32x256xbf16>
    %cst = arith.constant dense<0.000000e+00> : vector<16x256xf32>
    %2 = tpu.matmul %0, %1, %cst {dimension_numbers = #tpu.dot_dimension_numbers<[1], [0], [0], [1], [0, 0, 1, 1], [], []>} : vector<16x32xbf16>, vector<32x256xbf16>, vector<16x256xf32> -> vector<16x256xf32>
    %c0_3 = arith.constant 0 : index
    %c0_4 = arith.constant 0 : index
    %3 = vector.load %arg3[%c0_3, %c0_4] : memref<1x256xf32, #tpu.memory_space<vmem>>, vector<1x256xf32>
    %4 = vector.broadcast %3 : vector<1x256xf32> to vector<16x256xf32>
    %5 = arith.addf %2, %4 : vector<16x256xf32>
    %6 = arith.truncf %5 : vector<16x256xf32> to vector<16x256xbf16>
    %c0_5 = arith.constant 0 : index
    %c0_6 = arith.constant 0 : index
    %7 = vector.load %arg4[%c0_5, %c0_6] : memref<16x256xbf16, #tpu.memory_space<vmem>>, vector<16x256xbf16>
    tpu.vector_store %arg4[%c0_5, %c0_6], %6 {strides = array<i32>} : memref<16x256xbf16, #tpu.memory_space<vmem>>, vector<16x256xbf16>,
    return
  }
  func.func @transform_0(%arg0: i32) -> (i32, i32) {
    %c0_i32 = arith.constant 0 : i32
    %c0_i32_0 = arith.constant 0 : i32
    return %arg0, %c0_i32 : i32, i32
  }
  func.func @transform_1(%arg0: i32) -> (i32, i32) {
    %c0_i32 = arith.constant 0 : i32
    %c0_i32_0 = arith.constant 0 : i32
    %c0_i32_1 = arith.constant 0 : i32
    return %c0_i32, %c0_i32_0 : i32, i32
  }
  func.func @transform_2(%arg0: i32) -> (i32, i32) {
    %c0_i32 = arith.constant 0 : i32
    %c0_i32_0 = arith.constant 0 : i32
    %c0_i32_1 = arith.constant 0 : i32
    return %c0_i32, %c0_i32_0 : i32, i32
  }
  func.func @transform_3(%arg0: i32) -> (i32, i32) {
    %c0_i32 = arith.constant 0 : i32
    %c0_i32_0 = arith.constant 0 : i32
    return %arg0, %c0_i32 : i32, i32
  }
}

module attributes {stable_mosaic.version = 11 : i64} {
  func.func @input_proj_kernel(%arg0: i32, %arg1: i32, %arg2: memref<16x128xbf16, #tpu.memory_space<vmem>>, %arg3: memref<128x32xbf16, #tpu.memory_space<vmem>>, %arg4: memref<1x32xf32, #tpu.memory_space<vmem>>, %arg5: memref<1x32xf32, #tpu.memory_space<vmem>>, %arg6: memref<1x32xf32, #tpu.memory_space<vmem>>, %arg7: memref<16x32xbf16, #tpu.memory_space<vmem>>, %arg8: memref<16x32xf32, #tpu.memory_space<vmem>>) attributes {dimension_semantics = [#tpu.dimension_semantics<parallel>, #tpu.dimension_semantics<arbitrary>], iteration_bounds = array<i64: 1, 1>, scalar_prefetch = 0 : i64, scratch_operands = 1 : i64, tpu.core_type = #tpu.core_type<tc>, window_params = [{transform_indices = @transform_0, window_bounds = array<i64: 16, 128>}, {transform_indices = @transform_1, window_bounds = array<i64: 128, 32>}, {pipeline_mode = #tpu.pipeline_mode<synchronous>, transform_indices = @transform_2, window_bounds = array<i64: 1, 32>}, {pipeline_mode = #tpu.pipeline_mode<synchronous>, transform_indices = @transform_3, window_bounds = array<i64: 1, 32>}, {pipeline_mode = #tpu.pipeline_mode<synchronous>, transform_indices = @transform_4, window_bounds = array<i64: 1, 32>}, {transform_indices = @transform_5, window_bounds = array<i64: 16, 32>}]} {
    %c0_i32 = arith.constant 0 : i32
    %0 = arith.cmpi eq, %arg1, %c0_i32 : i32
    %1 = arith.extui %0 : i1 to i32
    %c0_i32_0 = arith.constant 0 : i32
    %2 = arith.cmpi ne, %1, %c0_i32_0 : i32
    scf.if %2 {
      %cst_10 = arith.constant 0.000000e+00 : f32
      %12 = vector.broadcast %cst_10 : f32 to vector<16x32xf32>
      %c0_11 = arith.constant 0 : index
      %c0_12 = arith.constant 0 : index
      %13 = vector.load %arg8[%c0_11, %c0_12] : memref<16x32xf32, #tpu.memory_space<vmem>>, vector<16x32xf32>
      tpu.vector_store %arg8[%c0_11, %c0_12], %12 {strides = array<i32>} : memref<16x32xf32, #tpu.memory_space<vmem>>, vector<16x32xf32>,
    } else {
    }
    %c0 = arith.constant 0 : index
    %c0_1 = arith.constant 0 : index
    %3 = vector.load %arg8[%c0, %c0_1] : memref<16x32xf32, #tpu.memory_space<vmem>>, vector<16x32xf32>
    %c0_2 = arith.constant 0 : index
    %c0_3 = arith.constant 0 : index
    %4 = vector.load %arg2[%c0_2, %c0_3] : memref<16x128xbf16, #tpu.memory_space<vmem>>, vector<16x128xbf16>
    %c0_4 = arith.constant 0 : index
    %c0_5 = arith.constant 0 : index
    %5 = vector.load %arg3[%c0_4, %c0_5] : memref<128x32xbf16, #tpu.memory_space<vmem>>, vector<128x32xbf16>
    %cst = arith.constant dense<0.000000e+00> : vector<16x32xf32>
    %6 = tpu.matmul %4, %5, %cst {dimension_numbers = #tpu.dot_dimension_numbers<[1], [0], [0], [1], [0, 0, 1, 1], [], []>} : vector<16x128xbf16>, vector<128x32xbf16>, vector<16x32xf32> -> vector<16x32xf32>
    %7 = arith.addf %3, %6 : vector<16x32xf32>
    %c0_6 = arith.constant 0 : index
    %c0_7 = arith.constant 0 : index
    %8 = vector.load %arg8[%c0_6, %c0_7] : memref<16x32xf32, #tpu.memory_space<vmem>>, vector<16x32xf32>
    tpu.vector_store %arg8[%c0_6, %c0_7], %7 {strides = array<i32>} : memref<16x32xf32, #tpu.memory_space<vmem>>, vector<16x32xf32>,
    %c0_i32_8 = arith.constant 0 : i32
    %9 = arith.cmpi eq, %arg1, %c0_i32_8 : i32
    %10 = arith.extui %9 : i1 to i32
    %c0_i32_9 = arith.constant 0 : i32
    %11 = arith.cmpi ne, %10, %c0_i32_9 : i32
    scf.if %11 {
      %c0_10 = arith.constant 0 : index
      %c0_11 = arith.constant 0 : index
      %12 = vector.load %arg8[%c0_10, %c0_11] : memref<16x32xf32, #tpu.memory_space<vmem>>, vector<16x32xf32>
      %c0_12 = arith.constant 0 : index
      %c0_13 = arith.constant 0 : index
      %13 = vector.load %arg4[%c0_12, %c0_13] : memref<1x32xf32, #tpu.memory_space<vmem>>, vector<1x32xf32>
      %14 = vector.broadcast %13 : vector<1x32xf32> to vector<16x32xf32>
      %15 = arith.addf %12, %14 : vector<16x32xf32>
      %c0_14 = arith.constant 0 : index
      %c0_15 = arith.constant 0 : index
      %16 = vector.load %arg5[%c0_14, %c0_15] : memref<1x32xf32, #tpu.memory_space<vmem>>, vector<1x32xf32>
      %17 = vector.broadcast %16 : vector<1x32xf32> to vector<16x32xf32>
      %18 = arith.mulf %15, %17 : vector<16x32xf32>
      %c0_16 = arith.constant 0 : index
      %c0_17 = arith.constant 0 : index
      %19 = vector.load %arg6[%c0_16, %c0_17] : memref<1x32xf32, #tpu.memory_space<vmem>>, vector<1x32xf32>
      %20 = vector.broadcast %19 : vector<1x32xf32> to vector<16x32xf32>
      %21 = arith.addf %18, %20 : vector<16x32xf32>
      %cst_18 = arith.constant 0.000000e+00 : f32
      %22 = vector.broadcast %cst_18 : f32 to vector<16x32xf32>
      %23 = arith.maximumf %21, %22 : vector<16x32xf32>
      %24 = arith.truncf %23 : vector<16x32xf32> to vector<16x32xbf16>
      %c0_19 = arith.constant 0 : index
      %c0_20 = arith.constant 0 : index
      %25 = vector.load %arg7[%c0_19, %c0_20] : memref<16x32xbf16, #tpu.memory_space<vmem>>, vector<16x32xbf16>
      tpu.vector_store %arg7[%c0_19, %c0_20], %24 {strides = array<i32>} : memref<16x32xbf16, #tpu.memory_space<vmem>>, vector<16x32xbf16>,
    } else {
    }
    return
  }
  func.func @transform_0(%arg0: i32, %arg1: i32) -> (i32, i32) {
    %c0_i32 = arith.constant 0 : i32
    return %arg0, %arg1 : i32, i32
  }
  func.func @transform_1(%arg0: i32, %arg1: i32) -> (i32, i32) {
    %c0_i32 = arith.constant 0 : i32
    %c0_i32_0 = arith.constant 0 : i32
    return %arg1, %c0_i32 : i32, i32
  }
  func.func @transform_2(%arg0: i32, %arg1: i32) -> (i32, i32) {
    %c0_i32 = arith.constant 0 : i32
    %c0_i32_0 = arith.constant 0 : i32
    %c0_i32_1 = arith.constant 0 : i32
    return %c0_i32, %c0_i32_0 : i32, i32
  }
  func.func @transform_3(%arg0: i32, %arg1: i32) -> (i32, i32) {
    %c0_i32 = arith.constant 0 : i32
    %c0_i32_0 = arith.constant 0 : i32
    %c0_i32_1 = arith.constant 0 : i32
    return %c0_i32, %c0_i32_0 : i32, i32
  }
  func.func @transform_4(%arg0: i32, %arg1: i32) -> (i32, i32) {
    %c0_i32 = arith.constant 0 : i32
    %c0_i32_0 = arith.constant 0 : i32
    %c0_i32_1 = arith.constant 0 : i32
    return %c0_i32, %c0_i32_0 : i32, i32
  }
  func.func @transform_5(%arg0: i32, %arg1: i32) -> (i32, i32) {
    %c0_i32 = arith.constant 0 : i32
    %c0_i32_0 = arith.constant 0 : i32
    return %arg0, %c0_i32 : i32, i32
  }
}

module attributes {stable_mosaic.version = 11 : i64} {
  func.func @dual_gate_linear_kernel(%arg0: i32, %arg1: memref<16x32xbf16, #tpu.memory_space<vmem>>, %arg2: memref<32x256xbf16, #tpu.memory_space<vmem>>, %arg3: memref<16x32xbf16, #tpu.memory_space<vmem>>, %arg4: memref<32x256xbf16, #tpu.memory_space<vmem>>, %arg5: memref<1x256xf32, #tpu.memory_space<vmem>>, %arg6: memref<16x256xbf16, #tpu.memory_space<vmem>>) attributes {dimension_semantics = [#tpu.dimension_semantics<parallel>], iteration_bounds = array<i64: 1>, scalar_prefetch = 0 : i64, scratch_operands = 0 : i64, tpu.core_type = #tpu.core_type<tc>, window_params = [{transform_indices = @transform_0, window_bounds = array<i64: 16, 32>}, {pipeline_mode = #tpu.pipeline_mode<synchronous>, transform_indices = @transform_1, window_bounds = array<i64: 32, 256>}, {transform_indices = @transform_2, window_bounds = array<i64: 16, 32>}, {pipeline_mode = #tpu.pipeline_mode<synchronous>, transform_indices = @transform_3, window_bounds = array<i64: 32, 256>}, {pipeline_mode = #tpu.pipeline_mode<synchronous>, transform_indices = @transform_4, window_bounds = array<i64: 1, 256>}, {transform_indices = @transform_5, window_bounds = array<i64: 16, 256>}]} {
    %c0 = arith.constant 0 : index
    %c0_0 = arith.constant 0 : index
    %0 = vector.load %arg1[%c0, %c0_0] : memref<16x32xbf16, #tpu.memory_space<vmem>>, vector<16x32xbf16>
    %c0_1 = arith.constant 0 : index
    %c0_2 = arith.constant 0 : index
    %1 = vector.load %arg2[%c0_1, %c0_2] : memref<32x256xbf16, #tpu.memory_space<vmem>>, vector<32x256xbf16>
    %cst = arith.constant dense<0.000000e+00> : vector<16x256xf32>
    %2 = tpu.matmul %0, %1, %cst {dimension_numbers = #tpu.dot_dimension_numbers<[1], [0], [0], [1], [0, 0, 1, 1], [], []>} : vector<16x32xbf16>, vector<32x256xbf16>, vector<16x256xf32> -> vector<16x256xf32>
    %c0_3 = arith.constant 0 : index
    %c0_4 = arith.constant 0 : index
    %3 = vector.load %arg3[%c0_3, %c0_4] : memref<16x32xbf16, #tpu.memory_space<vmem>>, vector<16x32xbf16>
    %c0_5 = arith.constant 0 : index
    %c0_6 = arith.constant 0 : index
    %4 = vector.load %arg4[%c0_5, %c0_6] : memref<32x256xbf16, #tpu.memory_space<vmem>>, vector<32x256xbf16>
    %cst_7 = arith.constant dense<0.000000e+00> : vector<16x256xf32>
    %5 = tpu.matmul %3, %4, %cst_7 {dimension_numbers = #tpu.dot_dimension_numbers<[1], [0], [0], [1], [0, 0, 1, 1], [], []>} : vector<16x32xbf16>, vector<32x256xbf16>, vector<16x256xf32> -> vector<16x256xf32>
    %6 = arith.addf %2, %5 : vector<16x256xf32>
    %c0_8 = arith.constant 0 : index
    %c0_9 = arith.constant 0 : index
    %7 = vector.load %arg5[%c0_8, %c0_9] : memref<1x256xf32, #tpu.memory_space<vmem>>, vector<1x256xf32>
    %8 = vector.broadcast %7 : vector<1x256xf32> to vector<16x256xf32>
    %9 = arith.addf %6, %8 : vector<16x256xf32>
    %10 = arith.truncf %9 : vector<16x256xf32> to vector<16x256xbf16>
    %c0_10 = arith.constant 0 : index
    %c0_11 = arith.constant 0 : index
    %11 = vector.load %arg6[%c0_10, %c0_11] : memref<16x256xbf16, #tpu.memory_space<vmem>>, vector<16x256xbf16>
    tpu.vector_store %arg6[%c0_10, %c0_11], %10 {strides = array<i32>} : memref<16x256xbf16, #tpu.memory_space<vmem>>, vector<16x256xbf16>,
    return
  }
  func.func @transform_0(%arg0: i32) -> (i32, i32) {
    %c0_i32 = arith.constant 0 : i32
    %c0_i32_0 = arith.constant 0 : i32
    return %arg0, %c0_i32 : i32, i32
  }
  func.func @transform_1(%arg0: i32) -> (i32, i32) {
    %c0_i32 = arith.constant 0 : i32
    %c0_i32_0 = arith.constant 0 : i32
    %c0_i32_1 = arith.constant 0 : i32
    return %c0_i32, %c0_i32_0 : i32, i32
  }
  func.func @transform_2(%arg0: i32) -> (i32, i32) {
    %c0_i32 = arith.constant 0 : i32
    %c0_i32_0 = arith.constant 0 : i32
    return %arg0, %c0_i32 : i32, i32
  }
  func.func @transform_3(%arg0: i32) -> (i32, i32) {
    %c0_i32 = arith.constant 0 : i32
    %c0_i32_0 = arith.constant 0 : i32
    %c0_i32_1 = arith.constant 0 : i32
    return %c0_i32, %c0_i32_0 : i32, i32
  }
  func.func @transform_4(%arg0: i32) -> (i32, i32) {
    %c0_i32 = arith.constant 0 : i32
    %c0_i32_0 = arith.constant 0 : i32
    %c0_i32_1 = arith.constant 0 : i32
    return %c0_i32, %c0_i32_0 : i32, i32
  }
  func.func @transform_5(%arg0: i32) -> (i32, i32) {
    %c0_i32 = arith.constant 0 : i32
    %c0_i32_0 = arith.constant 0 : i32
    return %arg0, %c0_i32 : i32, i32
  }
}

module attributes {stable_mosaic.version = 11 : i64} {
  func.func @bilstm_chunk_kernel(%arg0: i32, %arg1: memref<8x2x128xbf16, #tpu.memory_space<vmem>>, %arg2: memref<8x2x128xbf16, #tpu.memory_space<vmem>>, %arg3: memref<32x128xbf16, #tpu.memory_space<vmem>>, %arg4: memref<32x128xbf16, #tpu.memory_space<vmem>>, %arg5: memref<8x2x32xbf16, #tpu.memory_space<vmem>>, %arg6: memref<8x2x32xbf16, #tpu.memory_space<vmem>>, %arg7: memref<2x32xf32, #tpu.memory_space<vmem>>, %arg8: memref<2x32xf32, #tpu.memory_space<vmem>>, %arg9: memref<2x32xf32, #tpu.memory_space<vmem>>, %arg10: memref<2x32xf32, #tpu.memory_space<vmem>>) attributes {dimension_semantics = [#tpu.dimension_semantics<arbitrary>], iteration_bounds = array<i64: 1>, scalar_prefetch = 0 : i64, scratch_operands = 4 : i64, tpu.core_type = #tpu.core_type<tc>, window_params = [{transform_indices = @transform_0, window_bounds = array<i64: 8, 2, 128>}, {transform_indices = @transform_1, window_bounds = array<i64: 8, 2, 128>}, {pipeline_mode = #tpu.pipeline_mode<synchronous>, transform_indices = @transform_2, window_bounds = array<i64: 32, 128>}, {pipeline_mode = #tpu.pipeline_mode<synchronous>, transform_indices = @transform_3, window_bounds = array<i64: 32, 128>}, {transform_indices = @transform_4, window_bounds = array<i64: 8, 2, 32>}, {transform_indices = @transform_5, window_bounds = array<i64: 8, 2, 32>}]} {
    %c0_i32 = arith.constant 0 : i32
    %0 = arith.cmpi eq, %arg0, %c0_i32 : i32
    %1 = arith.extui %0 : i1 to i32
    %c0_i32_0 = arith.constant 0 : i32
    %2 = arith.cmpi ne, %1, %c0_i32_0 : i32
    scf.if %2 {
      %cst_312 = arith.constant 0.000000e+00 : f32
      %643 = vector.broadcast %cst_312 : f32 to vector<2x32xf32>
      %c0_313 = arith.constant 0 : index
      %c0_314 = arith.constant 0 : index
      %644 = vector.load %arg7[%c0_313, %c0_314] : memref<2x32xf32, #tpu.memory_space<vmem>>, vector<2x32xf32>
      tpu.vector_store %arg7[%c0_313, %c0_314], %643 {strides = array<i32>} : memref<2x32xf32, #tpu.memory_space<vmem>>, vector<2x32xf32>,
      %cst_315 = arith.constant 0.000000e+00 : f32
      %645 = vector.broadcast %cst_315 : f32 to vector<2x32xf32>
      %c0_316 = arith.constant 0 : index
      %c0_317 = arith.constant 0 : index
      %646 = vector.load %arg8[%c0_316, %c0_317] : memref<2x32xf32, #tpu.memory_space<vmem>>, vector<2x32xf32>
      tpu.vector_store %arg8[%c0_316, %c0_317], %645 {strides = array<i32>} : memref<2x32xf32, #tpu.memory_space<vmem>>, vector<2x32xf32>,
      %cst_318 = arith.constant 0.000000e+00 : f32
      %647 = vector.broadcast %cst_318 : f32 to vector<2x32xf32>
      %c0_319 = arith.constant 0 : index
      %c0_320 = arith.constant 0 : index
      %648 = vector.load %arg9[%c0_319, %c0_320] : memref<2x32xf32, #tpu.memory_space<vmem>>, vector<2x32xf32>
      tpu.vector_store %arg9[%c0_319, %c0_320], %647 {strides = array<i32>} : memref<2x32xf32, #tpu.memory_space<vmem>>, vector<2x32xf32>,
      %cst_321 = arith.constant 0.000000e+00 : f32
      %649 = vector.broadcast %cst_321 : f32 to vector<2x32xf32>
      %c0_322 = arith.constant 0 : index
      %c0_323 = arith.constant 0 : index
      %650 = vector.load %arg10[%c0_322, %c0_323] : memref<2x32xf32, #tpu.memory_space<vmem>>, vector<2x32xf32>
      tpu.vector_store %arg10[%c0_322, %c0_323], %649 {strides = array<i32>} : memref<2x32xf32, #tpu.memory_space<vmem>>, vector<2x32xf32>,
    } else {
    }
    %c0 = arith.constant 0 : index
    %c0_1 = arith.constant 0 : index
    %c0_2 = arith.constant 0 : index
    %3 = vector.load %arg1[%c0, %c0_1, %c0_2] : memref<8x2x128xbf16, #tpu.memory_space<vmem>>, vector<1x2x128xbf16>
    %4 = vector.shape_cast %3 : vector<1x2x128xbf16> to vector<2x128xbf16>
    %c0_3 = arith.constant 0 : index
    %c0_4 = arith.constant 0 : index
    %5 = vector.load %arg7[%c0_3, %c0_4] : memref<2x32xf32, #tpu.memory_space<vmem>>, vector<2x32xf32>
    %c0_5 = arith.constant 0 : index
    %c0_6 = arith.constant 0 : index
    %6 = vector.load %arg8[%c0_5, %c0_6] : memref<2x32xf32, #tpu.memory_space<vmem>>, vector<2x32xf32>
    %7 = arith.extf %4 : vector<2x128xbf16> to vector<2x128xf32>
    %8 = arith.truncf %5 : vector<2x32xf32> to vector<2x32xbf16>
    %c0_7 = arith.constant 0 : index
    %c0_8 = arith.constant 0 : index
    %9 = vector.load %arg3[%c0_7, %c0_8] : memref<32x128xbf16, #tpu.memory_space<vmem>>, vector<32x128xbf16>
    %cst = arith.constant dense<0.000000e+00> : vector<2x128xf32>
    %10 = tpu.matmul %8, %9, %cst {dimension_numbers = #tpu.dot_dimension_numbers<[1], [0], [0], [1], [0, 0, 1, 1], [], []>} : vector<2x32xbf16>, vector<32x128xbf16>, vector<2x128xf32> -> vector<2x128xf32>
    %11 = arith.addf %7, %10 : vector<2x128xf32>
    %12 = vector.extract_strided_slice %11 {offsets = [0, 0], sizes = [2, 32], strides = [1, 1]} : vector<2x128xf32> to vector<2x32xf32>
    %13 = arith.negf %12 : vector<2x32xf32>
    %14 = math.exp %13 : vector<2x32xf32>
    %cst_9 = arith.constant 1.000000e+00 : f32
    %15 = vector.broadcast %cst_9 : f32 to vector<2x32xf32>
    %16 = arith.addf %15, %14 : vector<2x32xf32>
    %17 = arith.divf %15, %16 : vector<2x32xf32>
    %18 = vector.extract_strided_slice %11 {offsets = [0, 32], sizes = [2, 32], strides = [1, 1]} : vector<2x128xf32> to vector<2x32xf32>
    %19 = arith.negf %18 : vector<2x32xf32>
    %20 = math.exp %19 : vector<2x32xf32>
    %cst_10 = arith.constant 1.000000e+00 : f32
    %21 = vector.broadcast %cst_10 : f32 to vector<2x32xf32>
    %22 = arith.addf %21, %20 : vector<2x32xf32>
    %23 = arith.divf %21, %22 : vector<2x32xf32>
    %24 = vector.extract_strided_slice %11 {offsets = [0, 64], sizes = [2, 32], strides = [1, 1]} : vector<2x128xf32> to vector<2x32xf32>
    %25 = math.tanh %24 : vector<2x32xf32>
    %26 = vector.extract_strided_slice %11 {offsets = [0, 96], sizes = [2, 32], strides = [1, 1]} : vector<2x128xf32> to vector<2x32xf32>
    %27 = arith.negf %26 : vector<2x32xf32>
    %28 = math.exp %27 : vector<2x32xf32>
    %cst_11 = arith.constant 1.000000e+00 : f32
    %29 = vector.broadcast %cst_11 : f32 to vector<2x32xf32>
    %30 = arith.addf %29, %28 : vector<2x32xf32>
    %31 = arith.divf %29, %30 : vector<2x32xf32>
    %32 = arith.mulf %23, %6 : vector<2x32xf32>
    %33 = arith.mulf %17, %25 : vector<2x32xf32>
    %34 = arith.addf %32, %33 : vector<2x32xf32>
    %35 = math.tanh %34 : vector<2x32xf32>
    %36 = arith.mulf %31, %35 : vector<2x32xf32>
    %c0_12 = arith.constant 0 : index
    %c0_13 = arith.constant 0 : index
    %37 = vector.load %arg7[%c0_12, %c0_13] : memref<2x32xf32, #tpu.memory_space<vmem>>, vector<2x32xf32>
    tpu.vector_store %arg7[%c0_12, %c0_13], %36 {strides = array<i32>} : memref<2x32xf32, #tpu.memory_space<vmem>>, vector<2x32xf32>,
    %c0_14 = arith.constant 0 : index
    %c0_15 = arith.constant 0 : index
    %38 = vector.load %arg8[%c0_14, %c0_15] : memref<2x32xf32, #tpu.memory_space<vmem>>, vector<2x32xf32>
    tpu.vector_store %arg8[%c0_14, %c0_15], %34 {strides = array<i32>} : memref<2x32xf32, #tpu.memory_space<vmem>>, vector<2x32xf32>,
    %39 = arith.truncf %36 : vector<2x32xf32> to vector<2x32xbf16>
    %c0_16 = arith.constant 0 : index
    %c0_17 = arith.constant 0 : index
    %c0_18 = arith.constant 0 : index
    %40 = vector.load %arg5[%c0_16, %c0_17, %c0_18] : memref<8x2x32xbf16, #tpu.memory_space<vmem>>, vector<1x2x32xbf16>
    %41 = vector.shape_cast %40 : vector<1x2x32xbf16> to vector<2x32xbf16>
    %42 = vector.shape_cast %39 : vector<2x32xbf16> to vector<1x2x32xbf16>
    tpu.vector_store %arg5[%c0_16, %c0_17, %c0_18], %42 {strides = array<i32>} : memref<8x2x32xbf16, #tpu.memory_space<vmem>>, vector<1x2x32xbf16>,
    %c7 = arith.constant 7 : index
    %c0_19 = arith.constant 0 : index
    %c0_20 = arith.constant 0 : index
    %43 = vector.load %arg2[%c7, %c0_19, %c0_20] : memref<8x2x128xbf16, #tpu.memory_space<vmem>>, vector<1x2x128xbf16>
    %44 = vector.shape_cast %43 : vector<1x2x128xbf16> to vector<2x128xbf16>
    %c0_21 = arith.constant 0 : index
    %c0_22 = arith.constant 0 : index
    %45 = vector.load %arg9[%c0_21, %c0_22] : memref<2x32xf32, #tpu.memory_space<vmem>>, vector<2x32xf32>
    %c0_23 = arith.constant 0 : index
    %c0_24 = arith.constant 0 : index
    %46 = vector.load %arg10[%c0_23, %c0_24] : memref<2x32xf32, #tpu.memory_space<vmem>>, vector<2x32xf32>
    %47 = arith.extf %44 : vector<2x128xbf16> to vector<2x128xf32>
    %48 = arith.truncf %45 : vector<2x32xf32> to vector<2x32xbf16>
    %c0_25 = arith.constant 0 : index
    %c0_26 = arith.constant 0 : index
    %49 = vector.load %arg4[%c0_25, %c0_26] : memref<32x128xbf16, #tpu.memory_space<vmem>>, vector<32x128xbf16>
    %cst_27 = arith.constant dense<0.000000e+00> : vector<2x128xf32>
    %50 = tpu.matmul %48, %49, %cst_27 {dimension_numbers = #tpu.dot_dimension_numbers<[1], [0], [0], [1], [0, 0, 1, 1], [], []>} : vector<2x32xbf16>, vector<32x128xbf16>, vector<2x128xf32> -> vector<2x128xf32>
    %51 = arith.addf %47, %50 : vector<2x128xf32>
    %52 = vector.extract_strided_slice %51 {offsets = [0, 0], sizes = [2, 32], strides = [1, 1]} : vector<2x128xf32> to vector<2x32xf32>
    %53 = arith.negf %52 : vector<2x32xf32>
    %54 = math.exp %53 : vector<2x32xf32>
    %cst_28 = arith.constant 1.000000e+00 : f32
    %55 = vector.broadcast %cst_28 : f32 to vector<2x32xf32>
    %56 = arith.addf %55, %54 : vector<2x32xf32>
    %57 = arith.divf %55, %56 : vector<2x32xf32>
    %58 = vector.extract_strided_slice %51 {offsets = [0, 32], sizes = [2, 32], strides = [1, 1]} : vector<2x128xf32> to vector<2x32xf32>
    %59 = arith.negf %58 : vector<2x32xf32>
    %60 = math.exp %59 : vector<2x32xf32>
    %cst_29 = arith.constant 1.000000e+00 : f32
    %61 = vector.broadcast %cst_29 : f32 to vector<2x32xf32>
    %62 = arith.addf %61, %60 : vector<2x32xf32>
    %63 = arith.divf %61, %62 : vector<2x32xf32>
    %64 = vector.extract_strided_slice %51 {offsets = [0, 64], sizes = [2, 32], strides = [1, 1]} : vector<2x128xf32> to vector<2x32xf32>
    %65 = math.tanh %64 : vector<2x32xf32>
    %66 = vector.extract_strided_slice %51 {offsets = [0, 96], sizes = [2, 32], strides = [1, 1]} : vector<2x128xf32> to vector<2x32xf32>
    %67 = arith.negf %66 : vector<2x32xf32>
    %68 = math.exp %67 : vector<2x32xf32>
    %cst_30 = arith.constant 1.000000e+00 : f32
    %69 = vector.broadcast %cst_30 : f32 to vector<2x32xf32>
    %70 = arith.addf %69, %68 : vector<2x32xf32>
    %71 = arith.divf %69, %70 : vector<2x32xf32>
    %72 = arith.mulf %63, %46 : vector<2x32xf32>
    %73 = arith.mulf %57, %65 : vector<2x32xf32>
    %74 = arith.addf %72, %73 : vector<2x32xf32>
    %75 = math.tanh %74 : vector<2x32xf32>
    %76 = arith.mulf %71, %75 : vector<2x32xf32>
    %c0_31 = arith.constant 0 : index
    %c0_32 = arith.constant 0 : index
    %77 = vector.load %arg9[%c0_31, %c0_32] : memref<2x32xf32, #tpu.memory_space<vmem>>, vector<2x32xf32>
    tpu.vector_store %arg9[%c0_31, %c0_32], %76 {strides = array<i32>} : memref<2x32xf32, #tpu.memory_space<vmem>>, vector<2x32xf32>,
    %c0_33 = arith.constant 0 : index
    %c0_34 = arith.constant 0 : index
    %78 = vector.load %arg10[%c0_33, %c0_34] : memref<2x32xf32, #tpu.memory_space<vmem>>, vector<2x32xf32>
    tpu.vector_store %arg10[%c0_33, %c0_34], %74 {strides = array<i32>} : memref<2x32xf32, #tpu.memory_space<vmem>>, vector<2x32xf32>,
    %79 = arith.truncf %76 : vector<2x32xf32> to vector<2x32xbf16>
    %c7_35 = arith.constant 7 : index
    %c0_36 = arith.constant 0 : index
    %c0_37 = arith.constant 0 : index
    %80 = vector.load %arg6[%c7_35, %c0_36, %c0_37] : memref<8x2x32xbf16, #tpu.memory_space<vmem>>, vector<1x2x32xbf16>
    %81 = vector.shape_cast %80 : vector<1x2x32xbf16> to vector<2x32xbf16>
    %82 = vector.shape_cast %79 : vector<2x32xbf16> to vector<1x2x32xbf16>
    tpu.vector_store %arg6[%c7_35, %c0_36, %c0_37], %82 {strides = array<i32>} : memref<8x2x32xbf16, #tpu.memory_space<vmem>>, vector<1x2x32xbf16>,
    %c1 = arith.constant 1 : index
    %c0_38 = arith.constant 0 : index
    %c0_39 = arith.constant 0 : index
    %83 = vector.load %arg1[%c1, %c0_38, %c0_39] : memref<8x2x128xbf16, #tpu.memory_space<vmem>>, vector<1x2x128xbf16>
    %84 = vector.shape_cast %83 : vector<1x2x128xbf16> to vector<2x128xbf16>
    %c0_40 = arith.constant 0 : index
    %c0_41 = arith.constant 0 : index
    %85 = vector.load %arg7[%c0_40, %c0_41] : memref<2x32xf32, #tpu.memory_space<vmem>>, vector<2x32xf32>
    %c0_42 = arith.constant 0 : index
    %c0_43 = arith.constant 0 : index
    %86 = vector.load %arg8[%c0_42, %c0_43] : memref<2x32xf32, #tpu.memory_space<vmem>>, vector<2x32xf32>
    %87 = arith.extf %84 : vector<2x128xbf16> to vector<2x128xf32>
    %88 = arith.truncf %85 : vector<2x32xf32> to vector<2x32xbf16>
    %c0_44 = arith.constant 0 : index
    %c0_45 = arith.constant 0 : index
    %89 = vector.load %arg3[%c0_44, %c0_45] : memref<32x128xbf16, #tpu.memory_space<vmem>>, vector<32x128xbf16>
    %cst_46 = arith.constant dense<0.000000e+00> : vector<2x128xf32>
    %90 = tpu.matmul %88, %89, %cst_46 {dimension_numbers = #tpu.dot_dimension_numbers<[1], [0], [0], [1], [0, 0, 1, 1], [], []>} : vector<2x32xbf16>, vector<32x128xbf16>, vector<2x128xf32> -> vector<2x128xf32>
    %91 = arith.addf %87, %90 : vector<2x128xf32>
    %92 = vector.extract_strided_slice %91 {offsets = [0, 0], sizes = [2, 32], strides = [1, 1]} : vector<2x128xf32> to vector<2x32xf32>
    %93 = arith.negf %92 : vector<2x32xf32>
    %94 = math.exp %93 : vector<2x32xf32>
    %cst_47 = arith.constant 1.000000e+00 : f32
    %95 = vector.broadcast %cst_47 : f32 to vector<2x32xf32>
    %96 = arith.addf %95, %94 : vector<2x32xf32>
    %97 = arith.divf %95, %96 : vector<2x32xf32>
    %98 = vector.extract_strided_slice %91 {offsets = [0, 32], sizes = [2, 32], strides = [1, 1]} : vector<2x128xf32> to vector<2x32xf32>
    %99 = arith.negf %98 : vector<2x32xf32>
    %100 = math.exp %99 : vector<2x32xf32>
    %cst_48 = arith.constant 1.000000e+00 : f32
    %101 = vector.broadcast %cst_48 : f32 to vector<2x32xf32>
    %102 = arith.addf %101, %100 : vector<2x32xf32>
    %103 = arith.divf %101, %102 : vector<2x32xf32>
    %104 = vector.extract_strided_slice %91 {offsets = [0, 64], sizes = [2, 32], strides = [1, 1]} : vector<2x128xf32> to vector<2x32xf32>
    %105 = math.tanh %104 : vector<2x32xf32>
    %106 = vector.extract_strided_slice %91 {offsets = [0, 96], sizes = [2, 32], strides = [1, 1]} : vector<2x128xf32> to vector<2x32xf32>
    %107 = arith.negf %106 : vector<2x32xf32>
    %108 = math.exp %107 : vector<2x32xf32>
    %cst_49 = arith.constant 1.000000e+00 : f32
    %109 = vector.broadcast %cst_49 : f32 to vector<2x32xf32>
    %110 = arith.addf %109, %108 : vector<2x32xf32>
    %111 = arith.divf %109, %110 : vector<2x32xf32>
    %112 = arith.mulf %103, %86 : vector<2x32xf32>
    %113 = arith.mulf %97, %105 : vector<2x32xf32>
    %114 = arith.addf %112, %113 : vector<2x32xf32>
    %115 = math.tanh %114 : vector<2x32xf32>
    %116 = arith.mulf %111, %115 : vector<2x32xf32>
    %c0_50 = arith.constant 0 : index
    %c0_51 = arith.constant 0 : index
    %117 = vector.load %arg7[%c0_50, %c0_51] : memref<2x32xf32, #tpu.memory_space<vmem>>, vector<2x32xf32>
    tpu.vector_store %arg7[%c0_50, %c0_51], %116 {strides = array<i32>} : memref<2x32xf32, #tpu.memory_space<vmem>>, vector<2x32xf32>,
    %c0_52 = arith.constant 0 : index
    %c0_53 = arith.constant 0 : index
    %118 = vector.load %arg8[%c0_52, %c0_53] : memref<2x32xf32, #tpu.memory_space<vmem>>, vector<2x32xf32>
    tpu.vector_store %arg8[%c0_52, %c0_53], %114 {strides = array<i32>} : memref<2x32xf32, #tpu.memory_space<vmem>>, vector<2x32xf32>,
    %119 = arith.truncf %116 : vector<2x32xf32> to vector<2x32xbf16>
    %c1_54 = arith.constant 1 : index
    %c0_55 = arith.constant 0 : index
    %c0_56 = arith.constant 0 : index
    %120 = vector.load %arg5[%c1_54, %c0_55, %c0_56] : memref<8x2x32xbf16, #tpu.memory_space<vmem>>, vector<1x2x32xbf16>
    %121 = vector.shape_cast %120 : vector<1x2x32xbf16> to vector<2x32xbf16>
    %122 = vector.shape_cast %119 : vector<2x32xbf16> to vector<1x2x32xbf16>
    tpu.vector_store %arg5[%c1_54, %c0_55, %c0_56], %122 {strides = array<i32>} : memref<8x2x32xbf16, #tpu.memory_space<vmem>>, vector<1x2x32xbf16>,
    %c6 = arith.constant 6 : index
    %c0_57 = arith.constant 0 : index
    %c0_58 = arith.constant 0 : index
    %123 = vector.load %arg2[%c6, %c0_57, %c0_58] : memref<8x2x128xbf16, #tpu.memory_space<vmem>>, vector<1x2x128xbf16>
    %124 = vector.shape_cast %123 : vector<1x2x128xbf16> to vector<2x128xbf16>
    %c0_59 = arith.constant 0 : index
    %c0_60 = arith.constant 0 : index
    %125 = vector.load %arg9[%c0_59, %c0_60] : memref<2x32xf32, #tpu.memory_space<vmem>>, vector<2x32xf32>
    %c0_61 = arith.constant 0 : index
    %c0_62 = arith.constant 0 : index
    %126 = vector.load %arg10[%c0_61, %c0_62] : memref<2x32xf32, #tpu.memory_space<vmem>>, vector<2x32xf32>
    %127 = arith.extf %124 : vector<2x128xbf16> to vector<2x128xf32>
    %128 = arith.truncf %125 : vector<2x32xf32> to vector<2x32xbf16>
    %c0_63 = arith.constant 0 : index
    %c0_64 = arith.constant 0 : index
    %129 = vector.load %arg4[%c0_63, %c0_64] : memref<32x128xbf16, #tpu.memory_space<vmem>>, vector<32x128xbf16>
    %cst_65 = arith.constant dense<0.000000e+00> : vector<2x128xf32>
    %130 = tpu.matmul %128, %129, %cst_65 {dimension_numbers = #tpu.dot_dimension_numbers<[1], [0], [0], [1], [0, 0, 1, 1], [], []>} : vector<2x32xbf16>, vector<32x128xbf16>, vector<2x128xf32> -> vector<2x128xf32>
    %131 = arith.addf %127, %130 : vector<2x128xf32>
    %132 = vector.extract_strided_slice %131 {offsets = [0, 0], sizes = [2, 32], strides = [1, 1]} : vector<2x128xf32> to vector<2x32xf32>
    %133 = arith.negf %132 : vector<2x32xf32>
    %134 = math.exp %133 : vector<2x32xf32>
    %cst_66 = arith.constant 1.000000e+00 : f32
    %135 = vector.broadcast %cst_66 : f32 to vector<2x32xf32>
    %136 = arith.addf %135, %134 : vector<2x32xf32>
    %137 = arith.divf %135, %136 : vector<2x32xf32>
    %138 = vector.extract_strided_slice %131 {offsets = [0, 32], sizes = [2, 32], strides = [1, 1]} : vector<2x128xf32> to vector<2x32xf32>
    %139 = arith.negf %138 : vector<2x32xf32>
    %140 = math.exp %139 : vector<2x32xf32>
    %cst_67 = arith.constant 1.000000e+00 : f32
    %141 = vector.broadcast %cst_67 : f32 to vector<2x32xf32>
    %142 = arith.addf %141, %140 : vector<2x32xf32>
    %143 = arith.divf %141, %142 : vector<2x32xf32>
    %144 = vector.extract_strided_slice %131 {offsets = [0, 64], sizes = [2, 32], strides = [1, 1]} : vector<2x128xf32> to vector<2x32xf32>
    %145 = math.tanh %144 : vector<2x32xf32>
    %146 = vector.extract_strided_slice %131 {offsets = [0, 96], sizes = [2, 32], strides = [1, 1]} : vector<2x128xf32> to vector<2x32xf32>
    %147 = arith.negf %146 : vector<2x32xf32>
    %148 = math.exp %147 : vector<2x32xf32>
    %cst_68 = arith.constant 1.000000e+00 : f32
    %149 = vector.broadcast %cst_68 : f32 to vector<2x32xf32>
    %150 = arith.addf %149, %148 : vector<2x32xf32>
    %151 = arith.divf %149, %150 : vector<2x32xf32>
    %152 = arith.mulf %143, %126 : vector<2x32xf32>
    %153 = arith.mulf %137, %145 : vector<2x32xf32>
    %154 = arith.addf %152, %153 : vector<2x32xf32>
    %155 = math.tanh %154 : vector<2x32xf32>
    %156 = arith.mulf %151, %155 : vector<2x32xf32>
    %c0_69 = arith.constant 0 : index
    %c0_70 = arith.constant 0 : index
    %157 = vector.load %arg9[%c0_69, %c0_70] : memref<2x32xf32, #tpu.memory_space<vmem>>, vector<2x32xf32>
    tpu.vector_store %arg9[%c0_69, %c0_70], %156 {strides = array<i32>} : memref<2x32xf32, #tpu.memory_space<vmem>>, vector<2x32xf32>,
    %c0_71 = arith.constant 0 : index
    %c0_72 = arith.constant 0 : index
    %158 = vector.load %arg10[%c0_71, %c0_72] : memref<2x32xf32, #tpu.memory_space<vmem>>, vector<2x32xf32>
    tpu.vector_store %arg10[%c0_71, %c0_72], %154 {strides = array<i32>} : memref<2x32xf32, #tpu.memory_space<vmem>>, vector<2x32xf32>,
    %159 = arith.truncf %156 : vector<2x32xf32> to vector<2x32xbf16>
    %c6_73 = arith.constant 6 : index
    %c0_74 = arith.constant 0 : index
    %c0_75 = arith.constant 0 : index
    %160 = vector.load %arg6[%c6_73, %c0_74, %c0_75] : memref<8x2x32xbf16, #tpu.memory_space<vmem>>, vector<1x2x32xbf16>
    %161 = vector.shape_cast %160 : vector<1x2x32xbf16> to vector<2x32xbf16>
    %162 = vector.shape_cast %159 : vector<2x32xbf16> to vector<1x2x32xbf16>
    tpu.vector_store %arg6[%c6_73, %c0_74, %c0_75], %162 {strides = array<i32>} : memref<8x2x32xbf16, #tpu.memory_space<vmem>>, vector<1x2x32xbf16>,
    %c2 = arith.constant 2 : index
    %c0_76 = arith.constant 0 : index
    %c0_77 = arith.constant 0 : index
    %163 = vector.load %arg1[%c2, %c0_76, %c0_77] : memref<8x2x128xbf16, #tpu.memory_space<vmem>>, vector<1x2x128xbf16>
    %164 = vector.shape_cast %163 : vector<1x2x128xbf16> to vector<2x128xbf16>
    %c0_78 = arith.constant 0 : index
    %c0_79 = arith.constant 0 : index
    %165 = vector.load %arg7[%c0_78, %c0_79] : memref<2x32xf32, #tpu.memory_space<vmem>>, vector<2x32xf32>
    %c0_80 = arith.constant 0 : index
    %c0_81 = arith.constant 0 : index
    %166 = vector.load %arg8[%c0_80, %c0_81] : memref<2x32xf32, #tpu.memory_space<vmem>>, vector<2x32xf32>
    %167 = arith.extf %164 : vector<2x128xbf16> to vector<2x128xf32>
    %168 = arith.truncf %165 : vector<2x32xf32> to vector<2x32xbf16>
    %c0_82 = arith.constant 0 : index
    %c0_83 = arith.constant 0 : index
    %169 = vector.load %arg3[%c0_82, %c0_83] : memref<32x128xbf16, #tpu.memory_space<vmem>>, vector<32x128xbf16>
    %cst_84 = arith.constant dense<0.000000e+00> : vector<2x128xf32>
    %170 = tpu.matmul %168, %169, %cst_84 {dimension_numbers = #tpu.dot_dimension_numbers<[1], [0], [0], [1], [0, 0, 1, 1], [], []>} : vector<2x32xbf16>, vector<32x128xbf16>, vector<2x128xf32> -> vector<2x128xf32>
    %171 = arith.addf %167, %170 : vector<2x128xf32>
    %172 = vector.extract_strided_slice %171 {offsets = [0, 0], sizes = [2, 32], strides = [1, 1]} : vector<2x128xf32> to vector<2x32xf32>
    %173 = arith.negf %172 : vector<2x32xf32>
    %174 = math.exp %173 : vector<2x32xf32>
    %cst_85 = arith.constant 1.000000e+00 : f32
    %175 = vector.broadcast %cst_85 : f32 to vector<2x32xf32>
    %176 = arith.addf %175, %174 : vector<2x32xf32>
    %177 = arith.divf %175, %176 : vector<2x32xf32>
    %178 = vector.extract_strided_slice %171 {offsets = [0, 32], sizes = [2, 32], strides = [1, 1]} : vector<2x128xf32> to vector<2x32xf32>
    %179 = arith.negf %178 : vector<2x32xf32>
    %180 = math.exp %179 : vector<2x32xf32>
    %cst_86 = arith.constant 1.000000e+00 : f32
    %181 = vector.broadcast %cst_86 : f32 to vector<2x32xf32>
    %182 = arith.addf %181, %180 : vector<2x32xf32>
    %183 = arith.divf %181, %182 : vector<2x32xf32>
    %184 = vector.extract_strided_slice %171 {offsets = [0, 64], sizes = [2, 32], strides = [1, 1]} : vector<2x128xf32> to vector<2x32xf32>
    %185 = math.tanh %184 : vector<2x32xf32>
    %186 = vector.extract_strided_slice %171 {offsets = [0, 96], sizes = [2, 32], strides = [1, 1]} : vector<2x128xf32> to vector<2x32xf32>
    %187 = arith.negf %186 : vector<2x32xf32>
    %188 = math.exp %187 : vector<2x32xf32>
    %cst_87 = arith.constant 1.000000e+00 : f32
    %189 = vector.broadcast %cst_87 : f32 to vector<2x32xf32>
    %190 = arith.addf %189, %188 : vector<2x32xf32>
    %191 = arith.divf %189, %190 : vector<2x32xf32>
    %192 = arith.mulf %183, %166 : vector<2x32xf32>
    %193 = arith.mulf %177, %185 : vector<2x32xf32>
    %194 = arith.addf %192, %193 : vector<2x32xf32>
    %195 = math.tanh %194 : vector<2x32xf32>
    %196 = arith.mulf %191, %195 : vector<2x32xf32>
    %c0_88 = arith.constant 0 : index
    %c0_89 = arith.constant 0 : index
    %197 = vector.load %arg7[%c0_88, %c0_89] : memref<2x32xf32, #tpu.memory_space<vmem>>, vector<2x32xf32>
    tpu.vector_store %arg7[%c0_88, %c0_89], %196 {strides = array<i32>} : memref<2x32xf32, #tpu.memory_space<vmem>>, vector<2x32xf32>,
    %c0_90 = arith.constant 0 : index
    %c0_91 = arith.constant 0 : index
    %198 = vector.load %arg8[%c0_90, %c0_91] : memref<2x32xf32, #tpu.memory_space<vmem>>, vector<2x32xf32>
    tpu.vector_store %arg8[%c0_90, %c0_91], %194 {strides = array<i32>} : memref<2x32xf32, #tpu.memory_space<vmem>>, vector<2x32xf32>,
    %199 = arith.truncf %196 : vector<2x32xf32> to vector<2x32xbf16>
    %c2_92 = arith.constant 2 : index
    %c0_93 = arith.constant 0 : index
    %c0_94 = arith.constant 0 : index
    %200 = vector.load %arg5[%c2_92, %c0_93, %c0_94] : memref<8x2x32xbf16, #tpu.memory_space<vmem>>, vector<1x2x32xbf16>
    %201 = vector.shape_cast %200 : vector<1x2x32xbf16> to vector<2x32xbf16>
    %202 = vector.shape_cast %199 : vector<2x32xbf16> to vector<1x2x32xbf16>
    tpu.vector_store %arg5[%c2_92, %c0_93, %c0_94], %202 {strides = array<i32>} : memref<8x2x32xbf16, #tpu.memory_space<vmem>>, vector<1x2x32xbf16>,
    %c5 = arith.constant 5 : index
    %c0_95 = arith.constant 0 : index
    %c0_96 = arith.constant 0 : index
    %203 = vector.load %arg2[%c5, %c0_95, %c0_96] : memref<8x2x128xbf16, #tpu.memory_space<vmem>>, vector<1x2x128xbf16>
    %204 = vector.shape_cast %203 : vector<1x2x128xbf16> to vector<2x128xbf16>
    %c0_97 = arith.constant 0 : index
    %c0_98 = arith.constant 0 : index
    %205 = vector.load %arg9[%c0_97, %c0_98] : memref<2x32xf32, #tpu.memory_space<vmem>>, vector<2x32xf32>
    %c0_99 = arith.constant 0 : index
    %c0_100 = arith.constant 0 : index
    %206 = vector.load %arg10[%c0_99, %c0_100] : memref<2x32xf32, #tpu.memory_space<vmem>>, vector<2x32xf32>
    %207 = arith.extf %204 : vector<2x128xbf16> to vector<2x128xf32>
    %208 = arith.truncf %205 : vector<2x32xf32> to vector<2x32xbf16>
    %c0_101 = arith.constant 0 : index
    %c0_102 = arith.constant 0 : index
    %209 = vector.load %arg4[%c0_101, %c0_102] : memref<32x128xbf16, #tpu.memory_space<vmem>>, vector<32x128xbf16>
    %cst_103 = arith.constant dense<0.000000e+00> : vector<2x128xf32>
    %210 = tpu.matmul %208, %209, %cst_103 {dimension_numbers = #tpu.dot_dimension_numbers<[1], [0], [0], [1], [0, 0, 1, 1], [], []>} : vector<2x32xbf16>, vector<32x128xbf16>, vector<2x128xf32> -> vector<2x128xf32>
    %211 = arith.addf %207, %210 : vector<2x128xf32>
    %212 = vector.extract_strided_slice %211 {offsets = [0, 0], sizes = [2, 32], strides = [1, 1]} : vector<2x128xf32> to vector<2x32xf32>
    %213 = arith.negf %212 : vector<2x32xf32>
    %214 = math.exp %213 : vector<2x32xf32>
    %cst_104 = arith.constant 1.000000e+00 : f32
    %215 = vector.broadcast %cst_104 : f32 to vector<2x32xf32>
    %216 = arith.addf %215, %214 : vector<2x32xf32>
    %217 = arith.divf %215, %216 : vector<2x32xf32>
    %218 = vector.extract_strided_slice %211 {offsets = [0, 32], sizes = [2, 32], strides = [1, 1]} : vector<2x128xf32> to vector<2x32xf32>
    %219 = arith.negf %218 : vector<2x32xf32>
    %220 = math.exp %219 : vector<2x32xf32>
    %cst_105 = arith.constant 1.000000e+00 : f32
    %221 = vector.broadcast %cst_105 : f32 to vector<2x32xf32>
    %222 = arith.addf %221, %220 : vector<2x32xf32>
    %223 = arith.divf %221, %222 : vector<2x32xf32>
    %224 = vector.extract_strided_slice %211 {offsets = [0, 64], sizes = [2, 32], strides = [1, 1]} : vector<2x128xf32> to vector<2x32xf32>
    %225 = math.tanh %224 : vector<2x32xf32>
    %226 = vector.extract_strided_slice %211 {offsets = [0, 96], sizes = [2, 32], strides = [1, 1]} : vector<2x128xf32> to vector<2x32xf32>
    %227 = arith.negf %226 : vector<2x32xf32>
    %228 = math.exp %227 : vector<2x32xf32>
    %cst_106 = arith.constant 1.000000e+00 : f32
    %229 = vector.broadcast %cst_106 : f32 to vector<2x32xf32>
    %230 = arith.addf %229, %228 : vector<2x32xf32>
    %231 = arith.divf %229, %230 : vector<2x32xf32>
    %232 = arith.mulf %223, %206 : vector<2x32xf32>
    %233 = arith.mulf %217, %225 : vector<2x32xf32>
    %234 = arith.addf %232, %233 : vector<2x32xf32>
    %235 = math.tanh %234 : vector<2x32xf32>
    %236 = arith.mulf %231, %235 : vector<2x32xf32>
    %c0_107 = arith.constant 0 : index
    %c0_108 = arith.constant 0 : index
    %237 = vector.load %arg9[%c0_107, %c0_108] : memref<2x32xf32, #tpu.memory_space<vmem>>, vector<2x32xf32>
    tpu.vector_store %arg9[%c0_107, %c0_108], %236 {strides = array<i32>} : memref<2x32xf32, #tpu.memory_space<vmem>>, vector<2x32xf32>,
    %c0_109 = arith.constant 0 : index
    %c0_110 = arith.constant 0 : index
    %238 = vector.load %arg10[%c0_109, %c0_110] : memref<2x32xf32, #tpu.memory_space<vmem>>, vector<2x32xf32>
    tpu.vector_store %arg10[%c0_109, %c0_110], %234 {strides = array<i32>} : memref<2x32xf32, #tpu.memory_space<vmem>>, vector<2x32xf32>,
    %239 = arith.truncf %236 : vector<2x32xf32> to vector<2x32xbf16>
    %c5_111 = arith.constant 5 : index
    %c0_112 = arith.constant 0 : index
    %c0_113 = arith.constant 0 : index
    %240 = vector.load %arg6[%c5_111, %c0_112, %c0_113] : memref<8x2x32xbf16, #tpu.memory_space<vmem>>, vector<1x2x32xbf16>
    %241 = vector.shape_cast %240 : vector<1x2x32xbf16> to vector<2x32xbf16>
    %242 = vector.shape_cast %239 : vector<2x32xbf16> to vector<1x2x32xbf16>
    tpu.vector_store %arg6[%c5_111, %c0_112, %c0_113], %242 {strides = array<i32>} : memref<8x2x32xbf16, #tpu.memory_space<vmem>>, vector<1x2x32xbf16>,
    %c3 = arith.constant 3 : index
    %c0_114 = arith.constant 0 : index
    %c0_115 = arith.constant 0 : index
    %243 = vector.load %arg1[%c3, %c0_114, %c0_115] : memref<8x2x128xbf16, #tpu.memory_space<vmem>>, vector<1x2x128xbf16>
    %244 = vector.shape_cast %243 : vector<1x2x128xbf16> to vector<2x128xbf16>
    %c0_116 = arith.constant 0 : index
    %c0_117 = arith.constant 0 : index
    %245 = vector.load %arg7[%c0_116, %c0_117] : memref<2x32xf32, #tpu.memory_space<vmem>>, vector<2x32xf32>
    %c0_118 = arith.constant 0 : index
    %c0_119 = arith.constant 0 : index
    %246 = vector.load %arg8[%c0_118, %c0_119] : memref<2x32xf32, #tpu.memory_space<vmem>>, vector<2x32xf32>
    %247 = arith.extf %244 : vector<2x128xbf16> to vector<2x128xf32>
    %248 = arith.truncf %245 : vector<2x32xf32> to vector<2x32xbf16>
    %c0_120 = arith.constant 0 : index
    %c0_121 = arith.constant 0 : index
    %249 = vector.load %arg3[%c0_120, %c0_121] : memref<32x128xbf16, #tpu.memory_space<vmem>>, vector<32x128xbf16>
    %cst_122 = arith.constant dense<0.000000e+00> : vector<2x128xf32>
    %250 = tpu.matmul %248, %249, %cst_122 {dimension_numbers = #tpu.dot_dimension_numbers<[1], [0], [0], [1], [0, 0, 1, 1], [], []>} : vector<2x32xbf16>, vector<32x128xbf16>, vector<2x128xf32> -> vector<2x128xf32>
    %251 = arith.addf %247, %250 : vector<2x128xf32>
    %252 = vector.extract_strided_slice %251 {offsets = [0, 0], sizes = [2, 32], strides = [1, 1]} : vector<2x128xf32> to vector<2x32xf32>
    %253 = arith.negf %252 : vector<2x32xf32>
    %254 = math.exp %253 : vector<2x32xf32>
    %cst_123 = arith.constant 1.000000e+00 : f32
    %255 = vector.broadcast %cst_123 : f32 to vector<2x32xf32>
    %256 = arith.addf %255, %254 : vector<2x32xf32>
    %257 = arith.divf %255, %256 : vector<2x32xf32>
    %258 = vector.extract_strided_slice %251 {offsets = [0, 32], sizes = [2, 32], strides = [1, 1]} : vector<2x128xf32> to vector<2x32xf32>
    %259 = arith.negf %258 : vector<2x32xf32>
    %260 = math.exp %259 : vector<2x32xf32>
    %cst_124 = arith.constant 1.000000e+00 : f32
    %261 = vector.broadcast %cst_124 : f32 to vector<2x32xf32>
    %262 = arith.addf %261, %260 : vector<2x32xf32>
    %263 = arith.divf %261, %262 : vector<2x32xf32>
    %264 = vector.extract_strided_slice %251 {offsets = [0, 64], sizes = [2, 32], strides = [1, 1]} : vector<2x128xf32> to vector<2x32xf32>
    %265 = math.tanh %264 : vector<2x32xf32>
    %266 = vector.extract_strided_slice %251 {offsets = [0, 96], sizes = [2, 32], strides = [1, 1]} : vector<2x128xf32> to vector<2x32xf32>
    %267 = arith.negf %266 : vector<2x32xf32>
    %268 = math.exp %267 : vector<2x32xf32>
    %cst_125 = arith.constant 1.000000e+00 : f32
    %269 = vector.broadcast %cst_125 : f32 to vector<2x32xf32>
    %270 = arith.addf %269, %268 : vector<2x32xf32>
    %271 = arith.divf %269, %270 : vector<2x32xf32>
    %272 = arith.mulf %263, %246 : vector<2x32xf32>
    %273 = arith.mulf %257, %265 : vector<2x32xf32>
    %274 = arith.addf %272, %273 : vector<2x32xf32>
    %275 = math.tanh %274 : vector<2x32xf32>
    %276 = arith.mulf %271, %275 : vector<2x32xf32>
    %c0_126 = arith.constant 0 : index
    %c0_127 = arith.constant 0 : index
    %277 = vector.load %arg7[%c0_126, %c0_127] : memref<2x32xf32, #tpu.memory_space<vmem>>, vector<2x32xf32>
    tpu.vector_store %arg7[%c0_126, %c0_127], %276 {strides = array<i32>} : memref<2x32xf32, #tpu.memory_space<vmem>>, vector<2x32xf32>,
    %c0_128 = arith.constant 0 : index
    %c0_129 = arith.constant 0 : index
    %278 = vector.load %arg8[%c0_128, %c0_129] : memref<2x32xf32, #tpu.memory_space<vmem>>, vector<2x32xf32>
    tpu.vector_store %arg8[%c0_128, %c0_129], %274 {strides = array<i32>} : memref<2x32xf32, #tpu.memory_space<vmem>>, vector<2x32xf32>,
    %279 = arith.truncf %276 : vector<2x32xf32> to vector<2x32xbf16>
    %c3_130 = arith.constant 3 : index
    %c0_131 = arith.constant 0 : index
    %c0_132 = arith.constant 0 : index
    %280 = vector.load %arg5[%c3_130, %c0_131, %c0_132] : memref<8x2x32xbf16, #tpu.memory_space<vmem>>, vector<1x2x32xbf16>
    %281 = vector.shape_cast %280 : vector<1x2x32xbf16> to vector<2x32xbf16>
    %282 = vector.shape_cast %279 : vector<2x32xbf16> to vector<1x2x32xbf16>
    tpu.vector_store %arg5[%c3_130, %c0_131, %c0_132], %282 {strides = array<i32>} : memref<8x2x32xbf16, #tpu.memory_space<vmem>>, vector<1x2x32xbf16>,
    %c4 = arith.constant 4 : index
    %c0_133 = arith.constant 0 : index
    %c0_134 = arith.constant 0 : index
    %283 = vector.load %arg2[%c4, %c0_133, %c0_134] : memref<8x2x128xbf16, #tpu.memory_space<vmem>>, vector<1x2x128xbf16>
    %284 = vector.shape_cast %283 : vector<1x2x128xbf16> to vector<2x128xbf16>
    %c0_135 = arith.constant 0 : index
    %c0_136 = arith.constant 0 : index
    %285 = vector.load %arg9[%c0_135, %c0_136] : memref<2x32xf32, #tpu.memory_space<vmem>>, vector<2x32xf32>
    %c0_137 = arith.constant 0 : index
    %c0_138 = arith.constant 0 : index
    %286 = vector.load %arg10[%c0_137, %c0_138] : memref<2x32xf32, #tpu.memory_space<vmem>>, vector<2x32xf32>
    %287 = arith.extf %284 : vector<2x128xbf16> to vector<2x128xf32>
    %288 = arith.truncf %285 : vector<2x32xf32> to vector<2x32xbf16>
    %c0_139 = arith.constant 0 : index
    %c0_140 = arith.constant 0 : index
    %289 = vector.load %arg4[%c0_139, %c0_140] : memref<32x128xbf16, #tpu.memory_space<vmem>>, vector<32x128xbf16>
    %cst_141 = arith.constant dense<0.000000e+00> : vector<2x128xf32>
    %290 = tpu.matmul %288, %289, %cst_141 {dimension_numbers = #tpu.dot_dimension_numbers<[1], [0], [0], [1], [0, 0, 1, 1], [], []>} : vector<2x32xbf16>, vector<32x128xbf16>, vector<2x128xf32> -> vector<2x128xf32>
    %291 = arith.addf %287, %290 : vector<2x128xf32>
    %292 = vector.extract_strided_slice %291 {offsets = [0, 0], sizes = [2, 32], strides = [1, 1]} : vector<2x128xf32> to vector<2x32xf32>
    %293 = arith.negf %292 : vector<2x32xf32>
    %294 = math.exp %293 : vector<2x32xf32>
    %cst_142 = arith.constant 1.000000e+00 : f32
    %295 = vector.broadcast %cst_142 : f32 to vector<2x32xf32>
    %296 = arith.addf %295, %294 : vector<2x32xf32>
    %297 = arith.divf %295, %296 : vector<2x32xf32>
    %298 = vector.extract_strided_slice %291 {offsets = [0, 32], sizes = [2, 32], strides = [1, 1]} : vector<2x128xf32> to vector<2x32xf32>
    %299 = arith.negf %298 : vector<2x32xf32>
    %300 = math.exp %299 : vector<2x32xf32>
    %cst_143 = arith.constant 1.000000e+00 : f32
    %301 = vector.broadcast %cst_143 : f32 to vector<2x32xf32>
    %302 = arith.addf %301, %300 : vector<2x32xf32>
    %303 = arith.divf %301, %302 : vector<2x32xf32>
    %304 = vector.extract_strided_slice %291 {offsets = [0, 64], sizes = [2, 32], strides = [1, 1]} : vector<2x128xf32> to vector<2x32xf32>
    %305 = math.tanh %304 : vector<2x32xf32>
    %306 = vector.extract_strided_slice %291 {offsets = [0, 96], sizes = [2, 32], strides = [1, 1]} : vector<2x128xf32> to vector<2x32xf32>
    %307 = arith.negf %306 : vector<2x32xf32>
    %308 = math.exp %307 : vector<2x32xf32>
    %cst_144 = arith.constant 1.000000e+00 : f32
    %309 = vector.broadcast %cst_144 : f32 to vector<2x32xf32>
    %310 = arith.addf %309, %308 : vector<2x32xf32>
    %311 = arith.divf %309, %310 : vector<2x32xf32>
    %312 = arith.mulf %303, %286 : vector<2x32xf32>
    %313 = arith.mulf %297, %305 : vector<2x32xf32>
    %314 = arith.addf %312, %313 : vector<2x32xf32>
    %315 = math.tanh %314 : vector<2x32xf32>
    %316 = arith.mulf %311, %315 : vector<2x32xf32>
    %c0_145 = arith.constant 0 : index
    %c0_146 = arith.constant 0 : index
    %317 = vector.load %arg9[%c0_145, %c0_146] : memref<2x32xf32, #tpu.memory_space<vmem>>, vector<2x32xf32>
    tpu.vector_store %arg9[%c0_145, %c0_146], %316 {strides = array<i32>} : memref<2x32xf32, #tpu.memory_space<vmem>>, vector<2x32xf32>,
    %c0_147 = arith.constant 0 : index
    %c0_148 = arith.constant 0 : index
    %318 = vector.load %arg10[%c0_147, %c0_148] : memref<2x32xf32, #tpu.memory_space<vmem>>, vector<2x32xf32>
    tpu.vector_store %arg10[%c0_147, %c0_148], %314 {strides = array<i32>} : memref<2x32xf32, #tpu.memory_space<vmem>>, vector<2x32xf32>,
    %319 = arith.truncf %316 : vector<2x32xf32> to vector<2x32xbf16>
    %c4_149 = arith.constant 4 : index
    %c0_150 = arith.constant 0 : index
    %c0_151 = arith.constant 0 : index
    %320 = vector.load %arg6[%c4_149, %c0_150, %c0_151] : memref<8x2x32xbf16, #tpu.memory_space<vmem>>, vector<1x2x32xbf16>
    %321 = vector.shape_cast %320 : vector<1x2x32xbf16> to vector<2x32xbf16>
    %322 = vector.shape_cast %319 : vector<2x32xbf16> to vector<1x2x32xbf16>
    tpu.vector_store %arg6[%c4_149, %c0_150, %c0_151], %322 {strides = array<i32>} : memref<8x2x32xbf16, #tpu.memory_space<vmem>>, vector<1x2x32xbf16>,
    %c4_152 = arith.constant 4 : index
    %c0_153 = arith.constant 0 : index
    %c0_154 = arith.constant 0 : index
    %323 = vector.load %arg1[%c4_152, %c0_153, %c0_154] : memref<8x2x128xbf16, #tpu.memory_space<vmem>>, vector<1x2x128xbf16>
    %324 = vector.shape_cast %323 : vector<1x2x128xbf16> to vector<2x128xbf16>
    %c0_155 = arith.constant 0 : index
    %c0_156 = arith.constant 0 : index
    %325 = vector.load %arg7[%c0_155, %c0_156] : memref<2x32xf32, #tpu.memory_space<vmem>>, vector<2x32xf32>
    %c0_157 = arith.constant 0 : index
    %c0_158 = arith.constant 0 : index
    %326 = vector.load %arg8[%c0_157, %c0_158] : memref<2x32xf32, #tpu.memory_space<vmem>>, vector<2x32xf32>
    %327 = arith.extf %324 : vector<2x128xbf16> to vector<2x128xf32>
    %328 = arith.truncf %325 : vector<2x32xf32> to vector<2x32xbf16>
    %c0_159 = arith.constant 0 : index
    %c0_160 = arith.constant 0 : index
    %329 = vector.load %arg3[%c0_159, %c0_160] : memref<32x128xbf16, #tpu.memory_space<vmem>>, vector<32x128xbf16>
    %cst_161 = arith.constant dense<0.000000e+00> : vector<2x128xf32>
    %330 = tpu.matmul %328, %329, %cst_161 {dimension_numbers = #tpu.dot_dimension_numbers<[1], [0], [0], [1], [0, 0, 1, 1], [], []>} : vector<2x32xbf16>, vector<32x128xbf16>, vector<2x128xf32> -> vector<2x128xf32>
    %331 = arith.addf %327, %330 : vector<2x128xf32>
    %332 = vector.extract_strided_slice %331 {offsets = [0, 0], sizes = [2, 32], strides = [1, 1]} : vector<2x128xf32> to vector<2x32xf32>
    %333 = arith.negf %332 : vector<2x32xf32>
    %334 = math.exp %333 : vector<2x32xf32>
    %cst_162 = arith.constant 1.000000e+00 : f32
    %335 = vector.broadcast %cst_162 : f32 to vector<2x32xf32>
    %336 = arith.addf %335, %334 : vector<2x32xf32>
    %337 = arith.divf %335, %336 : vector<2x32xf32>
    %338 = vector.extract_strided_slice %331 {offsets = [0, 32], sizes = [2, 32], strides = [1, 1]} : vector<2x128xf32> to vector<2x32xf32>
    %339 = arith.negf %338 : vector<2x32xf32>
    %340 = math.exp %339 : vector<2x32xf32>
    %cst_163 = arith.constant 1.000000e+00 : f32
    %341 = vector.broadcast %cst_163 : f32 to vector<2x32xf32>
    %342 = arith.addf %341, %340 : vector<2x32xf32>
    %343 = arith.divf %341, %342 : vector<2x32xf32>
    %344 = vector.extract_strided_slice %331 {offsets = [0, 64], sizes = [2, 32], strides = [1, 1]} : vector<2x128xf32> to vector<2x32xf32>
    %345 = math.tanh %344 : vector<2x32xf32>
    %346 = vector.extract_strided_slice %331 {offsets = [0, 96], sizes = [2, 32], strides = [1, 1]} : vector<2x128xf32> to vector<2x32xf32>
    %347 = arith.negf %346 : vector<2x32xf32>
    %348 = math.exp %347 : vector<2x32xf32>
    %cst_164 = arith.constant 1.000000e+00 : f32
    %349 = vector.broadcast %cst_164 : f32 to vector<2x32xf32>
    %350 = arith.addf %349, %348 : vector<2x32xf32>
    %351 = arith.divf %349, %350 : vector<2x32xf32>
    %352 = arith.mulf %343, %326 : vector<2x32xf32>
    %353 = arith.mulf %337, %345 : vector<2x32xf32>
    %354 = arith.addf %352, %353 : vector<2x32xf32>
    %355 = math.tanh %354 : vector<2x32xf32>
    %356 = arith.mulf %351, %355 : vector<2x32xf32>
    %c0_165 = arith.constant 0 : index
    %c0_166 = arith.constant 0 : index
    %357 = vector.load %arg7[%c0_165, %c0_166] : memref<2x32xf32, #tpu.memory_space<vmem>>, vector<2x32xf32>
    tpu.vector_store %arg7[%c0_165, %c0_166], %356 {strides = array<i32>} : memref<2x32xf32, #tpu.memory_space<vmem>>, vector<2x32xf32>,
    %c0_167 = arith.constant 0 : index
    %c0_168 = arith.constant 0 : index
    %358 = vector.load %arg8[%c0_167, %c0_168] : memref<2x32xf32, #tpu.memory_space<vmem>>, vector<2x32xf32>
    tpu.vector_store %arg8[%c0_167, %c0_168], %354 {strides = array<i32>} : memref<2x32xf32, #tpu.memory_space<vmem>>, vector<2x32xf32>,
    %359 = arith.truncf %356 : vector<2x32xf32> to vector<2x32xbf16>
    %c4_169 = arith.constant 4 : index
    %c0_170 = arith.constant 0 : index
    %c0_171 = arith.constant 0 : index
    %360 = vector.load %arg5[%c4_169, %c0_170, %c0_171] : memref<8x2x32xbf16, #tpu.memory_space<vmem>>, vector<1x2x32xbf16>
    %361 = vector.shape_cast %360 : vector<1x2x32xbf16> to vector<2x32xbf16>
    %362 = vector.shape_cast %359 : vector<2x32xbf16> to vector<1x2x32xbf16>
    tpu.vector_store %arg5[%c4_169, %c0_170, %c0_171], %362 {strides = array<i32>} : memref<8x2x32xbf16, #tpu.memory_space<vmem>>, vector<1x2x32xbf16>,
    %c3_172 = arith.constant 3 : index
    %c0_173 = arith.constant 0 : index
    %c0_174 = arith.constant 0 : index
    %363 = vector.load %arg2[%c3_172, %c0_173, %c0_174] : memref<8x2x128xbf16, #tpu.memory_space<vmem>>, vector<1x2x128xbf16>
    %364 = vector.shape_cast %363 : vector<1x2x128xbf16> to vector<2x128xbf16>
    %c0_175 = arith.constant 0 : index
    %c0_176 = arith.constant 0 : index
    %365 = vector.load %arg9[%c0_175, %c0_176] : memref<2x32xf32, #tpu.memory_space<vmem>>, vector<2x32xf32>
    %c0_177 = arith.constant 0 : index
    %c0_178 = arith.constant 0 : index
    %366 = vector.load %arg10[%c0_177, %c0_178] : memref<2x32xf32, #tpu.memory_space<vmem>>, vector<2x32xf32>
    %367 = arith.extf %364 : vector<2x128xbf16> to vector<2x128xf32>
    %368 = arith.truncf %365 : vector<2x32xf32> to vector<2x32xbf16>
    %c0_179 = arith.constant 0 : index
    %c0_180 = arith.constant 0 : index
    %369 = vector.load %arg4[%c0_179, %c0_180] : memref<32x128xbf16, #tpu.memory_space<vmem>>, vector<32x128xbf16>
    %cst_181 = arith.constant dense<0.000000e+00> : vector<2x128xf32>
    %370 = tpu.matmul %368, %369, %cst_181 {dimension_numbers = #tpu.dot_dimension_numbers<[1], [0], [0], [1], [0, 0, 1, 1], [], []>} : vector<2x32xbf16>, vector<32x128xbf16>, vector<2x128xf32> -> vector<2x128xf32>
    %371 = arith.addf %367, %370 : vector<2x128xf32>
    %372 = vector.extract_strided_slice %371 {offsets = [0, 0], sizes = [2, 32], strides = [1, 1]} : vector<2x128xf32> to vector<2x32xf32>
    %373 = arith.negf %372 : vector<2x32xf32>
    %374 = math.exp %373 : vector<2x32xf32>
    %cst_182 = arith.constant 1.000000e+00 : f32
    %375 = vector.broadcast %cst_182 : f32 to vector<2x32xf32>
    %376 = arith.addf %375, %374 : vector<2x32xf32>
    %377 = arith.divf %375, %376 : vector<2x32xf32>
    %378 = vector.extract_strided_slice %371 {offsets = [0, 32], sizes = [2, 32], strides = [1, 1]} : vector<2x128xf32> to vector<2x32xf32>
    %379 = arith.negf %378 : vector<2x32xf32>
    %380 = math.exp %379 : vector<2x32xf32>
    %cst_183 = arith.constant 1.000000e+00 : f32
    %381 = vector.broadcast %cst_183 : f32 to vector<2x32xf32>
    %382 = arith.addf %381, %380 : vector<2x32xf32>
    %383 = arith.divf %381, %382 : vector<2x32xf32>
    %384 = vector.extract_strided_slice %371 {offsets = [0, 64], sizes = [2, 32], strides = [1, 1]} : vector<2x128xf32> to vector<2x32xf32>
    %385 = math.tanh %384 : vector<2x32xf32>
    %386 = vector.extract_strided_slice %371 {offsets = [0, 96], sizes = [2, 32], strides = [1, 1]} : vector<2x128xf32> to vector<2x32xf32>
    %387 = arith.negf %386 : vector<2x32xf32>
    %388 = math.exp %387 : vector<2x32xf32>
    %cst_184 = arith.constant 1.000000e+00 : f32
    %389 = vector.broadcast %cst_184 : f32 to vector<2x32xf32>
    %390 = arith.addf %389, %388 : vector<2x32xf32>
    %391 = arith.divf %389, %390 : vector<2x32xf32>
    %392 = arith.mulf %383, %366 : vector<2x32xf32>
    %393 = arith.mulf %377, %385 : vector<2x32xf32>
    %394 = arith.addf %392, %393 : vector<2x32xf32>
    %395 = math.tanh %394 : vector<2x32xf32>
    %396 = arith.mulf %391, %395 : vector<2x32xf32>
    %c0_185 = arith.constant 0 : index
    %c0_186 = arith.constant 0 : index
    %397 = vector.load %arg9[%c0_185, %c0_186] : memref<2x32xf32, #tpu.memory_space<vmem>>, vector<2x32xf32>
    tpu.vector_store %arg9[%c0_185, %c0_186], %396 {strides = array<i32>} : memref<2x32xf32, #tpu.memory_space<vmem>>, vector<2x32xf32>,
    %c0_187 = arith.constant 0 : index
    %c0_188 = arith.constant 0 : index
    %398 = vector.load %arg10[%c0_187, %c0_188] : memref<2x32xf32, #tpu.memory_space<vmem>>, vector<2x32xf32>
    tpu.vector_store %arg10[%c0_187, %c0_188], %394 {strides = array<i32>} : memref<2x32xf32, #tpu.memory_space<vmem>>, vector<2x32xf32>,
    %399 = arith.truncf %396 : vector<2x32xf32> to vector<2x32xbf16>
    %c3_189 = arith.constant 3 : index
    %c0_190 = arith.constant 0 : index
    %c0_191 = arith.constant 0 : index
    %400 = vector.load %arg6[%c3_189, %c0_190, %c0_191] : memref<8x2x32xbf16, #tpu.memory_space<vmem>>, vector<1x2x32xbf16>
    %401 = vector.shape_cast %400 : vector<1x2x32xbf16> to vector<2x32xbf16>
    %402 = vector.shape_cast %399 : vector<2x32xbf16> to vector<1x2x32xbf16>
    tpu.vector_store %arg6[%c3_189, %c0_190, %c0_191], %402 {strides = array<i32>} : memref<8x2x32xbf16, #tpu.memory_space<vmem>>, vector<1x2x32xbf16>,
    %c5_192 = arith.constant 5 : index
    %c0_193 = arith.constant 0 : index
    %c0_194 = arith.constant 0 : index
    %403 = vector.load %arg1[%c5_192, %c0_193, %c0_194] : memref<8x2x128xbf16, #tpu.memory_space<vmem>>, vector<1x2x128xbf16>
    %404 = vector.shape_cast %403 : vector<1x2x128xbf16> to vector<2x128xbf16>
    %c0_195 = arith.constant 0 : index
    %c0_196 = arith.constant 0 : index
    %405 = vector.load %arg7[%c0_195, %c0_196] : memref<2x32xf32, #tpu.memory_space<vmem>>, vector<2x32xf32>
    %c0_197 = arith.constant 0 : index
    %c0_198 = arith.constant 0 : index
    %406 = vector.load %arg8[%c0_197, %c0_198] : memref<2x32xf32, #tpu.memory_space<vmem>>, vector<2x32xf32>
    %407 = arith.extf %404 : vector<2x128xbf16> to vector<2x128xf32>
    %408 = arith.truncf %405 : vector<2x32xf32> to vector<2x32xbf16>
    %c0_199 = arith.constant 0 : index
    %c0_200 = arith.constant 0 : index
    %409 = vector.load %arg3[%c0_199, %c0_200] : memref<32x128xbf16, #tpu.memory_space<vmem>>, vector<32x128xbf16>
    %cst_201 = arith.constant dense<0.000000e+00> : vector<2x128xf32>
    %410 = tpu.matmul %408, %409, %cst_201 {dimension_numbers = #tpu.dot_dimension_numbers<[1], [0], [0], [1], [0, 0, 1, 1], [], []>} : vector<2x32xbf16>, vector<32x128xbf16>, vector<2x128xf32> -> vector<2x128xf32>
    %411 = arith.addf %407, %410 : vector<2x128xf32>
    %412 = vector.extract_strided_slice %411 {offsets = [0, 0], sizes = [2, 32], strides = [1, 1]} : vector<2x128xf32> to vector<2x32xf32>
    %413 = arith.negf %412 : vector<2x32xf32>
    %414 = math.exp %413 : vector<2x32xf32>
    %cst_202 = arith.constant 1.000000e+00 : f32
    %415 = vector.broadcast %cst_202 : f32 to vector<2x32xf32>
    %416 = arith.addf %415, %414 : vector<2x32xf32>
    %417 = arith.divf %415, %416 : vector<2x32xf32>
    %418 = vector.extract_strided_slice %411 {offsets = [0, 32], sizes = [2, 32], strides = [1, 1]} : vector<2x128xf32> to vector<2x32xf32>
    %419 = arith.negf %418 : vector<2x32xf32>
    %420 = math.exp %419 : vector<2x32xf32>
    %cst_203 = arith.constant 1.000000e+00 : f32
    %421 = vector.broadcast %cst_203 : f32 to vector<2x32xf32>
    %422 = arith.addf %421, %420 : vector<2x32xf32>
    %423 = arith.divf %421, %422 : vector<2x32xf32>
    %424 = vector.extract_strided_slice %411 {offsets = [0, 64], sizes = [2, 32], strides = [1, 1]} : vector<2x128xf32> to vector<2x32xf32>
    %425 = math.tanh %424 : vector<2x32xf32>
    %426 = vector.extract_strided_slice %411 {offsets = [0, 96], sizes = [2, 32], strides = [1, 1]} : vector<2x128xf32> to vector<2x32xf32>
    %427 = arith.negf %426 : vector<2x32xf32>
    %428 = math.exp %427 : vector<2x32xf32>
    %cst_204 = arith.constant 1.000000e+00 : f32
    %429 = vector.broadcast %cst_204 : f32 to vector<2x32xf32>
    %430 = arith.addf %429, %428 : vector<2x32xf32>
    %431 = arith.divf %429, %430 : vector<2x32xf32>
    %432 = arith.mulf %423, %406 : vector<2x32xf32>
    %433 = arith.mulf %417, %425 : vector<2x32xf32>
    %434 = arith.addf %432, %433 : vector<2x32xf32>
    %435 = math.tanh %434 : vector<2x32xf32>
    %436 = arith.mulf %431, %435 : vector<2x32xf32>
    %c0_205 = arith.constant 0 : index
    %c0_206 = arith.constant 0 : index
    %437 = vector.load %arg7[%c0_205, %c0_206] : memref<2x32xf32, #tpu.memory_space<vmem>>, vector<2x32xf32>
    tpu.vector_store %arg7[%c0_205, %c0_206], %436 {strides = array<i32>} : memref<2x32xf32, #tpu.memory_space<vmem>>, vector<2x32xf32>,
    %c0_207 = arith.constant 0 : index
    %c0_208 = arith.constant 0 : index
    %438 = vector.load %arg8[%c0_207, %c0_208] : memref<2x32xf32, #tpu.memory_space<vmem>>, vector<2x32xf32>
    tpu.vector_store %arg8[%c0_207, %c0_208], %434 {strides = array<i32>} : memref<2x32xf32, #tpu.memory_space<vmem>>, vector<2x32xf32>,
    %439 = arith.truncf %436 : vector<2x32xf32> to vector<2x32xbf16>
    %c5_209 = arith.constant 5 : index
    %c0_210 = arith.constant 0 : index
    %c0_211 = arith.constant 0 : index
    %440 = vector.load %arg5[%c5_209, %c0_210, %c0_211] : memref<8x2x32xbf16, #tpu.memory_space<vmem>>, vector<1x2x32xbf16>
    %441 = vector.shape_cast %440 : vector<1x2x32xbf16> to vector<2x32xbf16>
    %442 = vector.shape_cast %439 : vector<2x32xbf16> to vector<1x2x32xbf16>
    tpu.vector_store %arg5[%c5_209, %c0_210, %c0_211], %442 {strides = array<i32>} : memref<8x2x32xbf16, #tpu.memory_space<vmem>>, vector<1x2x32xbf16>,
    %c2_212 = arith.constant 2 : index
    %c0_213 = arith.constant 0 : index
    %c0_214 = arith.constant 0 : index
    %443 = vector.load %arg2[%c2_212, %c0_213, %c0_214] : memref<8x2x128xbf16, #tpu.memory_space<vmem>>, vector<1x2x128xbf16>
    %444 = vector.shape_cast %443 : vector<1x2x128xbf16> to vector<2x128xbf16>
    %c0_215 = arith.constant 0 : index
    %c0_216 = arith.constant 0 : index
    %445 = vector.load %arg9[%c0_215, %c0_216] : memref<2x32xf32, #tpu.memory_space<vmem>>, vector<2x32xf32>
    %c0_217 = arith.constant 0 : index
    %c0_218 = arith.constant 0 : index
    %446 = vector.load %arg10[%c0_217, %c0_218] : memref<2x32xf32, #tpu.memory_space<vmem>>, vector<2x32xf32>
    %447 = arith.extf %444 : vector<2x128xbf16> to vector<2x128xf32>
    %448 = arith.truncf %445 : vector<2x32xf32> to vector<2x32xbf16>
    %c0_219 = arith.constant 0 : index
    %c0_220 = arith.constant 0 : index
    %449 = vector.load %arg4[%c0_219, %c0_220] : memref<32x128xbf16, #tpu.memory_space<vmem>>, vector<32x128xbf16>
    %cst_221 = arith.constant dense<0.000000e+00> : vector<2x128xf32>
    %450 = tpu.matmul %448, %449, %cst_221 {dimension_numbers = #tpu.dot_dimension_numbers<[1], [0], [0], [1], [0, 0, 1, 1], [], []>} : vector<2x32xbf16>, vector<32x128xbf16>, vector<2x128xf32> -> vector<2x128xf32>
    %451 = arith.addf %447, %450 : vector<2x128xf32>
    %452 = vector.extract_strided_slice %451 {offsets = [0, 0], sizes = [2, 32], strides = [1, 1]} : vector<2x128xf32> to vector<2x32xf32>
    %453 = arith.negf %452 : vector<2x32xf32>
    %454 = math.exp %453 : vector<2x32xf32>
    %cst_222 = arith.constant 1.000000e+00 : f32
    %455 = vector.broadcast %cst_222 : f32 to vector<2x32xf32>
    %456 = arith.addf %455, %454 : vector<2x32xf32>
    %457 = arith.divf %455, %456 : vector<2x32xf32>
    %458 = vector.extract_strided_slice %451 {offsets = [0, 32], sizes = [2, 32], strides = [1, 1]} : vector<2x128xf32> to vector<2x32xf32>
    %459 = arith.negf %458 : vector<2x32xf32>
    %460 = math.exp %459 : vector<2x32xf32>
    %cst_223 = arith.constant 1.000000e+00 : f32
    %461 = vector.broadcast %cst_223 : f32 to vector<2x32xf32>
    %462 = arith.addf %461, %460 : vector<2x32xf32>
    %463 = arith.divf %461, %462 : vector<2x32xf32>
    %464 = vector.extract_strided_slice %451 {offsets = [0, 64], sizes = [2, 32], strides = [1, 1]} : vector<2x128xf32> to vector<2x32xf32>
    %465 = math.tanh %464 : vector<2x32xf32>
    %466 = vector.extract_strided_slice %451 {offsets = [0, 96], sizes = [2, 32], strides = [1, 1]} : vector<2x128xf32> to vector<2x32xf32>
    %467 = arith.negf %466 : vector<2x32xf32>
    %468 = math.exp %467 : vector<2x32xf32>
    %cst_224 = arith.constant 1.000000e+00 : f32
    %469 = vector.broadcast %cst_224 : f32 to vector<2x32xf32>
    %470 = arith.addf %469, %468 : vector<2x32xf32>
    %471 = arith.divf %469, %470 : vector<2x32xf32>
    %472 = arith.mulf %463, %446 : vector<2x32xf32>
    %473 = arith.mulf %457, %465 : vector<2x32xf32>
    %474 = arith.addf %472, %473 : vector<2x32xf32>
    %475 = math.tanh %474 : vector<2x32xf32>
    %476 = arith.mulf %471, %475 : vector<2x32xf32>
    %c0_225 = arith.constant 0 : index
    %c0_226 = arith.constant 0 : index
    %477 = vector.load %arg9[%c0_225, %c0_226] : memref<2x32xf32, #tpu.memory_space<vmem>>, vector<2x32xf32>
    tpu.vector_store %arg9[%c0_225, %c0_226], %476 {strides = array<i32>} : memref<2x32xf32, #tpu.memory_space<vmem>>, vector<2x32xf32>,
    %c0_227 = arith.constant 0 : index
    %c0_228 = arith.constant 0 : index
    %478 = vector.load %arg10[%c0_227, %c0_228] : memref<2x32xf32, #tpu.memory_space<vmem>>, vector<2x32xf32>
    tpu.vector_store %arg10[%c0_227, %c0_228], %474 {strides = array<i32>} : memref<2x32xf32, #tpu.memory_space<vmem>>, vector<2x32xf32>,
    %479 = arith.truncf %476 : vector<2x32xf32> to vector<2x32xbf16>
    %c2_229 = arith.constant 2 : index
    %c0_230 = arith.constant 0 : index
    %c0_231 = arith.constant 0 : index
    %480 = vector.load %arg6[%c2_229, %c0_230, %c0_231] : memref<8x2x32xbf16, #tpu.memory_space<vmem>>, vector<1x2x32xbf16>
    %481 = vector.shape_cast %480 : vector<1x2x32xbf16> to vector<2x32xbf16>
    %482 = vector.shape_cast %479 : vector<2x32xbf16> to vector<1x2x32xbf16>
    tpu.vector_store %arg6[%c2_229, %c0_230, %c0_231], %482 {strides = array<i32>} : memref<8x2x32xbf16, #tpu.memory_space<vmem>>, vector<1x2x32xbf16>,
    %c6_232 = arith.constant 6 : index
    %c0_233 = arith.constant 0 : index
    %c0_234 = arith.constant 0 : index
    %483 = vector.load %arg1[%c6_232, %c0_233, %c0_234] : memref<8x2x128xbf16, #tpu.memory_space<vmem>>, vector<1x2x128xbf16>
    %484 = vector.shape_cast %483 : vector<1x2x128xbf16> to vector<2x128xbf16>
    %c0_235 = arith.constant 0 : index
    %c0_236 = arith.constant 0 : index
    %485 = vector.load %arg7[%c0_235, %c0_236] : memref<2x32xf32, #tpu.memory_space<vmem>>, vector<2x32xf32>
    %c0_237 = arith.constant 0 : index
    %c0_238 = arith.constant 0 : index
    %486 = vector.load %arg8[%c0_237, %c0_238] : memref<2x32xf32, #tpu.memory_space<vmem>>, vector<2x32xf32>
    %487 = arith.extf %484 : vector<2x128xbf16> to vector<2x128xf32>
    %488 = arith.truncf %485 : vector<2x32xf32> to vector<2x32xbf16>
    %c0_239 = arith.constant 0 : index
    %c0_240 = arith.constant 0 : index
    %489 = vector.load %arg3[%c0_239, %c0_240] : memref<32x128xbf16, #tpu.memory_space<vmem>>, vector<32x128xbf16>
    %cst_241 = arith.constant dense<0.000000e+00> : vector<2x128xf32>
    %490 = tpu.matmul %488, %489, %cst_241 {dimension_numbers = #tpu.dot_dimension_numbers<[1], [0], [0], [1], [0, 0, 1, 1], [], []>} : vector<2x32xbf16>, vector<32x128xbf16>, vector<2x128xf32> -> vector<2x128xf32>
    %491 = arith.addf %487, %490 : vector<2x128xf32>
    %492 = vector.extract_strided_slice %491 {offsets = [0, 0], sizes = [2, 32], strides = [1, 1]} : vector<2x128xf32> to vector<2x32xf32>
    %493 = arith.negf %492 : vector<2x32xf32>
    %494 = math.exp %493 : vector<2x32xf32>
    %cst_242 = arith.constant 1.000000e+00 : f32
    %495 = vector.broadcast %cst_242 : f32 to vector<2x32xf32>
    %496 = arith.addf %495, %494 : vector<2x32xf32>
    %497 = arith.divf %495, %496 : vector<2x32xf32>
    %498 = vector.extract_strided_slice %491 {offsets = [0, 32], sizes = [2, 32], strides = [1, 1]} : vector<2x128xf32> to vector<2x32xf32>
    %499 = arith.negf %498 : vector<2x32xf32>
    %500 = math.exp %499 : vector<2x32xf32>
    %cst_243 = arith.constant 1.000000e+00 : f32
    %501 = vector.broadcast %cst_243 : f32 to vector<2x32xf32>
    %502 = arith.addf %501, %500 : vector<2x32xf32>
    %503 = arith.divf %501, %502 : vector<2x32xf32>
    %504 = vector.extract_strided_slice %491 {offsets = [0, 64], sizes = [2, 32], strides = [1, 1]} : vector<2x128xf32> to vector<2x32xf32>
    %505 = math.tanh %504 : vector<2x32xf32>
    %506 = vector.extract_strided_slice %491 {offsets = [0, 96], sizes = [2, 32], strides = [1, 1]} : vector<2x128xf32> to vector<2x32xf32>
    %507 = arith.negf %506 : vector<2x32xf32>
    %508 = math.exp %507 : vector<2x32xf32>
    %cst_244 = arith.constant 1.000000e+00 : f32
    %509 = vector.broadcast %cst_244 : f32 to vector<2x32xf32>
    %510 = arith.addf %509, %508 : vector<2x32xf32>
    %511 = arith.divf %509, %510 : vector<2x32xf32>
    %512 = arith.mulf %503, %486 : vector<2x32xf32>
    %513 = arith.mulf %497, %505 : vector<2x32xf32>
    %514 = arith.addf %512, %513 : vector<2x32xf32>
    %515 = math.tanh %514 : vector<2x32xf32>
    %516 = arith.mulf %511, %515 : vector<2x32xf32>
    %c0_245 = arith.constant 0 : index
    %c0_246 = arith.constant 0 : index
    %517 = vector.load %arg7[%c0_245, %c0_246] : memref<2x32xf32, #tpu.memory_space<vmem>>, vector<2x32xf32>
    tpu.vector_store %arg7[%c0_245, %c0_246], %516 {strides = array<i32>} : memref<2x32xf32, #tpu.memory_space<vmem>>, vector<2x32xf32>,
    %c0_247 = arith.constant 0 : index
    %c0_248 = arith.constant 0 : index
    %518 = vector.load %arg8[%c0_247, %c0_248] : memref<2x32xf32, #tpu.memory_space<vmem>>, vector<2x32xf32>
    tpu.vector_store %arg8[%c0_247, %c0_248], %514 {strides = array<i32>} : memref<2x32xf32, #tpu.memory_space<vmem>>, vector<2x32xf32>,
    %519 = arith.truncf %516 : vector<2x32xf32> to vector<2x32xbf16>
    %c6_249 = arith.constant 6 : index
    %c0_250 = arith.constant 0 : index
    %c0_251 = arith.constant 0 : index
    %520 = vector.load %arg5[%c6_249, %c0_250, %c0_251] : memref<8x2x32xbf16, #tpu.memory_space<vmem>>, vector<1x2x32xbf16>
    %521 = vector.shape_cast %520 : vector<1x2x32xbf16> to vector<2x32xbf16>
    %522 = vector.shape_cast %519 : vector<2x32xbf16> to vector<1x2x32xbf16>
    tpu.vector_store %arg5[%c6_249, %c0_250, %c0_251], %522 {strides = array<i32>} : memref<8x2x32xbf16, #tpu.memory_space<vmem>>, vector<1x2x32xbf16>,
    %c1_252 = arith.constant 1 : index
    %c0_253 = arith.constant 0 : index
    %c0_254 = arith.constant 0 : index
    %523 = vector.load %arg2[%c1_252, %c0_253, %c0_254] : memref<8x2x128xbf16, #tpu.memory_space<vmem>>, vector<1x2x128xbf16>
    %524 = vector.shape_cast %523 : vector<1x2x128xbf16> to vector<2x128xbf16>
    %c0_255 = arith.constant 0 : index
    %c0_256 = arith.constant 0 : index
    %525 = vector.load %arg9[%c0_255, %c0_256] : memref<2x32xf32, #tpu.memory_space<vmem>>, vector<2x32xf32>
    %c0_257 = arith.constant 0 : index
    %c0_258 = arith.constant 0 : index
    %526 = vector.load %arg10[%c0_257, %c0_258] : memref<2x32xf32, #tpu.memory_space<vmem>>, vector<2x32xf32>
    %527 = arith.extf %524 : vector<2x128xbf16> to vector<2x128xf32>
    %528 = arith.truncf %525 : vector<2x32xf32> to vector<2x32xbf16>
    %c0_259 = arith.constant 0 : index
    %c0_260 = arith.constant 0 : index
    %529 = vector.load %arg4[%c0_259, %c0_260] : memref<32x128xbf16, #tpu.memory_space<vmem>>, vector<32x128xbf16>
    %cst_261 = arith.constant dense<0.000000e+00> : vector<2x128xf32>
    %530 = tpu.matmul %528, %529, %cst_261 {dimension_numbers = #tpu.dot_dimension_numbers<[1], [0], [0], [1], [0, 0, 1, 1], [], []>} : vector<2x32xbf16>, vector<32x128xbf16>, vector<2x128xf32> -> vector<2x128xf32>
    %531 = arith.addf %527, %530 : vector<2x128xf32>
    %532 = vector.extract_strided_slice %531 {offsets = [0, 0], sizes = [2, 32], strides = [1, 1]} : vector<2x128xf32> to vector<2x32xf32>
    %533 = arith.negf %532 : vector<2x32xf32>
    %534 = math.exp %533 : vector<2x32xf32>
    %cst_262 = arith.constant 1.000000e+00 : f32
    %535 = vector.broadcast %cst_262 : f32 to vector<2x32xf32>
    %536 = arith.addf %535, %534 : vector<2x32xf32>
    %537 = arith.divf %535, %536 : vector<2x32xf32>
    %538 = vector.extract_strided_slice %531 {offsets = [0, 32], sizes = [2, 32], strides = [1, 1]} : vector<2x128xf32> to vector<2x32xf32>
    %539 = arith.negf %538 : vector<2x32xf32>
    %540 = math.exp %539 : vector<2x32xf32>
    %cst_263 = arith.constant 1.000000e+00 : f32
    %541 = vector.broadcast %cst_263 : f32 to vector<2x32xf32>
    %542 = arith.addf %541, %540 : vector<2x32xf32>
    %543 = arith.divf %541, %542 : vector<2x32xf32>
    %544 = vector.extract_strided_slice %531 {offsets = [0, 64], sizes = [2, 32], strides = [1, 1]} : vector<2x128xf32> to vector<2x32xf32>
    %545 = math.tanh %544 : vector<2x32xf32>
    %546 = vector.extract_strided_slice %531 {offsets = [0, 96], sizes = [2, 32], strides = [1, 1]} : vector<2x128xf32> to vector<2x32xf32>
    %547 = arith.negf %546 : vector<2x32xf32>
    %548 = math.exp %547 : vector<2x32xf32>
    %cst_264 = arith.constant 1.000000e+00 : f32
    %549 = vector.broadcast %cst_264 : f32 to vector<2x32xf32>
    %550 = arith.addf %549, %548 : vector<2x32xf32>
    %551 = arith.divf %549, %550 : vector<2x32xf32>
    %552 = arith.mulf %543, %526 : vector<2x32xf32>
    %553 = arith.mulf %537, %545 : vector<2x32xf32>
    %554 = arith.addf %552, %553 : vector<2x32xf32>
    %555 = math.tanh %554 : vector<2x32xf32>
    %556 = arith.mulf %551, %555 : vector<2x32xf32>
    %c0_265 = arith.constant 0 : index
    %c0_266 = arith.constant 0 : index
    %557 = vector.load %arg9[%c0_265, %c0_266] : memref<2x32xf32, #tpu.memory_space<vmem>>, vector<2x32xf32>
    tpu.vector_store %arg9[%c0_265, %c0_266], %556 {strides = array<i32>} : memref<2x32xf32, #tpu.memory_space<vmem>>, vector<2x32xf32>,
    %c0_267 = arith.constant 0 : index
    %c0_268 = arith.constant 0 : index
    %558 = vector.load %arg10[%c0_267, %c0_268] : memref<2x32xf32, #tpu.memory_space<vmem>>, vector<2x32xf32>
    tpu.vector_store %arg10[%c0_267, %c0_268], %554 {strides = array<i32>} : memref<2x32xf32, #tpu.memory_space<vmem>>, vector<2x32xf32>,
    %559 = arith.truncf %556 : vector<2x32xf32> to vector<2x32xbf16>
    %c1_269 = arith.constant 1 : index
    %c0_270 = arith.constant 0 : index
    %c0_271 = arith.constant 0 : index
    %560 = vector.load %arg6[%c1_269, %c0_270, %c0_271] : memref<8x2x32xbf16, #tpu.memory_space<vmem>>, vector<1x2x32xbf16>
    %561 = vector.shape_cast %560 : vector<1x2x32xbf16> to vector<2x32xbf16>
    %562 = vector.shape_cast %559 : vector<2x32xbf16> to vector<1x2x32xbf16>
    tpu.vector_store %arg6[%c1_269, %c0_270, %c0_271], %562 {strides = array<i32>} : memref<8x2x32xbf16, #tpu.memory_space<vmem>>, vector<1x2x32xbf16>,
    %c7_272 = arith.constant 7 : index
    %c0_273 = arith.constant 0 : index
    %c0_274 = arith.constant 0 : index
    %563 = vector.load %arg1[%c7_272, %c0_273, %c0_274] : memref<8x2x128xbf16, #tpu.memory_space<vmem>>, vector<1x2x128xbf16>
    %564 = vector.shape_cast %563 : vector<1x2x128xbf16> to vector<2x128xbf16>
    %c0_275 = arith.constant 0 : index
    %c0_276 = arith.constant 0 : index
    %565 = vector.load %arg7[%c0_275, %c0_276] : memref<2x32xf32, #tpu.memory_space<vmem>>, vector<2x32xf32>
    %c0_277 = arith.constant 0 : index
    %c0_278 = arith.constant 0 : index
    %566 = vector.load %arg8[%c0_277, %c0_278] : memref<2x32xf32, #tpu.memory_space<vmem>>, vector<2x32xf32>
    %567 = arith.extf %564 : vector<2x128xbf16> to vector<2x128xf32>
    %568 = arith.truncf %565 : vector<2x32xf32> to vector<2x32xbf16>
    %c0_279 = arith.constant 0 : index
    %c0_280 = arith.constant 0 : index
    %569 = vector.load %arg3[%c0_279, %c0_280] : memref<32x128xbf16, #tpu.memory_space<vmem>>, vector<32x128xbf16>
    %cst_281 = arith.constant dense<0.000000e+00> : vector<2x128xf32>
    %570 = tpu.matmul %568, %569, %cst_281 {dimension_numbers = #tpu.dot_dimension_numbers<[1], [0], [0], [1], [0, 0, 1, 1], [], []>} : vector<2x32xbf16>, vector<32x128xbf16>, vector<2x128xf32> -> vector<2x128xf32>
    %571 = arith.addf %567, %570 : vector<2x128xf32>
    %572 = vector.extract_strided_slice %571 {offsets = [0, 0], sizes = [2, 32], strides = [1, 1]} : vector<2x128xf32> to vector<2x32xf32>
    %573 = arith.negf %572 : vector<2x32xf32>
    %574 = math.exp %573 : vector<2x32xf32>
    %cst_282 = arith.constant 1.000000e+00 : f32
    %575 = vector.broadcast %cst_282 : f32 to vector<2x32xf32>
    %576 = arith.addf %575, %574 : vector<2x32xf32>
    %577 = arith.divf %575, %576 : vector<2x32xf32>
    %578 = vector.extract_strided_slice %571 {offsets = [0, 32], sizes = [2, 32], strides = [1, 1]} : vector<2x128xf32> to vector<2x32xf32>
    %579 = arith.negf %578 : vector<2x32xf32>
    %580 = math.exp %579 : vector<2x32xf32>
    %cst_283 = arith.constant 1.000000e+00 : f32
    %581 = vector.broadcast %cst_283 : f32 to vector<2x32xf32>
    %582 = arith.addf %581, %580 : vector<2x32xf32>
    %583 = arith.divf %581, %582 : vector<2x32xf32>
    %584 = vector.extract_strided_slice %571 {offsets = [0, 64], sizes = [2, 32], strides = [1, 1]} : vector<2x128xf32> to vector<2x32xf32>
    %585 = math.tanh %584 : vector<2x32xf32>
    %586 = vector.extract_strided_slice %571 {offsets = [0, 96], sizes = [2, 32], strides = [1, 1]} : vector<2x128xf32> to vector<2x32xf32>
    %587 = arith.negf %586 : vector<2x32xf32>
    %588 = math.exp %587 : vector<2x32xf32>
    %cst_284 = arith.constant 1.000000e+00 : f32
    %589 = vector.broadcast %cst_284 : f32 to vector<2x32xf32>
    %590 = arith.addf %589, %588 : vector<2x32xf32>
    %591 = arith.divf %589, %590 : vector<2x32xf32>
    %592 = arith.mulf %583, %566 : vector<2x32xf32>
    %593 = arith.mulf %577, %585 : vector<2x32xf32>
    %594 = arith.addf %592, %593 : vector<2x32xf32>
    %595 = math.tanh %594 : vector<2x32xf32>
    %596 = arith.mulf %591, %595 : vector<2x32xf32>
    %c0_285 = arith.constant 0 : index
    %c0_286 = arith.constant 0 : index
    %597 = vector.load %arg7[%c0_285, %c0_286] : memref<2x32xf32, #tpu.memory_space<vmem>>, vector<2x32xf32>
    tpu.vector_store %arg7[%c0_285, %c0_286], %596 {strides = array<i32>} : memref<2x32xf32, #tpu.memory_space<vmem>>, vector<2x32xf32>,
    %c0_287 = arith.constant 0 : index
    %c0_288 = arith.constant 0 : index
    %598 = vector.load %arg8[%c0_287, %c0_288] : memref<2x32xf32, #tpu.memory_space<vmem>>, vector<2x32xf32>
    tpu.vector_store %arg8[%c0_287, %c0_288], %594 {strides = array<i32>} : memref<2x32xf32, #tpu.memory_space<vmem>>, vector<2x32xf32>,
    %599 = arith.truncf %596 : vector<2x32xf32> to vector<2x32xbf16>
    %c7_289 = arith.constant 7 : index
    %c0_290 = arith.constant 0 : index
    %c0_291 = arith.constant 0 : index
    %600 = vector.load %arg5[%c7_289, %c0_290, %c0_291] : memref<8x2x32xbf16, #tpu.memory_space<vmem>>, vector<1x2x32xbf16>
    %601 = vector.shape_cast %600 : vector<1x2x32xbf16> to vector<2x32xbf16>
    %602 = vector.shape_cast %599 : vector<2x32xbf16> to vector<1x2x32xbf16>
    tpu.vector_store %arg5[%c7_289, %c0_290, %c0_291], %602 {strides = array<i32>} : memref<8x2x32xbf16, #tpu.memory_space<vmem>>, vector<1x2x32xbf16>,
    %c0_292 = arith.constant 0 : index
    %c0_293 = arith.constant 0 : index
    %c0_294 = arith.constant 0 : index
    %603 = vector.load %arg2[%c0_292, %c0_293, %c0_294] : memref<8x2x128xbf16, #tpu.memory_space<vmem>>, vector<1x2x128xbf16>
    %604 = vector.shape_cast %603 : vector<1x2x128xbf16> to vector<2x128xbf16>
    %c0_295 = arith.constant 0 : index
    %c0_296 = arith.constant 0 : index
    %605 = vector.load %arg9[%c0_295, %c0_296] : memref<2x32xf32, #tpu.memory_space<vmem>>, vector<2x32xf32>
    %c0_297 = arith.constant 0 : index
    %c0_298 = arith.constant 0 : index
    %606 = vector.load %arg10[%c0_297, %c0_298] : memref<2x32xf32, #tpu.memory_space<vmem>>, vector<2x32xf32>
    %607 = arith.extf %604 : vector<2x128xbf16> to vector<2x128xf32>
    %608 = arith.truncf %605 : vector<2x32xf32> to vector<2x32xbf16>
    %c0_299 = arith.constant 0 : index
    %c0_300 = arith.constant 0 : index
    %609 = vector.load %arg4[%c0_299, %c0_300] : memref<32x128xbf16, #tpu.memory_space<vmem>>, vector<32x128xbf16>
    %cst_301 = arith.constant dense<0.000000e+00> : vector<2x128xf32>
    %610 = tpu.matmul %608, %609, %cst_301 {dimension_numbers = #tpu.dot_dimension_numbers<[1], [0], [0], [1], [0, 0, 1, 1], [], []>} : vector<2x32xbf16>, vector<32x128xbf16>, vector<2x128xf32> -> vector<2x128xf32>
    %611 = arith.addf %607, %610 : vector<2x128xf32>
    %612 = vector.extract_strided_slice %611 {offsets = [0, 0], sizes = [2, 32], strides = [1, 1]} : vector<2x128xf32> to vector<2x32xf32>
    %613 = arith.negf %612 : vector<2x32xf32>
    %614 = math.exp %613 : vector<2x32xf32>
    %cst_302 = arith.constant 1.000000e+00 : f32
    %615 = vector.broadcast %cst_302 : f32 to vector<2x32xf32>
    %616 = arith.addf %615, %614 : vector<2x32xf32>
    %617 = arith.divf %615, %616 : vector<2x32xf32>
    %618 = vector.extract_strided_slice %611 {offsets = [0, 32], sizes = [2, 32], strides = [1, 1]} : vector<2x128xf32> to vector<2x32xf32>
    %619 = arith.negf %618 : vector<2x32xf32>
    %620 = math.exp %619 : vector<2x32xf32>
    %cst_303 = arith.constant 1.000000e+00 : f32
    %621 = vector.broadcast %cst_303 : f32 to vector<2x32xf32>
    %622 = arith.addf %621, %620 : vector<2x32xf32>
    %623 = arith.divf %621, %622 : vector<2x32xf32>
    %624 = vector.extract_strided_slice %611 {offsets = [0, 64], sizes = [2, 32], strides = [1, 1]} : vector<2x128xf32> to vector<2x32xf32>
    %625 = math.tanh %624 : vector<2x32xf32>
    %626 = vector.extract_strided_slice %611 {offsets = [0, 96], sizes = [2, 32], strides = [1, 1]} : vector<2x128xf32> to vector<2x32xf32>
    %627 = arith.negf %626 : vector<2x32xf32>
    %628 = math.exp %627 : vector<2x32xf32>
    %cst_304 = arith.constant 1.000000e+00 : f32
    %629 = vector.broadcast %cst_304 : f32 to vector<2x32xf32>
    %630 = arith.addf %629, %628 : vector<2x32xf32>
    %631 = arith.divf %629, %630 : vector<2x32xf32>
    %632 = arith.mulf %623, %606 : vector<2x32xf32>
    %633 = arith.mulf %617, %625 : vector<2x32xf32>
    %634 = arith.addf %632, %633 : vector<2x32xf32>
    %635 = math.tanh %634 : vector<2x32xf32>
    %636 = arith.mulf %631, %635 : vector<2x32xf32>
    %c0_305 = arith.constant 0 : index
    %c0_306 = arith.constant 0 : index
    %637 = vector.load %arg9[%c0_305, %c0_306] : memref<2x32xf32, #tpu.memory_space<vmem>>, vector<2x32xf32>
    tpu.vector_store %arg9[%c0_305, %c0_306], %636 {strides = array<i32>} : memref<2x32xf32, #tpu.memory_space<vmem>>, vector<2x32xf32>,
    %c0_307 = arith.constant 0 : index
    %c0_308 = arith.constant 0 : index
    %638 = vector.load %arg10[%c0_307, %c0_308] : memref<2x32xf32, #tpu.memory_space<vmem>>, vector<2x32xf32>
    tpu.vector_store %arg10[%c0_307, %c0_308], %634 {strides = array<i32>} : memref<2x32xf32, #tpu.memory_space<vmem>>, vector<2x32xf32>,
    %639 = arith.truncf %636 : vector<2x32xf32> to vector<2x32xbf16>
    %c0_309 = arith.constant 0 : index
    %c0_310 = arith.constant 0 : index
    %c0_311 = arith.constant 0 : index
    %640 = vector.load %arg6[%c0_309, %c0_310, %c0_311] : memref<8x2x32xbf16, #tpu.memory_space<vmem>>, vector<1x2x32xbf16>
    %641 = vector.shape_cast %640 : vector<1x2x32xbf16> to vector<2x32xbf16>
    %642 = vector.shape_cast %639 : vector<2x32xbf16> to vector<1x2x32xbf16>
    tpu.vector_store %arg6[%c0_309, %c0_310, %c0_311], %642 {strides = array<i32>} : memref<8x2x32xbf16, #tpu.memory_space<vmem>>, vector<1x2x32xbf16>,
    return
  }
  func.func @transform_0(%arg0: i32) -> (i32, i32, i32) {
    %c0_i32 = arith.constant 0 : i32
    %c0_i32_0 = arith.constant 0 : i32
    %c0_i32_1 = arith.constant 0 : i32
    return %arg0, %c0_i32, %c0_i32_0 : i32, i32, i32
  }
  func.func @transform_1(%arg0: i32) -> (i32, i32, i32) {
    %c0_i32 = arith.constant 0 : i32
    %0 = arith.subi %c0_i32, %arg0 : i32
    %c0_i32_0 = arith.constant 0 : i32
    %c1_i32 = arith.constant 1 : i32
    %c0_i32_1 = arith.constant 0 : i32
    return %0, %c0_i32_0, %c1_i32 : i32, i32, i32
  }
  func.func @transform_2(%arg0: i32) -> (i32, i32) {
    %c0_i32 = arith.constant 0 : i32
    %c0_i32_0 = arith.constant 0 : i32
    %c0_i32_1 = arith.constant 0 : i32
    return %c0_i32, %c0_i32_0 : i32, i32
  }
  func.func @transform_3(%arg0: i32) -> (i32, i32) {
    %c0_i32 = arith.constant 0 : i32
    %c0_i32_0 = arith.constant 0 : i32
    %c0_i32_1 = arith.constant 0 : i32
    return %c0_i32, %c0_i32_0 : i32, i32
  }
  func.func @transform_4(%arg0: i32) -> (i32, i32, i32) {
    %c0_i32 = arith.constant 0 : i32
    %c0_i32_0 = arith.constant 0 : i32
    %c0_i32_1 = arith.constant 0 : i32
    return %arg0, %c0_i32, %c0_i32_0 : i32, i32, i32
  }
  func.func @transform_5(%arg0: i32) -> (i32, i32, i32) {
    %c0_i32 = arith.constant 0 : i32
    %0 = arith.subi %c0_i32, %arg0 : i32
    %c0_i32_0 = arith.constant 0 : i32
    %c0_i32_1 = arith.constant 0 : i32
    %c0_i32_2 = arith.constant 0 : i32
    return %0, %c0_i32_0, %c0_i32_1 : i32, i32, i32
  }
}

module attributes {stable_mosaic.version = 11 : i64} {
  func.func @output_head_kernel(%arg0: i32, %arg1: memref<16x32xbf16, #tpu.memory_space<vmem>>, %arg2: memref<16x32xbf16, #tpu.memory_space<vmem>>, %arg3: memref<32x32xbf16, #tpu.memory_space<vmem>>, %arg4: memref<32x32xbf16, #tpu.memory_space<vmem>>, %arg5: memref<1x32xf32, #tpu.memory_space<vmem>>, %arg6: memref<1x32xf32, #tpu.memory_space<vmem>>, %arg7: memref<1x32xf32, #tpu.memory_space<vmem>>, %arg8: memref<32x128xbf16, #tpu.memory_space<vmem>>, %arg9: memref<1x128xf32, #tpu.memory_space<vmem>>, %arg10: memref<16x128xf32, #tpu.memory_space<vmem>>) attributes {dimension_semantics = [#tpu.dimension_semantics<parallel>], iteration_bounds = array<i64: 1>, scalar_prefetch = 0 : i64, scratch_operands = 0 : i64, tpu.core_type = #tpu.core_type<tc>, window_params = [{transform_indices = @transform_0, window_bounds = array<i64: 16, 32>}, {transform_indices = @transform_1, window_bounds = array<i64: 16, 32>}, {pipeline_mode = #tpu.pipeline_mode<synchronous>, transform_indices = @transform_2, window_bounds = array<i64: 32, 32>}, {pipeline_mode = #tpu.pipeline_mode<synchronous>, transform_indices = @transform_3, window_bounds = array<i64: 32, 32>}, {pipeline_mode = #tpu.pipeline_mode<synchronous>, transform_indices = @transform_4, window_bounds = array<i64: 1, 32>}, {pipeline_mode = #tpu.pipeline_mode<synchronous>, transform_indices = @transform_5, window_bounds = array<i64: 1, 32>}, {pipeline_mode = #tpu.pipeline_mode<synchronous>, transform_indices = @transform_6, window_bounds = array<i64: 1, 32>}, {pipeline_mode = #tpu.pipeline_mode<synchronous>, transform_indices = @transform_7, window_bounds = array<i64: 32, 128>}, {pipeline_mode = #tpu.pipeline_mode<synchronous>, transform_indices = @transform_8, window_bounds = array<i64: 1, 128>}, {transform_indices = @transform_9, window_bounds = array<i64: 16, 128>}]} {
    %c0 = arith.constant 0 : index
    %c0_0 = arith.constant 0 : index
    %0 = vector.load %arg1[%c0, %c0_0] : memref<16x32xbf16, #tpu.memory_space<vmem>>, vector<16x32xbf16>
    %c0_1 = arith.constant 0 : index
    %c0_2 = arith.constant 0 : index
    %1 = vector.load %arg3[%c0_1, %c0_2] : memref<32x32xbf16, #tpu.memory_space<vmem>>, vector<32x32xbf16>
    %cst = arith.constant dense<0.000000e+00> : vector<16x32xf32>
    %2 = tpu.matmul %0, %1, %cst {dimension_numbers = #tpu.dot_dimension_numbers<[1], [0], [0], [1], [0, 0, 1, 1], [], []>} : vector<16x32xbf16>, vector<32x32xbf16>, vector<16x32xf32> -> vector<16x32xf32>
    %c0_3 = arith.constant 0 : index
    %c0_4 = arith.constant 0 : index
    %3 = vector.load %arg2[%c0_3, %c0_4] : memref<16x32xbf16, #tpu.memory_space<vmem>>, vector<16x32xbf16>
    %c0_5 = arith.constant 0 : index
    %c0_6 = arith.constant 0 : index
    %4 = vector.load %arg4[%c0_5, %c0_6] : memref<32x32xbf16, #tpu.memory_space<vmem>>, vector<32x32xbf16>
    %cst_7 = arith.constant dense<0.000000e+00> : vector<16x32xf32>
    %5 = tpu.matmul %3, %4, %cst_7 {dimension_numbers = #tpu.dot_dimension_numbers<[1], [0], [0], [1], [0, 0, 1, 1], [], []>} : vector<16x32xbf16>, vector<32x32xbf16>, vector<16x32xf32> -> vector<16x32xf32>
    %6 = arith.addf %2, %5 : vector<16x32xf32>
    %c0_8 = arith.constant 0 : index
    %c0_9 = arith.constant 0 : index
    %7 = vector.load %arg5[%c0_8, %c0_9] : memref<1x32xf32, #tpu.memory_space<vmem>>, vector<1x32xf32>
    %8 = vector.broadcast %7 : vector<1x32xf32> to vector<16x32xf32>
    %9 = arith.addf %6, %8 : vector<16x32xf32>
    %c0_10 = arith.constant 0 : index
    %c0_11 = arith.constant 0 : index
    %10 = vector.load %arg6[%c0_10, %c0_11] : memref<1x32xf32, #tpu.memory_space<vmem>>, vector<1x32xf32>
    %11 = vector.broadcast %10 : vector<1x32xf32> to vector<16x32xf32>
    %12 = arith.mulf %9, %11 : vector<16x32xf32>
    %c0_12 = arith.constant 0 : index
    %c0_13 = arith.constant 0 : index
    %13 = vector.load %arg7[%c0_12, %c0_13] : memref<1x32xf32, #tpu.memory_space<vmem>>, vector<1x32xf32>
    %14 = vector.broadcast %13 : vector<1x32xf32> to vector<16x32xf32>
    %15 = arith.addf %12, %14 : vector<16x32xf32>
    %cst_14 = arith.constant 0.000000e+00 : f32
    %16 = vector.broadcast %cst_14 : f32 to vector<16x32xf32>
    %17 = arith.maximumf %15, %16 : vector<16x32xf32>
    %18 = arith.truncf %17 : vector<16x32xf32> to vector<16x32xbf16>
    %c0_15 = arith.constant 0 : index
    %c0_16 = arith.constant 0 : index
    %19 = vector.load %arg8[%c0_15, %c0_16] : memref<32x128xbf16, #tpu.memory_space<vmem>>, vector<32x128xbf16>
    %cst_17 = arith.constant dense<0.000000e+00> : vector<16x128xf32>
    %20 = tpu.matmul %18, %19, %cst_17 {dimension_numbers = #tpu.dot_dimension_numbers<[1], [0], [0], [1], [0, 0, 1, 1], [], []>} : vector<16x32xbf16>, vector<32x128xbf16>, vector<16x128xf32> -> vector<16x128xf32>
    %c0_18 = arith.constant 0 : index
    %c0_19 = arith.constant 0 : index
    %21 = vector.load %arg9[%c0_18, %c0_19] : memref<1x128xf32, #tpu.memory_space<vmem>>, vector<1x128xf32>
    %22 = vector.broadcast %21 : vector<1x128xf32> to vector<16x128xf32>
    %23 = arith.addf %20, %22 : vector<16x128xf32>
    %c0_20 = arith.constant 0 : index
    %c0_21 = arith.constant 0 : index
    %24 = vector.load %arg10[%c0_20, %c0_21] : memref<16x128xf32, #tpu.memory_space<vmem>>, vector<16x128xf32>
    tpu.vector_store %arg10[%c0_20, %c0_21], %23 {strides = array<i32>} : memref<16x128xf32, #tpu.memory_space<vmem>>, vector<16x128xf32>,
    return
  }
  func.func @transform_0(%arg0: i32) -> (i32, i32) {
    %c0_i32 = arith.constant 0 : i32
    %c0_i32_0 = arith.constant 0 : i32
    return %arg0, %c0_i32 : i32, i32
  }
  func.func @transform_1(%arg0: i32) -> (i32, i32) {
    %c0_i32 = arith.constant 0 : i32
    %c0_i32_0 = arith.constant 0 : i32
    return %arg0, %c0_i32 : i32, i32
  }
  func.func @transform_2(%arg0: i32) -> (i32, i32) {
    %c0_i32 = arith.constant 0 : i32
    %c0_i32_0 = arith.constant 0 : i32
    %c0_i32_1 = arith.constant 0 : i32
    return %c0_i32, %c0_i32_0 : i32, i32
  }
  func.func @transform_3(%arg0: i32) -> (i32, i32) {
    %c0_i32 = arith.constant 0 : i32
    %c0_i32_0 = arith.constant 0 : i32
    %c0_i32_1 = arith.constant 0 : i32
    return %c0_i32, %c0_i32_0 : i32, i32
  }
  func.func @transform_4(%arg0: i32) -> (i32, i32) {
    %c0_i32 = arith.constant 0 : i32
    %c0_i32_0 = arith.constant 0 : i32
    %c0_i32_1 = arith.constant 0 : i32
    return %c0_i32, %c0_i32_0 : i32, i32
  }
  func.func @transform_5(%arg0: i32) -> (i32, i32) {
    %c0_i32 = arith.constant 0 : i32
    %c0_i32_0 = arith.constant 0 : i32
    %c0_i32_1 = arith.constant 0 : i32
    return %c0_i32, %c0_i32_0 : i32, i32
  }
  func.func @transform_6(%arg0: i32) -> (i32, i32) {
    %c0_i32 = arith.constant 0 : i32
    %c0_i32_0 = arith.constant 0 : i32
    %c0_i32_1 = arith.constant 0 : i32
    return %c0_i32, %c0_i32_0 : i32, i32
  }
  func.func @transform_7(%arg0: i32) -> (i32, i32) {
    %c0_i32 = arith.constant 0 : i32
    %c0_i32_0 = arith.constant 0 : i32
    %c0_i32_1 = arith.constant 0 : i32
    return %c0_i32, %c0_i32_0 : i32, i32
  }
  func.func @transform_8(%arg0: i32) -> (i32, i32) {
    %c0_i32 = arith.constant 0 : i32
    %c0_i32_0 = arith.constant 0 : i32
    %c0_i32_1 = arith.constant 0 : i32
    return %c0_i32, %c0_i32_0 : i32, i32
  }
  func.func @transform_9(%arg0: i32) -> (i32, i32) {
    %c0_i32 = arith.constant 0 : i32
    %c0_i32_0 = arith.constant 0 : i32
    return %arg0, %c0_i32 : i32, i32
  }
}

</mosaic_0001>

<bundles_post_ra>
// kernel: model_forward.7
= control target key start
LH: loop header
LB: loop body
LE: loop exit
PB: predicated region body
PF: predicated region fallthrough
CT: control target
= control target key end

     0   :  { %v141_v1 = vmov 0   ;;  %vm58_vm0 = vcmask 261120   ;;  %v23_v6 = vlaneseq  ;;  %s186_s1 = inlined_call_operand.vmem [shape: bf16[32,256], index: 1, kind: input, shape index: {}]   ;;  %s187_s0 = inlined_call_operand.vmem [shape: bf16[16,32], index: 0, kind: input, shape index: {}]   ;;  %s188_s2 = inlined_call_operand.vmem [shape: f32[1,256], index: 2, kind: input, shape index: {}]   ;;  %s189_s3 = inlined_call_operand.vmem [shape: bf16[16,256], index: 3, kind: output, shape index: {}]  }
   0x1   :  { %v134_v0 = vld [vmem:[%s186_s1 + $0x4] ss:$8 sps:$4 sm:$0xff]   ;;  %94 = vmatprep.mubr.bf16.mxu0 %v141_v1  ;;  %v136_v2 = vld [vmem:[%s186_s1] ss:$8 sps:$4 sm:$0xff]   ;;  %v137_v3 = vld [vmem:[%s186_s1 + $0x14] ss:$8 sps:$4 sm:$0xff]  }
   0x2   :  { %62 = vmatprep.subr.bf16.mxu0 %v134_v0  ;;  %v139_v4 = vld [vmem:[%s186_s1 + $0x10] ss:$8 sps:$4 sm:$0xff]   ;;  %v140_v5 = vld [vmem:[%s187_s0] sm:$0xff]   ;;  %v24_v7 = vshrl.u32 %v23_v6, 7 }
   0x3   :  { %63 = vmatpush1.bf16.msra.mxu0 %v136_v2  ;;  %v21_v9 = vld [vmem:[%s188_s2] sm:$0x3] }
   0x4   :  { %64 = vmatprep.subr.bf16.mxu0 %v137_v3  ;;  %v25_v8 = vsub.s32 0, %v24_v7  ;;  %v29_v10 = vsub.s32 1, %v24_v7 }
   0x6   :  { %v26_v11 = vrot.slane %v21_v9, %v25_v8  ;;  %v30_v12 = vrot.slane %v21_v9, %v29_v10 }
   0x7   :  { %65 = vmatpush1.bf16.msra.mxu0 %v139_v4 }
   0xa   :  { %128 = vmatmul.mubr.msk.bf16.vlgmr.msra.gmra.mrb[0].mxu0 %vm58_vm0, %v140_v5 }
  0xdd   :  { %v96_v13 = vpop.f32.mrb[0].mxu0 }
  0xde   :  { %v97_v14 = vadd.f32 %v96_v13, %v26_v11  ;;  %v98_v15 = vpop.f32.mrb[1].mxu0 }
  0xdf   :  { %v99_v16 = vadd.f32 %v98_v15, %v30_v12  ;;  %v100_v17 = vpop.f32.mrb[2].mxu0 }
  0xe0   :  { %v101_v18 = vadd.f32 %v100_v17, %v26_v11  ;;  %v102_v19 = vpop.f32.mrb[3].mxu0 }
  0xe1   :  { %v131_v20 = vpack.c.bf16 %v99_v16, %v97_v14  ;;  %v103_v21 = vadd.f32 %v102_v19, %v30_v12 }
  0xe3   :  { %117 = vst [vmem:[%s189_s3] sm:$0xff] %v131_v20  ;;  %v132_v22 = vpack.c.bf16 %v103_v21, %v101_v18 }
  0xe5   :  { %118 = vst [vmem:[%s189_s3 + $0x8] sm:$0xff] %v132_v22 }

// kernel: model_forward.9
= control target key start
LH: loop header
LB: loop body
LE: loop exit
PB: predicated region body
PF: predicated region fallthrough
CT: control target
= control target key end

     0   :  { %v245_v1 = vmov 0   ;;  %vm58_vm0 = vcmask 261120   ;;  %v178_v11 = vlaneseq  ;;  %s315_s3 = inlined_call_operand.vmem [shape: bf16[32,256], index: 3, kind: input, shape index: {}]   ;;  %s316_s1 = inlined_call_operand.vmem [shape: bf16[32,256], index: 1, kind: input, shape index: {}]   ;;  %s317_s2 = inlined_call_operand.vmem [shape: bf16[16,32], index: 2, kind: input, shape index: {}]   ;;  %s318_s0 = inlined_call_operand.vmem [shape: bf16[16,32], index: 0, kind: input, shape index: {}]   ;;  %s319_s4 = inlined_call_operand.vmem [shape: f32[1,256], index: 4, kind: input, shape index: {}]   ;;  %s320_s5 = inlined_call_operand.vmem [shape: bf16[16,256], index: 5, kind: output, shape index: {}]  }
   0x1   :  { %v231_v0 = vld [vmem:[%s315_s3 + $0x4] ss:$8 sps:$4 sm:$0xff]   ;;  %94 = vmatprep.mubr.bf16.mxu1 %v245_v1  ;;  %165 = vmatprep.mubr.bf16.mxu0 %v245_v1  ;;  %v235_v3 = vld [vmem:[%s315_s3] ss:$8 sps:$4 sm:$0xff]   ;;  %v237_v5 = vld [vmem:[%s315_s3 + $0x14] ss:$8 sps:$4 sm:$0xff]  }
   0x2   :  { %v233_v2 = vld [vmem:[%s316_s1 + $0x4] ss:$8 sps:$4 sm:$0xff]   ;;  %62 = vmatprep.subr.bf16.mxu1 %v231_v0  ;;  %v236_v4 = vld [vmem:[%s316_s1] ss:$8 sps:$4 sm:$0xff]   ;;  %v239_v6 = vld [vmem:[%s316_s1 + $0x14] ss:$8 sps:$4 sm:$0xff]  }
   0x3   :  { %133 = vmatprep.subr.bf16.mxu0 %v233_v2  ;;  %63 = vmatpush1.bf16.msra.mxu1 %v235_v3  ;;  %v241_v7 = vld [vmem:[%s315_s3 + $0x10] ss:$8 sps:$4 sm:$0xff]   ;;  %v243_v9 = vld [vmem:[%s317_s2] sm:$0xff]   ;;  %v179_v12 = vshrl.u32 %v178_v11, 7 }
   0x4   :  { %134 = vmatpush1.bf16.msra.mxu0 %v236_v4  ;;  %64 = vmatprep.subr.bf16.mxu1 %v237_v5  ;;  %v242_v8 = vld [vmem:[%s316_s1 + $0x10] ss:$8 sps:$4 sm:$0xff]   ;;  %v244_v10 = vld [vmem:[%s318_s0] sm:$0xff]  }
   0x5   :  { %135 = vmatprep.subr.bf16.mxu0 %v239_v6  ;;  %v180_v13 = vsub.s32 0, %v179_v12  ;;  %v176_v14 = vld [vmem:[%s319_s4] sm:$0x3]  ;;  %v184_v15 = vsub.s32 1, %v179_v12 }
   0x7   :  { %65 = vmatpush1.bf16.msra.mxu1 %v241_v7  ;;  %v181_v16 = vrot.slane %v176_v14, %v180_v13  ;;  %v185_v19 = vrot.slane %v176_v14, %v184_v15 }
   0x8   :  { %136 = vmatpush1.bf16.msra.mxu0 %v242_v8 }
   0xa   :  { %215 = vmatmul.mubr.msk.bf16.vlgmr.msra.gmra.mrb[0].mxu1 %vm58_vm0, %v243_v9 }
   0xb   :  { %221 = vmatmul.mubr.msk.bf16.vlgmr.msra.gmra.mrb[0].mxu0 %vm58_vm0, %v244_v10 }
  0xdd   :  { %v96_v17 = vpop.f32.mrb[0].mxu1 }
  0xde   :  { %v167_v18 = vpop.f32.mrb[0].mxu0  ;;  %v98_v21 = vpop.f32.mrb[1].mxu1 }
  0xdf   :  { %v168_v20 = vadd.f32 %v167_v18, %v96_v17  ;;  %v169_v22 = vpop.f32.mrb[1].mxu0  ;;  %v100_v24 = vpop.f32.mrb[2].mxu1 }
  0xe0   :  { %v170_v23 = vadd.f32 %v169_v22, %v98_v21  ;;  %v171_v25 = vpop.f32.mrb[2].mxu0  ;;  %v102_v28 = vpop.f32.mrb[3].mxu1 }
  0xe1   :  { %v188_v26 = vadd.f32 %v181_v16, %v168_v20  ;;  %v172_v27 = vadd.f32 %v171_v25, %v100_v24  ;;  %v173_v29 = vpop.f32.mrb[3].mxu0 }
  0xe2   :  { %v189_v30 = vadd.f32 %v185_v19, %v170_v23  ;;  %v174_v31 = vadd.f32 %v173_v29, %v102_v28 }
  0xe3   :  { %v190_v32 = vadd.f32 %v181_v16, %v172_v27 }
  0xe4   :  { %v224_v33 = vpack.c.bf16 %v189_v30, %v188_v26  ;;  %v191_v34 = vadd.f32 %v185_v19, %v174_v31 }
  0xe6   :  { %204 = vst [vmem:[%s320_s5] sm:$0xff] %v224_v33  ;;  %v225_v35 = vpack.c.bf16 %v191_v34, %v190_v32 }
  0xe8   :  { %205 = vst [vmem:[%s320_s5 + $0x8] sm:$0xff] %v225_v35 }

// kernel: model_forward.6
= control target key start
LH: loop header
LB: loop body
LE: loop exit
PB: predicated region body
PF: predicated region fallthrough
CT: control target
= control target key end

     0   :  { %vm25_vm0 = vcmask 261120   ;;  %v253_v0 = vmov 0.0   ;;  %vm254_vm1 = vmmov 0   ;;  %vm190_vm2 = vcmask 257024   ;;  %s331_s1 = inlined_call_operand.vmem [shape: bf16[128,32], index: 1, kind: input, shape index: {}]   ;;  %s332_s0 = inlined_call_operand.vmem [shape: bf16[16,128], index: 0, kind: input, shape index: {}]   ;;  %s333_s2 = inlined_call_operand.vmem [shape: f32[1,32], index: 2, kind: input, shape index: {}]   ;;  %s334_s3 = inlined_call_operand.vmem [shape: f32[1,32], index: 3, kind: input, shape index: {}]   ;;  %s335_s4 = inlined_call_operand.vmem [shape: f32[1,32], index: 4, kind: input, shape index: {}]   ;;  %s336_s5 = inlined_call_operand.vmem [shape: bf16[16,32], index: 5, kind: output, shape index: {}]  }
   0x1   :  { %222 = vmatprep.subr.bf16.mxu0 %v253_v0  ;;  %v244_v1 = vld [vmem:[%s331_s1] sm:$0xff]   ;;  %238 = vmatprep.mubr.msk.bf16.mxu0 %vm254_vm1, %v253_v0  ;;  %26 = vst.msk [vmem:[#allocation2] sm:$0xff] %vm25_vm0, %v253_v0  ;;  %27 = vst.msk [vmem:[#allocation2 + $0x8] sm:$0xff] %vm25_vm0, %v253_v0  ;;  %v245_v2 = vld [vmem:[%s331_s1 + $0x8] sm:$0xff]  }
   0x2   :  { %223 = vmatpush3.bf16.msra.mxu0 %v244_v1  ;;  %v246_v3 = vld [vmem:[%s331_s1 + $0x10] sm:$0xff]   ;;  %v247_v4 = vld [vmem:[%s331_s1 + $0x18] sm:$0xff]   ;;  %v248_v5 = vld [vmem:[%s331_s1 + $0x20] sm:$0xff]  }
   0x3   :  { %224 = vmatprep.subr.bf16.mxu0 %v253_v0  ;;  %v249_v6 = vld [vmem:[%s331_s1 + $0x28] sm:$0xff]   ;;  %v250_v7 = vld [vmem:[%s331_s1 + $0x30] sm:$0xff]   ;;  %v251_v8 = vld [vmem:[%s331_s1 + $0x38] sm:$0xff]  }
   0x4   :  { %v252_v9 = vld [vmem:[%s332_s0] sm:$0xff]  }
   0x5   :  { %v206_v18 = vld [vmem:[%s333_s2] ss:$0 sm:$0xff] }
   0x6   :  { %225 = vmatpush3.bf16.msra.mxu0 %v245_v2  ;;  %v207_v20 = vld [vmem:[%s334_s3] ss:$0 sm:$0xff] }
   0x7   :  { %226 = vmatprep.subr.bf16.mxu0 %v253_v0  ;;  %v208_v22 = vld [vmem:[%s335_s4] ss:$0 sm:$0xff] }
   0x8   :  { %v28_v10 = vld [vmem:[#allocation2] sm:$0xff]  ;;  %v29_v12 = vld [vmem:[#allocation2 + $0x8] sm:$0xff] }
   0xa   :  { %227 = vmatpush3.bf16.msra.mxu0 %v246_v3 }
   0xb   :  { %228 = vmatprep.subr.bf16.mxu0 %v253_v0 }
   0xe   :  { %229 = vmatpush3.bf16.msra.mxu0 %v247_v4 }
   0xf   :  { %230 = vmatprep.subr.bf16.mxu0 %v253_v0 }
  0x12   :  { %231 = vmatpush3.bf16.msra.mxu0 %v248_v5 }
  0x13   :  { %232 = vmatprep.subr.bf16.mxu0 %v253_v0 }
  0x16   :  { %233 = vmatpush3.bf16.msra.mxu0 %v249_v6 }
  0x17   :  { %234 = vmatprep.subr.bf16.mxu0 %v253_v0 }
  0x1a   :  { %235 = vmatpush3.bf16.msra.mxu0 %v250_v7 }
  0x1b   :  { %236 = vmatprep.subr.bf16.mxu0 %v253_v0 }
  0x1e   :  { %237 = vmatpush3.bf16.msra.mxu0 %v251_v8 }
  0x21   :  { %239 = vmatmul.mubr.bf16.vlgmr.msra.gmra.mrb[0].mxu0 %v252_v9 }
  0xf4   :  { %v136_v11 = vpop.f32.mrb[0].mxu0 }
  0xf5   :  { %v143_v13 = vadd.f32 %v136_v11, %v28_v10  ;;  %v240_v14 = vpop.f32.mrb[1].mxu0 }
  0xf6   :  { %v139_v15 = vpop.f32.mrb[2].mxu0 }
  0xf7   :  { %146 = vst.msk [vmem:[#allocation2] sm:$0xff] %vm25_vm0, %v143_v13  ;;  %v144_v16 = vadd.f32 %v139_v15, %v29_v12  ;;  %v241_v17 = vpop.f32.mrb[3].mxu0 }
  0xf9   :  { %147 = vst.msk [vmem:[#allocation2 + $0x8] sm:$0xff] %vm25_vm0, %v144_v16 }
  0xfe   :  { %v151_v19 = vld [vmem:[#allocation2] sm:$0xff] }
  0xff   :  { %v160_v21 = vadd.f32 %v206_v18, %v151_v19 }
 0x100   :  { %v152_v23 = vld [vmem:[#allocation2 + $0x8] sm:$0xff] }
 0x101   :  { %v169_v24 = vmul.f32 %v207_v20, %v160_v21  ;;  %v161_v25 = vadd.f32 %v206_v18, %v152_v23 }
 0x103   :  { %v178_v26 = vadd.f32 %v208_v22, %v169_v24  ;;  %v170_v27 = vmul.f32 %v207_v20, %v161_v25 }
 0x105   :  { %v180_v28 = vmax.f32 %v178_v26, 0.0  ;;  %v179_v29 = vadd.f32 %v208_v22, %v170_v27 }
 0x107   :  { %v211_v30 = vpack.c.bf16 %v180_v28, %v180_v28  ;;  %v181_v31 = vmax.f32 %v179_v29, 0.0 }
 0x109   :  { %191 = vst.msk [vmem:[%s336_s5] sm:$0xf] %vm190_vm2, %v211_v30  ;;  %v212_v32 = vpack.c.bf16 %v181_v31, %v181_v31 }
 0x10b   :  { %192 = vst.msk [vmem:[%s336_s5 + $0x4] sm:$0xf] %vm190_vm2, %v212_v32 }

// kernel: model_forward.11
= control target key start
LH: loop header
LB: loop body
LE: loop exit
PB: predicated region body
PF: predicated region fallthrough
CT: control target
= control target key end

     0   :  { %v329_v0 = vmov 0.0   ;;  %vm330_vm0 = vmmov 0   ;;  %vm62_vm1 = vcmask 261120   ;;  %s429_s3 = inlined_call_operand.vmem [shape: bf16[32,32], index: 3, kind: input, shape index: {}]   ;;  %s430_s2 = inlined_call_operand.vmem [shape: bf16[32,32], index: 2, kind: input, shape index: {}]   ;;  %s431_s1 = inlined_call_operand.vmem [shape: bf16[16,32], index: 1, kind: input, shape index: {}]   ;;  %s432_s0 = inlined_call_operand.vmem [shape: bf16[16,32], index: 0, kind: input, shape index: {}]   ;;  %s433_s7 = inlined_call_operand.vmem [shape: bf16[32,128], index: 7, kind: input, shape index: {}]   ;;  %s434_s4 = inlined_call_operand.vmem [shape: f32[1,32], index: 4, kind: input, shape index: {}]   ;;  %s435_s5 = inlined_call_operand.vmem [shape: f32[1,32], index: 5, kind: input, shape index: {}]   ;;  %s436_s6 = inlined_call_operand.vmem [shape: f32[1,32], index: 6, kind: input, shape index: {}]   ;;  %s437_s8 = inlined_call_operand.vmem [shape: f32[1,128], index: 8, kind: input, shape index: {}]   ;;  %s438_s9 = inlined_call_operand.vmem [shape: f32[16,128], index: 9, kind: output, shape index: {}]  }
   0x1   :  { %295 = vmatprep.subr.bf16.mxu0 %v329_v0  ;;  %303 = vmatprep.subr.bf16.mxu1 %v329_v0  ;;  %v321_v1 = vld [vmem:[%s429_s3] sm:$0xff]   ;;  %v323_v3 = vld [vmem:[%s429_s3 + $0x8] sm:$0xff]  }
   0x2   :  { %v322_v2 = vld [vmem:[%s430_s2] sm:$0xff]   ;;  %299 = vmatprep.mubr.msk.bf16.mxu0 %vm330_vm0, %v329_v0  ;;  %307 = vmatprep.mubr.msk.bf16.mxu1 %vm330_vm0, %v329_v0  ;;  %v324_v4 = vld [vmem:[%s430_s2 + $0x8] sm:$0xff]  }
   0x3   :  { %296 = vmatpush3.bf16.msra.mxu0 %v321_v1  ;;  %304 = vmatpush3.bf16.msra.mxu1 %v322_v2  ;;  %v325_v5 = vld [vmem:[%s431_s1] sm:$0xff]   ;;  %v328_v8 = vld [vmem:[%s433_s7 + $0x8] sm:$0xff]  }
   0x4   :  { %297 = vmatprep.subr.bf16.mxu0 %v329_v0  ;;  %305 = vmatprep.subr.bf16.mxu1 %v329_v0  ;;  %v326_v6 = vld [vmem:[%s432_s0] sm:$0xff]  }
   0x5   :  { %v327_v7 = vld [vmem:[%s433_s7] sm:$0xff]  }
   0x6   :  { %v279_v11 = vld [vmem:[%s434_s4] ss:$0 sm:$0xff] }
   0x7   :  { %298 = vmatpush3.bf16.msra.mxu0 %v323_v3  ;;  %306 = vmatpush3.bf16.msra.mxu1 %v324_v4  ;;  %v280_v16 = vld [vmem:[%s435_s5] ss:$0 sm:$0xff] }
   0x8   :  { %311 = vmatprep.subr.bf16.mxu0 %v329_v0  ;;  %v281_v22 = vld [vmem:[%s436_s6] ss:$0 sm:$0xff] }
   0x9   :  { %v282_v31 = vld [vmem:[%s437_s8] ss:$0 sm:$0xff] }
   0xa   :  { %300 = vmatmul.mubr.msk.bf16.vlgmr.msra.gmra.mrb[0].mxu0 %vm62_vm1, %v325_v5  ;;  %308 = vmatmul.mubr.msk.bf16.vlgmr.msra.gmra.mrb[0].mxu1 %vm62_vm1, %v326_v6 }
   0xb   :  { %315 = vmatprep.mubr.msk.bf16.mxu0 %vm330_vm0, %v329_v0  ;;  %312 = vmatpush3.bf16.msra.mxu0 %v327_v7 }
   0xc   :  { %313 = vmatprep.subr.bf16.mxu0 %v329_v0 }
   0xf   :  { %314 = vmatpush3.bf16.msra.mxu0 %v328_v8 }
  0xdd   :  { %v100_v9 = vpop.f32.mrb[0].mxu0  ;;  %v161_v10 = vpop.f32.mrb[0].mxu1 }
  0xde   :  { %v301_v12 = vpop.f32.mrb[1].mxu0  ;;  %v162_v13 = vadd.f32 %v161_v10, %v100_v9  ;;  %v309_v14 = vpop.f32.mrb[1].mxu1 }
  0xdf   :  { %v103_v15 = vpop.f32.mrb[2].mxu0  ;;  %v164_v17 = vpop.f32.mrb[2].mxu1 }
  0xe0   :  { %v302_v18 = vpop.f32.mrb[3].mxu0  ;;  %v175_v19 = vadd.f32 %v279_v11, %v162_v13  ;;  %v165_v20 = vadd.f32 %v164_v17, %v103_v15  ;;  %v310_v21 = vpop.f32.mrb[3].mxu1 }
  0xe2   :  { %v184_v23 = vmul.f32 %v280_v16, %v175_v19  ;;  %v176_v24 = vadd.f32 %v279_v11, %v165_v20 }
  0xe4   :  { %v193_v25 = vadd.f32 %v281_v22, %v184_v23  ;;  %v185_v26 = vmul.f32 %v280_v16, %v176_v24 }
  0xe6   :  { %v194_v27 = vadd.f32 %v281_v22, %v185_v26  ;;  %v195_v28 = vmax.f32 %v193_v25, 0.0 }
  0xe8   :  { %v196_v29 = vmax.f32 %v194_v27, 0.0 }
  0xea   :  { %v197_v30 = vpack.c.bf16 %v196_v29, %v195_v28 }
  0xec   :  { %316 = vmatmul.mubr.msk.bf16.vlgmr.msra.gmra.mrb[4].mxu0 %vm62_vm1, %v197_v30 }
 0x1bf   :  { %v258_v32 = vpop.f32.mrb[4].mxu0 }
 0x1c0   :  { %v259_v33 = vadd.f32 %v282_v31, %v258_v32  ;;  %v317_v34 = vpop.f32.mrb[5].mxu0 }
 0x1c1   :  { %v261_v35 = vpop.f32.mrb[6].mxu0 }
 0x1c2   :  { %265 = vst [vmem:[%s438_s9] sm:$0xff] %v259_v33  ;;  %v262_v36 = vadd.f32 %v282_v31, %v261_v35  ;;  %v318_v37 = vpop.f32.mrb[7].mxu0 }
 0x1c4   :  { %266 = vst [vmem:[%s438_s9 + $0x8] sm:$0xff] %v262_v36 }

// kernel: model_forward.8
= control target key start
LH: loop header
LB: loop body
LE: loop exit
PB: predicated region body
PF: predicated region fallthrough
CT: control target
= control target key end

     0   :  { %v3001_v1 = vmov 0.0   ;;  %vm3002_vm0 = vmmov 0   ;;  %vm181_vm1 = vcmask 254976   ;;  %vm207_vm2 = vcmask 261120   ;;  %s3003_s28 = smov 32   ;;  %s3004_s6 = smov 64   ;;  %s3638_s0 = inlined_call_operand.vmem [shape: bf16[8,2,256], index: 0, kind: input, shape index: {}, may-alias: {0,1}]   ;;  %s3639_s1 = inlined_call_operand.vmem [shape: bf16[8,2,256], index: 1, kind: input, shape index: {}, may-alias: {0,1}]   ;;  %s3640_s2 = inlined_call_operand.vmem [shape: bf16[32,128], index: 2, kind: input, shape index: {}]   ;;  %s3641_s3 = inlined_call_operand.vmem [shape: bf16[32,128], index: 3, kind: input, shape index: {}]   ;;  %s3642_s4 = inlined_call_operand.vmem [shape: bf16[8,2,32], index: 4, kind: output, shape index: {0}]   ;;  %s3643_s5 = inlined_call_operand.vmem [shape: bf16[8,2,32], index: 5, kind: output, shape index: {1}]  }
   0x1   :  { %v2841_v0 = vld [vmem:[%s3640_s2] sm:$0xff]   ;;  %2706 = vmatprep.subr.bf16.mxu0 %v3001_v1  ;;  %2714 = vmatprep.subr.bf16.mxu1 %v3001_v1  ;;  %v2843_v3 = vld [vmem:[%s3640_s2 + $0x8] sm:$0xff]   ;;  %182 = vst.msk [vmem:[#allocation2] sm:$0x3] %vm181_vm1, %v3001_v1  ;;  %183 = vst.msk [vmem:[#allocation3] sm:$0x3] %vm181_vm1, %v3001_v1  ;;  %v291_v54 = vlaneseq }
   0x2   :  { %v2842_v2 = vld [vmem:[%s3641_s3] sm:$0xff]   ;;  %2707 = vmatpush3.bf16.msra.mxu0 %v2841_v0  ;;  %2710 = vmatprep.mubr.msk.bf16.mxu0 %vm3002_vm0, %v3001_v1  ;;  %v2844_v4 = vld [vmem:[%s3641_s3 + $0x8] sm:$0xff]   ;;  %184 = vst.msk [vmem:[#allocation4] sm:$0x3] %vm181_vm1, %v3001_v1  ;;  %185 = vst.msk [vmem:[#allocation5] sm:$0x3] %vm181_vm1, %v3001_v1 }
   0x3   :  { %2715 = vmatpush3.bf16.msra.mxu1 %v2842_v2  ;;  %2708 = vmatprep.subr.bf16.mxu0 %v3001_v1  ;;  %v28_v5 = vld [vmem:[%s3638_s0] sm:$0x1]  ;;  %v2563_v12 = vld [vmem:[%s3639_s1 + $0xf] sm:$0x1]  ;;  %v3005_v52 = vmov 1983009808  }
   0x4   :  { %2716 = vmatprep.subr.bf16.mxu1 %v3001_v1  ;;  %2718 = vmatprep.mubr.msk.bf16.mxu1 %vm3002_vm0, %v3001_v1  ;;  %29 = vst [vmem:[#allocation6] sm:$0x1] %v28_v5  ;;  %117 = vst [vmem:[#allocation7 + $0x7] sm:$0x1] %v2563_v12  ;;  %v2845_v51 = vld [vmem:[%s3640_s2] sm:$0xff]   ;;  %v289_v53 = vunpack.c.l.s4 %v3005_v52  ;;  %v2846_v55 = vld [vmem:[%s3640_s2 + $0x8] sm:$0xff]  }
   0x5   :  { %v2847_v56 = vld [vmem:[%s3641_s3] sm:$0xff]   ;;  %v3098_v58 = vshrl.u32 %v291_v54, 7  ;;  %v2848_v62 = vld [vmem:[%s3641_s3 + $0x8] sm:$0xff]   ;;  %s3006_s17 = smov 96   ;;  %vm331_vm3 = vcmask 253952  }
   0x6   :  { %2709 = vmatpush3.bf16.msra.mxu0 %v2843_v3  ;;  %v290_v57 = vunpack.c.0.s8 %v289_v53  ;;  %v30_v3 = vld [vmem:[%s3638_s0 + $0x2] sm:$0x1] }
   0x7   :  { %2717 = vmatpush3.bf16.msra.mxu1 %v2844_v4  ;;  %2722 = vmatprep.subr.bf16.mxu0 %v3001_v1  ;;  %31 = vst [vmem:[#allocation6 + $0x1] sm:$0x1] %v30_v3 }
   0x8   :  { %2730 = vmatprep.subr.bf16.mxu1 %v3001_v1  ;;  %v187_v6 = vld [vmem:[#allocation2] sm:$0x3]  ;;  %v2568_v10 = vld.sshfl [vmem:[#allocation3] sm:$0x3 pattern:$0x76325410]  ;;  %v3103_v60 = vsub.s32 %v290_v57, %v3098_v58 }
   0x9   :  { %v335_v7 = vld [vmem:[#allocation4] sm:$0x3]  ;;  %v190_v8 = vpack.c.bf16 %v187_v6, %v187_v6  ;;  %267 = vrot.lane.b32.xlu1 %v2568_v10, %s3003_s28  ;;  %v2573_v11 = vld.sshfl [vmem:[#allocation5] sm:$0x3 pattern:$0x76325410] }
   0xa   :  { %v338_v9 = vpack.c.bf16 %v335_v7, %v335_v7  ;;  %v2850_v57 = vld [vmem:[%s3640_s2 + $0x8] sm:$0xff]  }
   0xb   :  { %2711 = vmatmul.mubr.msk.bf16.vlgmr.msra.gmra.mrb[0].mxu0 %vm207_vm2, %v190_v8  ;;  %v186_v13 = vld [vmem:[#allocation6] sm:$0x1]  ;;  %v334_v14 = vld [vmem:[#allocation7 + $0x7] sm:$0x1] }
   0xc   :  { %2719 = vmatmul.mubr.msk.bf16.vlgmr.msra.gmra.mrb[0].mxu1 %vm207_vm2, %v338_v9  ;;  %2726 = vmatprep.mubr.msk.bf16.mxu0 %vm3002_vm0, %v3001_v1  ;;  %v189_v15 = vunpack.c.l.bf16 %v186_v13  ;;  %v337_v16 = vunpack.c.l.bf16 %v334_v14 }
   0xd   :  { %2734 = vmatprep.mubr.msk.bf16.mxu1 %vm3002_vm0, %v3001_v1  ;;  %414 = vrot.lane.b32.xlu1 %v2573_v11, %s3003_s28 }
   0xe   :  { %2723 = vmatpush3.bf16.msra.mxu0 %v2845_v51  ;;  %2731 = vmatpush3.bf16.msra.mxu1 %v2847_v56  ;;  %v2849_v56 = vld [vmem:[%s3640_s2] sm:$0xff]  }
   0xf   :  { %2724 = vmatprep.subr.bf16.mxu0 %v3001_v1  ;;  %2732 = vmatprep.subr.bf16.mxu1 %v3001_v1 }
  0x12   :  { %2725 = vmatpush3.bf16.msra.mxu0 %v2846_v55  ;;  %2733 = vmatpush3.bf16.msra.mxu1 %v2848_v62 }
  0x13   :  { %2738 = vmatprep.subr.bf16.mxu0 %v3001_v1  ;;  %2746 = vmatprep.subr.bf16.mxu1 %v3001_v1 }
  0x7b   :  { %v268_v41 = vpop.permute.xlu1 %267 }
  0x7f   :  { %v415_v43 = vpop.permute.xlu1 %414 }
  0xde   :  { %v245_v17 = vpop.f32.mrb[0].mxu0 }
  0xdf   :  { %v392_v18 = vpop.f32.mrb[0].mxu1  ;;  %v251_v19 = vadd.f32 %v245_v17, %v189_v15  ;;  %v2712_v20 = vpop.f32.mrb[1].mxu0  ;;  %v2562_v15 = vld [vmem:[%s3639_s1 + $0xd] sm:$0x1] }
  0xe0   :  { %v398_v21 = vadd.f32 %v392_v18, %v337_v16  ;;  %v2720_v22 = vpop.f32.mrb[1].mxu1  ;;  %v248_v23 = vpop.f32.mrb[2].mxu0  ;;  %115 = vst [vmem:[#allocation7 + $0x6] sm:$0x1] %v2562_v15  ;;  %v480_v16 = vld [vmem:[#allocation6 + $0x1] sm:$0x1] }
  0xe1   :  { %v395_v24 = vpop.f32.mrb[2].mxu1  ;;  %2873 = vtanh.f32 %v251_v19  ;;  %v2713_v25 = vpop.f32.mrb[3].mxu0  ;;  %v2567_v29 = vmul.f32 -1.442695, %v251_v19  ;;  %v483_v17 = vunpack.c.l.bf16 %v480_v16 }
  0xe2   :  { %v2721_v26 = vpop.f32.mrb[3].mxu1  ;;  %2875 = vtanh.f32 %v398_v21  ;;  %v2572_v30 = vmul.f32 -1.442695, %v398_v21 }
  0xe3   :  { %2877 = vpow2.f32 %v2567_v29 }
  0xe4   :  { %2879 = vpow2.f32 %v2572_v30 }
  0xe7   :  { %v626_v18 = vld [vmem:[#allocation7 + $0x6] sm:$0x1] }
  0xe8   :  { %v629_v22 = vunpack.c.l.bf16 %v626_v18  ;;  %v2561_v18 = vld [vmem:[%s3639_s1 + $0xb] sm:$0x1] }
  0xe9   :  { %113 = vst [vmem:[#allocation7 + $0x5] sm:$0x1] %v2561_v18 }
  0xeb   :  { %v2874_v27 = vpop.eup %2873 }
  0xec   :  { %272 = vrot.lane.b32.xlu0 %v2874_v27, %s3004_s6  ;;  %v2876_v28 = vpop.eup %2875 }
  0xed   :  { %v2878_v31 = vpop.eup %2877 }
  0xee   :  { %v255_v32 = vadd.f32 1.0, %v2878_v31  ;;  %v2880_v33 = vpop.eup %2879 }
  0xef   :  { %v402_v34 = vadd.f32 1.0, %v2880_v33 }
  0xf0   :  { %419 = vrot.lane.b32.xlu0 %v2876_v28, %s3004_s6  ;;  %2881 = vrcp.f32 %v255_v32 }
  0xf1   :  { %2883 = vrcp.f32 %v402_v34 }
  0xfa   :  { %v2882_v35 = vpop.eup %2881 }
  0xfb   :  { %v2884_v38 = vpop.eup %2883  ;;  %v270_v42 = vmul.f32 %v2882_v35, %v268_v41 }
  0xfc   :  { %v417_v46 = vmul.f32 %v2884_v38, %v415_v43 }
 0x15e   :  { %v273_v36 = vpop.permute.xlu0 %272 }
 0x15f   :  { %v275_v37 = vmul.f32 %v2882_v35, %v273_v36 }
 0x161   :  { %277 = vrot.lane.b32.xlu0 %v275_v37, %s3003_s28 }
 0x162   :  { %v420_v39 = vpop.permute.xlu0 %419 }
 0x163   :  { %v422_v40 = vmul.f32 %v2884_v38, %v420_v39 }
 0x165   :  { %424 = vrot.lane.b32.xlu1 %v422_v40, %s3003_s28 }
 0x1d3   :  { %v278_v44 = vpop.permute.xlu0 %277 }
 0x1d4   :  { %v280_v45 = vadd.f32 %v278_v44, %v270_v42 }
 0x1d6   :  { %2885 = vtanh.f32 %v280_v45  ;;  %v307_v4 = vrot.slane %v280_v45, %v3103_v60 }
 0x1d7   :  { %v425_v47 = vpop.permute.xlu1 %424 }
 0x1d8   :  { %v427_v48 = vadd.f32 %v425_v47, %v417_v46 }
 0x1da   :  { %2887 = vtanh.f32 %v427_v48  ;;  %v453_v6 = vrot.slane %v427_v48, %v3103_v60 }
 0x1e0   :  { %v2886_v49 = vpop.eup %2885 }
 0x1e1   :  { %283 = vrot.lane.b32.xlu0 %v2886_v49, %s3004_s6 }
 0x1e4   :  { %v2888_v50 = vpop.eup %2887 }
 0x1e5   :  { %430 = vrot.lane.b32.xlu1 %v2888_v50, %s3004_s6 }
 0x253   :  { %v284_v59 = vpop.permute.xlu0 %283 }
 0x254   :  { %v3105_v61 = vmul.f32 %v2882_v35, %v284_v59  ;;  %v2851_v59 = vld [vmem:[%s3641_s3] sm:$0xff]  }
 0x256   :  { %v294_v63 = vrot.slane %v3105_v61, %v3103_v60 }
 0x257   :  { %v431_v0 = vpop.permute.xlu1 %430 }
 0x258   :  { %v3113_v2 = vmul.f32 %v2884_v38, %v431_v0  ;;  %295 = vrot.lane.b32.xlu0 %v294_v63, %s3003_s28  ;;  %v2852_v0 = vld [vmem:[%s3641_s3 + $0x8] sm:$0xff]  }
 0x25a   :  { %v441_v5 = vrot.slane %v3113_v2, %v3103_v60 }
 0x25c   :  { %442 = vrot.lane.b32.xlu1 %v441_v5, %s3003_s28  ;;  %308 = vrot.lane.b32.xlu0 %v307_v4, %s3006_s17 }
 0x260   :  { %454 = vrot.lane.b32.xlu1 %v453_v6, %s3006_s17  ;;  %v32_v6 = vld [vmem:[%s3638_s0 + $0x4] sm:$0x1] }
 0x261   :  { %33 = vst [vmem:[#allocation6 + $0x2] sm:$0x1] %v32_v6 }
 0x2ca   :  { %v296_v7 = vpop.permute.xlu0 %295 }
 0x2cb   :  { %299 = vst.msk [vmem:[#allocation2] sm:$0x3] %vm181_vm1, %v296_v7 }
 0x2ce   :  { %v443_v8 = vpop.permute.xlu1 %442  ;;  %v309_v9 = vpop.permute.xlu0 %308 }
 0x2cf   :  { %445 = vst.msk [vmem:[#allocation4] sm:$0x3] %vm181_vm1, %v443_v8  ;;  %311 = vst.msk [vmem:[#allocation3] sm:$0x3] %vm181_vm1, %v309_v9 }
 0x2d2   :  { %v455_v10 = vpop.permute.xlu1 %454  ;;  %v481_v11 = vld [vmem:[#allocation2] sm:$0x3] }
 0x2d3   :  { %457 = vst.msk [vmem:[#allocation5] sm:$0x3] %vm181_vm1, %v455_v10  ;;  %v484_v12 = vpack.c.bf16 %v481_v11, %v481_v11 }
 0x2d5   :  { %2727 = vmatmul.mubr.msk.bf16.vlgmr.msra.gmra.mrb[4].mxu0 %vm207_vm2, %v484_v12 }
 0x2d6   :  { %v627_v13 = vld [vmem:[#allocation4] sm:$0x3]  ;;  %2742 = vmatprep.mubr.msk.bf16.mxu0 %vm3002_vm0, %v3001_v1  ;;  %v2579_v32 = vld.sshfl [vmem:[#allocation3] sm:$0x3 pattern:$0x76325410]  ;;  %2739 = vmatpush3.bf16.msra.mxu0 %v2849_v56 }
 0x2d7   :  { %v630_v14 = vpack.c.bf16 %v627_v13, %v627_v13  ;;  %2740 = vmatprep.subr.bf16.mxu0 %v3001_v1 }
 0x2d9   :  { %2735 = vmatmul.mubr.msk.bf16.vlgmr.msra.gmra.mrb[4].mxu1 %vm207_vm2, %v630_v14 }
 0x2da   :  { %2750 = vmatprep.mubr.msk.bf16.mxu1 %vm3002_vm0, %v3001_v1  ;;  %v2585_v33 = vld.sshfl [vmem:[#allocation5] sm:$0x3 pattern:$0x76325410]  ;;  %2741 = vmatpush3.bf16.msra.mxu0 %v2850_v57 }
 0x2db   :  { %2747 = vmatpush3.bf16.msra.mxu1 %v2851_v59  ;;  %2754 = vmatprep.subr.bf16.mxu0 %v3001_v1 }
 0x2dc   :  { %2748 = vmatprep.subr.bf16.mxu1 %v3001_v1 }
 0x2df   :  { %2749 = vmatpush3.bf16.msra.mxu1 %v2852_v0  ;;  %v2854_v0 = vld [vmem:[%s3640_s2 + $0x8] sm:$0xff]  }
 0x2e0   :  { %2762 = vmatprep.subr.bf16.mxu1 %v3001_v1 }
 0x3a8   :  { %v538_v19 = vpop.f32.mrb[4].mxu0 }
 0x3a9   :  { %v544_v20 = vadd.f32 %v538_v19, %v483_v17  ;;  %v2728_v21 = vpop.f32.mrb[5].mxu0  ;;  %v772_v19 = vld [vmem:[#allocation6 + $0x2] sm:$0x1] }
 0x3aa   :  { %v541_v23 = vpop.f32.mrb[6].mxu0  ;;  %v918_v21 = vld [vmem:[#allocation7 + $0x5] sm:$0x1] }
 0x3ab   :  { %2889 = vtanh.f32 %v544_v20  ;;  %v2729_v24 = vpop.f32.mrb[7].mxu0  ;;  %v2578_v34 = vmul.f32 -1.442695, %v544_v20  ;;  %v775_v20 = vunpack.c.l.bf16 %v772_v19 }
 0x3ac   :  { %v684_v25 = vpop.f32.mrb[4].mxu1 }
 0x3ad   :  { %v690_v26 = vadd.f32 %v684_v25, %v629_v22  ;;  %v2736_v27 = vpop.f32.mrb[5].mxu1  ;;  %v921_v25 = vunpack.c.l.bf16 %v918_v21 }
 0x3ae   :  { %v687_v28 = vpop.f32.mrb[6].mxu1 }
 0x3af   :  { %2891 = vtanh.f32 %v690_v26  ;;  %v2737_v29 = vpop.f32.mrb[7].mxu1  ;;  %v2584_v35 = vmul.f32 -1.442695, %v690_v26 }
 0x3b0   :  { %2893 = vpow2.f32 %v2578_v34 }
 0x3b1   :  { %2895 = vpow2.f32 %v2584_v35 }
 0x3b5   :  { %v2890_v30 = vpop.eup %2889 }
 0x3b6   :  { %565 = vrot.lane.b32.xlu0 %v2890_v30, %s3004_s6 }
 0x3b9   :  { %v2892_v31 = vpop.eup %2891 }
 0x3ba   :  { %711 = vrot.lane.b32.xlu1 %v2892_v31, %s3004_s6  ;;  %560 = vrot.lane.b32.xlu0 %v2579_v32, %s3003_s28  ;;  %v2894_v36 = vpop.eup %2893 }
 0x3bb   :  { %v548_v37 = vadd.f32 1.0, %v2894_v36  ;;  %v2896_v38 = vpop.eup %2895 }
 0x3bc   :  { %v694_v39 = vadd.f32 1.0, %v2896_v38 }
 0x3bd   :  { %2897 = vrcp.f32 %v548_v37 }
 0x3be   :  { %706 = vrot.lane.b32.xlu1 %v2585_v33, %s3003_s28  ;;  %2899 = vrcp.f32 %v694_v39 }
 0x3c7   :  { %v2898_v40 = vpop.eup %2897 }
 0x3c8   :  { %v2900_v43 = vpop.eup %2899 }
 0x428   :  { %v566_v41 = vpop.permute.xlu0 %565 }
 0x429   :  { %v568_v42 = vmul.f32 %v2898_v40, %v566_v41 }
 0x42b   :  { %570 = vrot.lane.b32.xlu0 %v568_v42, %s3003_s28 }
 0x42c   :  { %v712_v44 = vpop.permute.xlu1 %711  ;;  %v561_v46 = vpop.permute.xlu0 %560 }
 0x42d   :  { %v714_v45 = vmul.f32 %v2900_v43, %v712_v44  ;;  %v563_v47 = vmul.f32 %v2898_v40, %v561_v46 }
 0x42f   :  { %716 = vrot.lane.b32.xlu1 %v714_v45, %s3003_s28 }
 0x430   :  { %v707_v48 = vpop.permute.xlu1 %706 }
 0x431   :  { %v709_v51 = vmul.f32 %v2900_v43, %v707_v48 }
 0x49d   :  { %v571_v49 = vpop.permute.xlu0 %570 }
 0x49e   :  { %v573_v50 = vadd.f32 %v571_v49, %v563_v47 }
 0x4a0   :  { %2901 = vtanh.f32 %v573_v50  ;;  %v599_v7 = vrot.slane %v573_v50, %v3103_v60 }
 0x4a1   :  { %v717_v52 = vpop.permute.xlu1 %716 }
 0x4a2   :  { %v719_v53 = vadd.f32 %v717_v52, %v709_v51 }
 0x4a4   :  { %2903 = vtanh.f32 %v719_v53  ;;  %v745_v9 = vrot.slane %v719_v53, %v3103_v60 }
 0x4aa   :  { %v2902_v54 = vpop.eup %2901 }
 0x4ab   :  { %576 = vrot.lane.b32.xlu0 %v2902_v54, %s3004_s6 }
 0x4ae   :  { %v2904_v55 = vpop.eup %2903 }
 0x4af   :  { %722 = vrot.lane.b32.xlu1 %v2904_v55, %s3004_s6 }
 0x51d   :  { %v577_v62 = vpop.permute.xlu0 %576 }
 0x51e   :  { %v3159_v63 = vmul.f32 %v2898_v40, %v577_v62  ;;  %v2853_v62 = vld [vmem:[%s3640_s2] sm:$0xff]  }
 0x520   :  { %v587_v3 = vrot.slane %v3159_v63, %v3103_v60 }
 0x521   :  { %v723_v4 = vpop.permute.xlu1 %722 }
 0x522   :  { %v3167_v5 = vmul.f32 %v2900_v43, %v723_v4  ;;  %588 = vrot.lane.b32.xlu0 %v587_v3, %s3003_s28  ;;  %v2855_v3 = vld [vmem:[%s3641_s3] sm:$0xff]  }
 0x524   :  { %v733_v8 = vrot.slane %v3167_v5, %v3103_v60 }
 0x526   :  { %734 = vrot.lane.b32.xlu1 %v733_v8, %s3003_s28  ;;  %600 = vrot.lane.b32.xlu0 %v599_v7, %s3006_s17  ;;  %v2856_v7 = vld [vmem:[%s3641_s3 + $0x8] sm:$0xff]  }
 0x52a   :  { %746 = vrot.lane.b32.xlu1 %v745_v9, %s3006_s17 }
 0x594   :  { %v589_v10 = vpop.permute.xlu0 %588 }
 0x595   :  { %591 = vst.msk [vmem:[#allocation2] sm:$0x3] %vm181_vm1, %v589_v10 }
 0x598   :  { %v735_v11 = vpop.permute.xlu1 %734  ;;  %v601_v12 = vpop.permute.xlu0 %600 }
 0x599   :  { %737 = vst.msk [vmem:[#allocation4] sm:$0x3] %vm181_vm1, %v735_v11  ;;  %603 = vst.msk [vmem:[#allocation3] sm:$0x3] %vm181_vm1, %v601_v12  ;;  %v34_v11 = vld [vmem:[%s3638_s0 + $0x6] sm:$0x1] }
 0x59a   :  { %35 = vst [vmem:[#allocation6 + $0x3] sm:$0x1] %v34_v11  ;;  %v2859_v11 = vld [vmem:[%s3641_s3] sm:$0xff]  }
 0x59c   :  { %v747_v13 = vpop.permute.xlu1 %746  ;;  %v773_v14 = vld [vmem:[#allocation2] sm:$0x3] }
 0x59d   :  { %749 = vst.msk [vmem:[#allocation5] sm:$0x3] %vm181_vm1, %v747_v13  ;;  %v776_v15 = vpack.c.bf16 %v773_v14, %v773_v14 }
 0x59f   :  { %2743 = vmatmul.mubr.msk.bf16.vlgmr.msra.gmra.mrb[8].mxu0 %vm207_vm2, %v776_v15 }
 0x5a0   :  { %v919_v16 = vld [vmem:[#allocation4] sm:$0x3]  ;;  %2758 = vmatprep.mubr.msk.bf16.mxu0 %vm3002_vm0, %v3001_v1  ;;  %v2591_v35 = vld.sshfl [vmem:[#allocation3] sm:$0x3 pattern:$0x76325410]  ;;  %2755 = vmatpush3.bf16.msra.mxu0 %v2853_v62 }
 0x5a1   :  { %v922_v17 = vpack.c.bf16 %v919_v16, %v919_v16  ;;  %2756 = vmatprep.subr.bf16.mxu0 %v3001_v1 }
 0x5a3   :  { %2751 = vmatmul.mubr.msk.bf16.vlgmr.msra.gmra.mrb[8].mxu1 %vm207_vm2, %v922_v17 }
 0x5a4   :  { %2766 = vmatprep.mubr.msk.bf16.mxu1 %vm3002_vm0, %v3001_v1  ;;  %v2597_v36 = vld.sshfl [vmem:[#allocation5] sm:$0x3 pattern:$0x76325410]  ;;  %2757 = vmatpush3.bf16.msra.mxu0 %v2854_v0 }
 0x5a5   :  { %2763 = vmatpush3.bf16.msra.mxu1 %v2855_v3  ;;  %2770 = vmatprep.subr.bf16.mxu0 %v3001_v1 }
 0x5a6   :  { %2764 = vmatprep.subr.bf16.mxu1 %v3001_v1 }
 0x5a9   :  { %2765 = vmatpush3.bf16.msra.mxu1 %v2856_v7 }
 0x5aa   :  { %2778 = vmatprep.subr.bf16.mxu1 %v3001_v1 }
 0x672   :  { %v830_v22 = vpop.f32.mrb[8].mxu0 }
 0x673   :  { %v836_v23 = vadd.f32 %v830_v22, %v775_v20  ;;  %v2744_v24 = vpop.f32.mrb[9].mxu0 }
 0x674   :  { %v833_v26 = vpop.f32.mrb[10].mxu0  ;;  %v1064_v24 = vld [vmem:[#allocation6 + $0x3] sm:$0x1] }
 0x675   :  { %2905 = vtanh.f32 %v836_v23  ;;  %v2745_v27 = vpop.f32.mrb[11].mxu0  ;;  %v2590_v37 = vmul.f32 -1.442695, %v836_v23  ;;  %v2560_v23 = vld [vmem:[%s3639_s1 + $0x9] sm:$0x1] }
 0x676   :  { %v976_v28 = vpop.f32.mrb[8].mxu1  ;;  %111 = vst [vmem:[#allocation7 + $0x4] sm:$0x1] %v2560_v23 }
 0x677   :  { %v982_v29 = vadd.f32 %v976_v28, %v921_v25  ;;  %v2752_v30 = vpop.f32.mrb[9].mxu1  ;;  %v1067_v25 = vunpack.c.l.bf16 %v1064_v24 }
 0x678   :  { %v979_v31 = vpop.f32.mrb[10].mxu1 }
 0x679   :  { %2907 = vtanh.f32 %v982_v29  ;;  %v2753_v32 = vpop.f32.mrb[11].mxu1  ;;  %v2596_v38 = vmul.f32 -1.442695, %v982_v29 }
 0x67a   :  { %2909 = vpow2.f32 %v2590_v37 }
 0x67b   :  { %2911 = vpow2.f32 %v2596_v38 }
 0x67d   :  { %v1210_v26 = vld [vmem:[#allocation7 + $0x4] sm:$0x1] }
 0x67e   :  { %v1213_v30 = vunpack.c.l.bf16 %v1210_v26 }
 0x67f   :  { %v2906_v33 = vpop.eup %2905 }
 0x680   :  { %857 = vrot.lane.b32.xlu0 %v2906_v33, %s3004_s6 }
 0x683   :  { %v2908_v34 = vpop.eup %2907 }
 0x684   :  { %1003 = vrot.lane.b32.xlu1 %v2908_v34, %s3004_s6  ;;  %852 = vrot.lane.b32.xlu0 %v2591_v35, %s3003_s28  ;;  %v2910_v39 = vpop.eup %2909 }
 0x685   :  { %v840_v40 = vadd.f32 1.0, %v2910_v39  ;;  %v2912_v41 = vpop.eup %2911 }
 0x686   :  { %v986_v42 = vadd.f32 1.0, %v2912_v41 }
 0x687   :  { %2913 = vrcp.f32 %v840_v40 }
 0x688   :  { %998 = vrot.lane.b32.xlu1 %v2597_v36, %s3003_s28  ;;  %2915 = vrcp.f32 %v986_v42 }
 0x691   :  { %v2914_v43 = vpop.eup %2913 }
 0x692   :  { %v2916_v46 = vpop.eup %2915 }
 0x6f2   :  { %v858_v44 = vpop.permute.xlu0 %857 }
 0x6f3   :  { %v860_v45 = vmul.f32 %v2914_v43, %v858_v44 }
 0x6f5   :  { %862 = vrot.lane.b32.xlu0 %v860_v45, %s3003_s28 }
 0x6f6   :  { %v1004_v47 = vpop.permute.xlu1 %1003  ;;  %v853_v49 = vpop.permute.xlu0 %852 }
 0x6f7   :  { %v1006_v48 = vmul.f32 %v2916_v46, %v1004_v47  ;;  %v855_v50 = vmul.f32 %v2914_v43, %v853_v49 }
 0x6f9   :  { %1008 = vrot.lane.b32.xlu1 %v1006_v48, %s3003_s28 }
 0x6fa   :  { %v999_v51 = vpop.permute.xlu1 %998 }
 0x6fb   :  { %v1001_v54 = vmul.f32 %v2916_v46, %v999_v51 }
 0x767   :  { %v863_v52 = vpop.permute.xlu0 %862 }
 0x768   :  { %v865_v53 = vadd.f32 %v863_v52, %v855_v50 }
 0x76a   :  { %2917 = vtanh.f32 %v865_v53  ;;  %v891_v12 = vrot.slane %v865_v53, %v3103_v60 }
 0x76b   :  { %v1009_v55 = vpop.permute.xlu1 %1008 }
 0x76c   :  { %v1011_v56 = vadd.f32 %v1009_v55, %v1001_v54 }
 0x76e   :  { %2919 = vtanh.f32 %v1011_v56  ;;  %v1037_v14 = vrot.slane %v1011_v56, %v3103_v60 }
 0x774   :  { %v2918_v57 = vpop.eup %2917 }
 0x775   :  { %868 = vrot.lane.b32.xlu0 %v2918_v57, %s3004_s6 }
 0x778   :  { %v2920_v59 = vpop.eup %2919 }
 0x779   :  { %1014 = vrot.lane.b32.xlu1 %v2920_v59, %s3004_s6 }
 0x7e7   :  { %v869_v4 = vpop.permute.xlu0 %868 }
 0x7e8   :  { %v3213_v6 = vmul.f32 %v2914_v43, %v869_v4 }
 0x7ea   :  { %v879_v8 = vrot.slane %v3213_v6, %v3103_v60 }
 0x7eb   :  { %v1015_v9 = vpop.permute.xlu1 %1014 }
 0x7ec   :  { %v3221_v10 = vmul.f32 %v2916_v46, %v1015_v9  ;;  %880 = vrot.lane.b32.xlu0 %v879_v8, %s3003_s28  ;;  %v2857_v8 = vld [vmem:[%s3640_s2] sm:$0xff]   ;;  %v2858_v9 = vld [vmem:[%s3640_s2 + $0x8] sm:$0xff]  }
 0x7ee   :  { %v1025_v13 = vrot.slane %v3221_v10, %v3103_v60 }
 0x7f0   :  { %1026 = vrot.lane.b32.xlu1 %v1025_v13, %s3003_s28  ;;  %892 = vrot.lane.b32.xlu0 %v891_v12, %s3006_s17 }
 0x7f4   :  { %1038 = vrot.lane.b32.xlu1 %v1037_v14, %s3006_s17  ;;  %v2860_v14 = vld [vmem:[%s3641_s3 + $0x8] sm:$0xff]  }
 0x85e   :  { %v881_v15 = vpop.permute.xlu0 %880 }
 0x85f   :  { %883 = vst.msk [vmem:[#allocation2] sm:$0x3] %vm181_vm1, %v881_v15 }
 0x862   :  { %v1027_v16 = vpop.permute.xlu1 %1026  ;;  %v893_v17 = vpop.permute.xlu0 %892 }
 0x863   :  { %1029 = vst.msk [vmem:[#allocation4] sm:$0x3] %vm181_vm1, %v1027_v16  ;;  %895 = vst.msk [vmem:[#allocation3] sm:$0x3] %vm181_vm1, %v893_v17 }
 0x866   :  { %v1039_v18 = vpop.permute.xlu1 %1038  ;;  %v1065_v19 = vld [vmem:[#allocation2] sm:$0x3] }
 0x867   :  { %1041 = vst.msk [vmem:[#allocation5] sm:$0x3] %vm181_vm1, %v1039_v18  ;;  %v1068_v20 = vpack.c.bf16 %v1065_v19, %v1065_v19  ;;  %v36_v18 = vld [vmem:[%s3638_s0 + $0x8] sm:$0x1] }
 0x868   :  { %37 = vst [vmem:[#allocation6 + $0x4] sm:$0x1] %v36_v18  ;;  %v2861_v18 = vld [vmem:[%s3640_s2] sm:$0xff]  }
 0x869   :  { %2759 = vmatmul.mubr.msk.bf16.vlgmr.msra.gmra.mrb[12].mxu0 %vm207_vm2, %v1068_v20 }
 0x86a   :  { %v1211_v21 = vld [vmem:[#allocation4] sm:$0x3]  ;;  %2774 = vmatprep.mubr.msk.bf16.mxu0 %vm3002_vm0, %v3001_v1  ;;  %v2603_v40 = vld.sshfl [vmem:[#allocation3] sm:$0x3 pattern:$0x76325410]  ;;  %2771 = vmatpush3.bf16.msra.mxu0 %v2857_v8 }
 0x86b   :  { %v1214_v22 = vpack.c.bf16 %v1211_v21, %v1211_v21  ;;  %2772 = vmatprep.subr.bf16.mxu0 %v3001_v1 }
 0x86d   :  { %2767 = vmatmul.mubr.msk.bf16.vlgmr.msra.gmra.mrb[12].mxu1 %vm207_vm2, %v1214_v22 }
 0x86e   :  { %2782 = vmatprep.mubr.msk.bf16.mxu1 %vm3002_vm0, %v3001_v1  ;;  %v2609_v41 = vld.sshfl [vmem:[#allocation5] sm:$0x3 pattern:$0x76325410]  ;;  %2773 = vmatpush3.bf16.msra.mxu0 %v2858_v9 }
 0x86f   :  { %2779 = vmatpush3.bf16.msra.mxu1 %v2859_v11  ;;  %2786 = vmatprep.subr.bf16.mxu0 %v3001_v1 }
 0x870   :  { %2780 = vmatprep.subr.bf16.mxu1 %v3001_v1 }
 0x873   :  { %2781 = vmatpush3.bf16.msra.mxu1 %v2860_v14 }
 0x874   :  { %2794 = vmatprep.subr.bf16.mxu1 %v3001_v1 }
 0x93c   :  { %v1122_v27 = vpop.f32.mrb[12].mxu0 }
 0x93d   :  { %v1128_v28 = vadd.f32 %v1122_v27, %v1067_v25  ;;  %v2760_v29 = vpop.f32.mrb[13].mxu0 }
 0x93e   :  { %v1125_v31 = vpop.f32.mrb[14].mxu0 }
 0x93f   :  { %2921 = vtanh.f32 %v1128_v28  ;;  %v2761_v32 = vpop.f32.mrb[15].mxu0  ;;  %v2602_v42 = vmul.f32 -1.442695, %v1128_v28  ;;  %v1356_v31 = vld [vmem:[#allocation6 + $0x4] sm:$0x1] }
 0x940   :  { %v1268_v33 = vpop.f32.mrb[12].mxu1  ;;  %v1359_v32 = vunpack.c.l.bf16 %v1356_v31 }
 0x941   :  { %v1274_v34 = vadd.f32 %v1268_v33, %v1213_v30  ;;  %v2768_v35 = vpop.f32.mrb[13].mxu1  ;;  %v2559_v30 = vld [vmem:[%s3639_s1 + $0x7] sm:$0x1] }
 0x942   :  { %v1271_v36 = vpop.f32.mrb[14].mxu1  ;;  %109 = vst [vmem:[#allocation7 + $0x3] sm:$0x1] %v2559_v30 }
 0x943   :  { %2923 = vtanh.f32 %v1274_v34  ;;  %v2769_v37 = vpop.f32.mrb[15].mxu1  ;;  %v2608_v43 = vmul.f32 -1.442695, %v1274_v34 }
 0x944   :  { %2925 = vpow2.f32 %v2602_v42 }
 0x945   :  { %2927 = vpow2.f32 %v2608_v43 }
 0x949   :  { %v2922_v38 = vpop.eup %2921  ;;  %v1502_v33 = vld [vmem:[#allocation7 + $0x3] sm:$0x1] }
 0x94a   :  { %1149 = vrot.lane.b32.xlu0 %v2922_v38, %s3004_s6  ;;  %v1505_v37 = vunpack.c.l.bf16 %v1502_v33 }
 0x94d   :  { %v2924_v39 = vpop.eup %2923 }
 0x94e   :  { %1295 = vrot.lane.b32.xlu1 %v2924_v39, %s3004_s6  ;;  %1144 = vrot.lane.b32.xlu0 %v2603_v40, %s3003_s28  ;;  %v2926_v44 = vpop.eup %2925 }
 0x94f   :  { %v1132_v45 = vadd.f32 1.0, %v2926_v44  ;;  %v2928_v46 = vpop.eup %2927 }
 0x950   :  { %v1278_v47 = vadd.f32 1.0, %v2928_v46 }
 0x951   :  { %2929 = vrcp.f32 %v1132_v45 }
 0x952   :  { %1290 = vrot.lane.b32.xlu1 %v2609_v41, %s3003_s28  ;;  %2931 = vrcp.f32 %v1278_v47 }
 0x95b   :  { %v2930_v48 = vpop.eup %2929 }
 0x95c   :  { %v2932_v51 = vpop.eup %2931 }
 0x9bc   :  { %v1150_v49 = vpop.permute.xlu0 %1149 }
 0x9bd   :  { %v1152_v50 = vmul.f32 %v2930_v48, %v1150_v49 }
 0x9bf   :  { %1154 = vrot.lane.b32.xlu0 %v1152_v50, %s3003_s28 }
 0x9c0   :  { %v1296_v52 = vpop.permute.xlu1 %1295  ;;  %v1145_v54 = vpop.permute.xlu0 %1144 }
 0x9c1   :  { %v1298_v53 = vmul.f32 %v2932_v51, %v1296_v52  ;;  %v1147_v55 = vmul.f32 %v2930_v48, %v1145_v54 }
 0x9c3   :  { %1300 = vrot.lane.b32.xlu1 %v1298_v53, %s3003_s28 }
 0x9c4   :  { %v1291_v56 = vpop.permute.xlu1 %1290 }
 0x9c5   :  { %v1293_v62 = vmul.f32 %v2932_v51, %v1291_v56 }
 0xa31   :  { %v1155_v57 = vpop.permute.xlu0 %1154 }
 0xa32   :  { %v1157_v59 = vadd.f32 %v1155_v57, %v1147_v55 }
 0xa34   :  { %2933 = vtanh.f32 %v1157_v59  ;;  %v1183_v19 = vrot.slane %v1157_v59, %v3103_v60 }
 0xa35   :  { %v1301_v0 = vpop.permute.xlu1 %1300 }
 0xa36   :  { %v1303_v3 = vadd.f32 %v1301_v0, %v1293_v62 }
 0xa38   :  { %2935 = vtanh.f32 %v1303_v3  ;;  %v1329_v21 = vrot.slane %v1303_v3, %v3103_v60 }
 0xa3e   :  { %v2934_v4 = vpop.eup %2933 }
 0xa3f   :  { %1160 = vrot.lane.b32.xlu0 %v2934_v4, %s3004_s6 }
 0xa42   :  { %v2936_v7 = vpop.eup %2935 }
 0xa43   :  { %1306 = vrot.lane.b32.xlu1 %v2936_v7, %s3004_s6 }
 0xab1   :  { %v1161_v12 = vpop.permute.xlu0 %1160 }
 0xab2   :  { %v3267_v13 = vmul.f32 %v2930_v48, %v1161_v12 }
 0xab4   :  { %v1171_v15 = vrot.slane %v3267_v13, %v3103_v60 }
 0xab5   :  { %v1307_v16 = vpop.permute.xlu1 %1306 }
 0xab6   :  { %v3275_v17 = vmul.f32 %v2932_v51, %v1307_v16  ;;  %1172 = vrot.lane.b32.xlu0 %v1171_v15, %s3003_s28 }
 0xab8   :  { %v1317_v20 = vrot.slane %v3275_v17, %v3103_v60 }
 0xaba   :  { %1318 = vrot.lane.b32.xlu1 %v1317_v20, %s3003_s28  ;;  %1184 = vrot.lane.b32.xlu0 %v1183_v19, %s3006_s17  ;;  %v2862_v19 = vld [vmem:[%s3640_s2 + $0x8] sm:$0xff]   ;;  %v2863_v20 = vld [vmem:[%s3641_s3] sm:$0xff]  }
 0xabe   :  { %1330 = vrot.lane.b32.xlu1 %v1329_v21, %s3006_s17 }
 0xb28   :  { %v1173_v22 = vpop.permute.xlu0 %1172 }
 0xb29   :  { %1175 = vst.msk [vmem:[#allocation2] sm:$0x3] %vm181_vm1, %v1173_v22 }
 0xb2c   :  { %v1319_v23 = vpop.permute.xlu1 %1318  ;;  %v1185_v24 = vpop.permute.xlu0 %1184 }
 0xb2d   :  { %1321 = vst.msk [vmem:[#allocation4] sm:$0x3] %vm181_vm1, %v1319_v23  ;;  %1187 = vst.msk [vmem:[#allocation3] sm:$0x3] %vm181_vm1, %v1185_v24  ;;  %v2864_v23 = vld [vmem:[%s3641_s3 + $0x8] sm:$0xff]  }
 0xb30   :  { %v1331_v25 = vpop.permute.xlu1 %1330  ;;  %v1357_v26 = vld [vmem:[#allocation2] sm:$0x3] }
 0xb31   :  { %1333 = vst.msk [vmem:[#allocation5] sm:$0x3] %vm181_vm1, %v1331_v25  ;;  %v1360_v27 = vpack.c.bf16 %v1357_v26, %v1357_v26 }
 0xb33   :  { %2775 = vmatmul.mubr.msk.bf16.vlgmr.msra.gmra.mrb[16].mxu0 %vm207_vm2, %v1360_v27  ;;  %v38_v27 = vld [vmem:[%s3638_s0 + $0xa] sm:$0x1] }
 0xb34   :  { %v1503_v28 = vld [vmem:[#allocation4] sm:$0x3]  ;;  %2790 = vmatprep.mubr.msk.bf16.mxu0 %vm3002_vm0, %v3001_v1  ;;  %v2615_v47 = vld.sshfl [vmem:[#allocation3] sm:$0x3 pattern:$0x76325410]  ;;  %2787 = vmatpush3.bf16.msra.mxu0 %v2861_v18 }
 0xb35   :  { %v1506_v29 = vpack.c.bf16 %v1503_v28, %v1503_v28  ;;  %2788 = vmatprep.subr.bf16.mxu0 %v3001_v1  ;;  %39 = vst [vmem:[#allocation6 + $0x5] sm:$0x1] %v38_v27 }
 0xb37   :  { %2783 = vmatmul.mubr.msk.bf16.vlgmr.msra.gmra.mrb[16].mxu1 %vm207_vm2, %v1506_v29 }
 0xb38   :  { %2798 = vmatprep.mubr.msk.bf16.mxu1 %vm3002_vm0, %v3001_v1  ;;  %v2621_v48 = vld.sshfl [vmem:[#allocation5] sm:$0x3 pattern:$0x76325410]  ;;  %2789 = vmatpush3.bf16.msra.mxu0 %v2862_v19 }
 0xb39   :  { %2795 = vmatpush3.bf16.msra.mxu1 %v2863_v20  ;;  %2802 = vmatprep.subr.bf16.mxu0 %v3001_v1 }
 0xb3a   :  { %2796 = vmatprep.subr.bf16.mxu1 %v3001_v1 }
 0xb3d   :  { %2797 = vmatpush3.bf16.msra.mxu1 %v2864_v23 }
 0xb3e   :  { %2810 = vmatprep.subr.bf16.mxu1 %v3001_v1 }
 0xc06   :  { %v1414_v34 = vpop.f32.mrb[16].mxu0 }
 0xc07   :  { %v1420_v35 = vadd.f32 %v1414_v34, %v1359_v32  ;;  %v2776_v36 = vpop.f32.mrb[17].mxu0 }
 0xc08   :  { %v1417_v38 = vpop.f32.mrb[18].mxu0 }
 0xc09   :  { %2937 = vtanh.f32 %v1420_v35  ;;  %v2777_v39 = vpop.f32.mrb[19].mxu0  ;;  %v2614_v49 = vmul.f32 -1.442695, %v1420_v35 }
 0xc0a   :  { %v1560_v40 = vpop.f32.mrb[16].mxu1  ;;  %v2558_v39 = vld [vmem:[%s3639_s1 + $0x5] sm:$0x1] }
 0xc0b   :  { %v1566_v41 = vadd.f32 %v1560_v40, %v1505_v37  ;;  %v2784_v42 = vpop.f32.mrb[17].mxu1  ;;  %107 = vst [vmem:[#allocation7 + $0x2] sm:$0x1] %v2558_v39  ;;  %v1648_v40 = vld [vmem:[#allocation6 + $0x5] sm:$0x1] }
 0xc0c   :  { %v1563_v43 = vpop.f32.mrb[18].mxu1 }
 0xc0d   :  { %2939 = vtanh.f32 %v1566_v41  ;;  %v2785_v44 = vpop.f32.mrb[19].mxu1  ;;  %v2620_v50 = vmul.f32 -1.442695, %v1566_v41  ;;  %v1651_v41 = vunpack.c.l.bf16 %v1648_v40 }
 0xc0e   :  { %2941 = vpow2.f32 %v2614_v49 }
 0xc0f   :  { %2943 = vpow2.f32 %v2620_v50 }
 0xc12   :  { %v1794_v42 = vld [vmem:[#allocation7 + $0x2] sm:$0x1] }
 0xc13   :  { %v2938_v45 = vpop.eup %2937 }
 0xc14   :  { %1441 = vrot.lane.b32.xlu0 %v2938_v45, %s3004_s6 }
 0xc17   :  { %v2940_v46 = vpop.eup %2939 }
 0xc18   :  { %1587 = vrot.lane.b32.xlu1 %v2940_v46, %s3004_s6  ;;  %1436 = vrot.lane.b32.xlu0 %v2615_v47, %s3003_s28  ;;  %v2942_v51 = vpop.eup %2941  ;;  %v1797_v46 = vunpack.c.l.bf16 %v1794_v42 }
 0xc19   :  { %v1424_v52 = vadd.f32 1.0, %v2942_v51  ;;  %v2944_v53 = vpop.eup %2943 }
 0xc1a   :  { %v1570_v54 = vadd.f32 1.0, %v2944_v53 }
 0xc1b   :  { %2945 = vrcp.f32 %v1424_v52 }
 0xc1c   :  { %1582 = vrot.lane.b32.xlu1 %v2621_v48, %s3003_s28  ;;  %2947 = vrcp.f32 %v1570_v54 }
 0xc25   :  { %v2946_v55 = vpop.eup %2945 }
 0xc26   :  { %v2948_v59 = vpop.eup %2947 }
 0xc86   :  { %v1442_v56 = vpop.permute.xlu0 %1441 }
 0xc87   :  { %v1444_v57 = vmul.f32 %v2946_v55, %v1442_v56 }
 0xc89   :  { %1446 = vrot.lane.b32.xlu0 %v1444_v57, %s3003_s28 }
 0xc8a   :  { %v1588_v62 = vpop.permute.xlu1 %1587  ;;  %v1437_v3 = vpop.permute.xlu0 %1436 }
 0xc8b   :  { %v1590_v0 = vmul.f32 %v2948_v59, %v1588_v62  ;;  %v1439_v4 = vmul.f32 %v2946_v55, %v1437_v3 }
 0xc8d   :  { %1592 = vrot.lane.b32.xlu1 %v1590_v0, %s3003_s28 }
 0xc8e   :  { %v1583_v7 = vpop.permute.xlu1 %1582 }
 0xc8f   :  { %v1585_v11 = vmul.f32 %v2948_v59, %v1583_v7 }
 0xcfb   :  { %v1447_v8 = vpop.permute.xlu0 %1446 }
 0xcfc   :  { %v1449_v9 = vadd.f32 %v1447_v8, %v1439_v4 }
 0xcfe   :  { %2949 = vtanh.f32 %v1449_v9  ;;  %v1475_v28 = vrot.slane %v1449_v9, %v3103_v60 }
 0xcff   :  { %v1593_v12 = vpop.permute.xlu1 %1592 }
 0xd00   :  { %v1595_v14 = vadd.f32 %v1593_v12, %v1585_v11 }
 0xd02   :  { %2951 = vtanh.f32 %v1595_v14  ;;  %v1621_v30 = vrot.slane %v1595_v14, %v3103_v60 }
 0xd08   :  { %v2950_v15 = vpop.eup %2949 }
 0xd09   :  { %1452 = vrot.lane.b32.xlu0 %v2950_v15, %s3004_s6 }
 0xd0c   :  { %v2952_v16 = vpop.eup %2951 }
 0xd0d   :  { %1598 = vrot.lane.b32.xlu1 %v2952_v16, %s3004_s6 }
 0xd7b   :  { %v1453_v21 = vpop.permute.xlu0 %1452 }
 0xd7c   :  { %v3321_v22 = vmul.f32 %v2946_v55, %v1453_v21 }
 0xd7e   :  { %v1463_v24 = vrot.slane %v3321_v22, %v3103_v60 }
 0xd7f   :  { %v1599_v25 = vpop.permute.xlu1 %1598 }
 0xd80   :  { %v3329_v26 = vmul.f32 %v2948_v59, %v1599_v25  ;;  %1464 = vrot.lane.b32.xlu0 %v1463_v24, %s3003_s28 }
 0xd82   :  { %v1609_v29 = vrot.slane %v3329_v26, %v3103_v60 }
 0xd84   :  { %1610 = vrot.lane.b32.xlu1 %v1609_v29, %s3003_s28  ;;  %1476 = vrot.lane.b32.xlu0 %v1475_v28, %s3006_s17  ;;  %v2865_v29 = vld [vmem:[%s3640_s2] sm:$0xff]  }
 0xd88   :  { %1622 = vrot.lane.b32.xlu1 %v1621_v30, %s3006_s17  ;;  %v2866_v30 = vld [vmem:[%s3640_s2 + $0x8] sm:$0xff]  }
 0xdf2   :  { %v1465_v31 = vpop.permute.xlu0 %1464 }
 0xdf3   :  { %1467 = vst.msk [vmem:[#allocation2] sm:$0x3] %vm181_vm1, %v1465_v31  ;;  %v2867_v31 = vld [vmem:[%s3641_s3] sm:$0xff]  }
 0xdf6   :  { %v1611_v32 = vpop.permute.xlu1 %1610  ;;  %v1477_v33 = vpop.permute.xlu0 %1476 }
 0xdf7   :  { %1613 = vst.msk [vmem:[#allocation4] sm:$0x3] %vm181_vm1, %v1611_v32  ;;  %1479 = vst.msk [vmem:[#allocation3] sm:$0x3] %vm181_vm1, %v1477_v33 }
 0xdfa   :  { %v1623_v34 = vpop.permute.xlu1 %1622  ;;  %v1649_v35 = vld [vmem:[#allocation2] sm:$0x3] }
 0xdfb   :  { %1625 = vst.msk [vmem:[#allocation5] sm:$0x3] %vm181_vm1, %v1623_v34  ;;  %v1652_v36 = vpack.c.bf16 %v1649_v35, %v1649_v35  ;;  %v2868_v34 = vld [vmem:[%s3641_s3 + $0x8] sm:$0xff]  }
 0xdfd   :  { %2791 = vmatmul.mubr.msk.bf16.vlgmr.msra.gmra.mrb[20].mxu0 %vm207_vm2, %v1652_v36 }
 0xdfe   :  { %v1795_v37 = vld [vmem:[#allocation4] sm:$0x3]  ;;  %2806 = vmatprep.mubr.msk.bf16.mxu0 %vm3002_vm0, %v3001_v1  ;;  %v2627_v56 = vld.sshfl [vmem:[#allocation3] sm:$0x3 pattern:$0x76325410]  ;;  %2803 = vmatpush3.bf16.msra.mxu0 %v2865_v29 }
 0xdff   :  { %v1798_v38 = vpack.c.bf16 %v1795_v37, %v1795_v37  ;;  %2804 = vmatprep.subr.bf16.mxu0 %v3001_v1 }
 0xe01   :  { %2799 = vmatmul.mubr.msk.bf16.vlgmr.msra.gmra.mrb[20].mxu1 %vm207_vm2, %v1798_v38  ;;  %v40_v38 = vld [vmem:[%s3638_s0 + $0xc] sm:$0x1] }
 0xe02   :  { %2814 = vmatprep.mubr.msk.bf16.mxu1 %vm3002_vm0, %v3001_v1  ;;  %v2633_v57 = vld.sshfl [vmem:[#allocation5] sm:$0x3 pattern:$0x76325410]  ;;  %2805 = vmatpush3.bf16.msra.mxu0 %v2866_v30  ;;  %41 = vst [vmem:[#allocation6 + $0x6] sm:$0x1] %v40_v38 }
 0xe03   :  { %2811 = vmatpush3.bf16.msra.mxu1 %v2867_v31  ;;  %2818 = vmatprep.subr.bf16.mxu0 %v3001_v1 }
 0xe04   :  { %2812 = vmatprep.subr.bf16.mxu1 %v3001_v1 }
 0xe07   :  { %2813 = vmatpush3.bf16.msra.mxu1 %v2868_v34 }
 0xe08   :  { %2826 = vmatprep.subr.bf16.mxu1 %v3001_v1 }
 0xed0   :  { %v1706_v43 = vpop.f32.mrb[20].mxu0 }
 0xed1   :  { %v1712_v44 = vadd.f32 %v1706_v43, %v1651_v41  ;;  %v2792_v45 = vpop.f32.mrb[21].mxu0 }
 0xed2   :  { %v1709_v47 = vpop.f32.mrb[22].mxu0 }
 0xed3   :  { %2953 = vtanh.f32 %v1712_v44  ;;  %v2793_v48 = vpop.f32.mrb[23].mxu0  ;;  %v2626_v59 = vmul.f32 -1.442695, %v1712_v44 }
 0xed4   :  { %v1852_v49 = vpop.f32.mrb[20].mxu1 }
 0xed5   :  { %v1858_v50 = vadd.f32 %v1852_v49, %v1797_v46  ;;  %v2800_v51 = vpop.f32.mrb[21].mxu1 }
 0xed6   :  { %v1855_v52 = vpop.f32.mrb[22].mxu1  ;;  %v1940_v51 = vld [vmem:[#allocation6 + $0x6] sm:$0x1] }
 0xed7   :  { %2955 = vtanh.f32 %v1858_v50  ;;  %v2801_v53 = vpop.f32.mrb[23].mxu1  ;;  %v2632_v62 = vmul.f32 -1.442695, %v1858_v50  ;;  %v2557_v50 = vld [vmem:[%s3639_s1 + $0x3] sm:$0x1]  ;;  %v1943_v52 = vunpack.c.l.bf16 %v1940_v51 }
 0xed8   :  { %2957 = vpow2.f32 %v2626_v59  ;;  %105 = vst [vmem:[#allocation7 + $0x1] sm:$0x1] %v2557_v50 }
 0xed9   :  { %2959 = vpow2.f32 %v2632_v62 }
 0xedd   :  { %v2954_v54 = vpop.eup %2953 }
 0xede   :  { %1733 = vrot.lane.b32.xlu0 %v2954_v54, %s3004_s6 }
 0xedf   :  { %v2086_v53 = vld [vmem:[#allocation7 + $0x1] sm:$0x1] }
 0xee1   :  { %v2956_v55 = vpop.eup %2955 }
 0xee2   :  { %1879 = vrot.lane.b32.xlu1 %v2956_v55, %s3004_s6  ;;  %1728 = vrot.lane.b32.xlu0 %v2627_v56, %s3003_s28  ;;  %v2958_v0 = vpop.eup %2957 }
 0xee3   :  { %v1716_v3 = vadd.f32 1.0, %v2958_v0  ;;  %v2960_v4 = vpop.eup %2959 }
 0xee4   :  { %v1862_v7 = vadd.f32 1.0, %v2960_v4 }
 0xee5   :  { %2961 = vrcp.f32 %v1716_v3 }
 0xee6   :  { %1874 = vrot.lane.b32.xlu1 %v2633_v57, %s3003_s28  ;;  %2963 = vrcp.f32 %v1862_v7  ;;  %v2089_v57 = vunpack.c.l.bf16 %v2086_v53 }
 0xeef   :  { %v2962_v8 = vpop.eup %2961 }
 0xef0   :  { %v2964_v12 = vpop.eup %2963 }
 0xf50   :  { %v1734_v9 = vpop.permute.xlu0 %1733 }
 0xf51   :  { %v1736_v11 = vmul.f32 %v2962_v8, %v1734_v9 }
 0xf53   :  { %1738 = vrot.lane.b32.xlu0 %v1736_v11, %s3003_s28 }
 0xf54   :  { %v1880_v14 = vpop.permute.xlu1 %1879  ;;  %v1729_v16 = vpop.permute.xlu0 %1728 }
 0xf55   :  { %v1882_v15 = vmul.f32 %v2964_v12, %v1880_v14  ;;  %v1731_v18 = vmul.f32 %v2962_v8, %v1729_v16 }
 0xf57   :  { %1884 = vrot.lane.b32.xlu1 %v1882_v15, %s3003_s28 }
 0xf58   :  { %v1875_v19 = vpop.permute.xlu1 %1874 }
 0xf59   :  { %v1877_v23 = vmul.f32 %v2964_v12, %v1875_v19 }
 0xfc5   :  { %v1739_v20 = vpop.permute.xlu0 %1738 }
 0xfc6   :  { %v1741_v21 = vadd.f32 %v1739_v20, %v1731_v18 }
 0xfc8   :  { %2965 = vtanh.f32 %v1741_v21  ;;  %v1767_v39 = vrot.slane %v1741_v21, %v3103_v60 }
 0xfc9   :  { %v1885_v24 = vpop.permute.xlu1 %1884 }
 0xfca   :  { %v1887_v25 = vadd.f32 %v1885_v24, %v1877_v23 }
 0xfcc   :  { %2967 = vtanh.f32 %v1887_v25  ;;  %v1913_v41 = vrot.slane %v1887_v25, %v3103_v60 }
 0xfd2   :  { %v2966_v27 = vpop.eup %2965 }
 0xfd3   :  { %1744 = vrot.lane.b32.xlu0 %v2966_v27, %s3004_s6 }
 0xfd6   :  { %v2968_v28 = vpop.eup %2967 }
 0xfd7   :  { %1890 = vrot.lane.b32.xlu1 %v2968_v28, %s3004_s6 }
0x1045   :  { %v1745_v32 = vpop.permute.xlu0 %1744 }
0x1046   :  { %v3375_v33 = vmul.f32 %v2962_v8, %v1745_v32 }
0x1048   :  { %v1755_v35 = vrot.slane %v3375_v33, %v3103_v60 }
0x1049   :  { %v1891_v36 = vpop.permute.xlu1 %1890 }
0x104a   :  { %v3383_v37 = vmul.f32 %v2964_v12, %v1891_v36  ;;  %1756 = vrot.lane.b32.xlu0 %v1755_v35, %s3003_s28 }
0x104c   :  { %v1901_v40 = vrot.slane %v3383_v37, %v3103_v60 }
0x104e   :  { %1902 = vrot.lane.b32.xlu1 %v1901_v40, %s3003_s28  ;;  %1768 = vrot.lane.b32.xlu0 %v1767_v39, %s3006_s17 }
0x1052   :  { %1914 = vrot.lane.b32.xlu1 %v1913_v41, %s3006_s17 }
0x10bc   :  { %v1757_v42 = vpop.permute.xlu0 %1756 }
0x10bd   :  { %1759 = vst.msk [vmem:[#allocation2] sm:$0x3] %vm181_vm1, %v1757_v42  ;;  %v2869_v42 = vld [vmem:[%s3640_s2] sm:$0xff]  }
0x10c0   :  { %v1903_v43 = vpop.permute.xlu1 %1902  ;;  %v1769_v44 = vpop.permute.xlu0 %1768 }
0x10c1   :  { %1905 = vst.msk [vmem:[#allocation4] sm:$0x3] %vm181_vm1, %v1903_v43  ;;  %1771 = vst.msk [vmem:[#allocation3] sm:$0x3] %vm181_vm1, %v1769_v44  ;;  %v2870_v43 = vld [vmem:[%s3640_s2 + $0x8] sm:$0xff]   ;;  %v2871_v44 = vld [vmem:[%s3641_s3] sm:$0xff]  }
0x10c4   :  { %v1915_v45 = vpop.permute.xlu1 %1914  ;;  %v1941_v46 = vld [vmem:[#allocation2] sm:$0x3] }
0x10c5   :  { %1917 = vst.msk [vmem:[#allocation5] sm:$0x3] %vm181_vm1, %v1915_v45  ;;  %v1944_v47 = vpack.c.bf16 %v1941_v46, %v1941_v46 }
0x10c7   :  { %2807 = vmatmul.mubr.msk.bf16.vlgmr.msra.gmra.mrb[24].mxu0 %vm207_vm2, %v1944_v47  ;;  %v2872_v47 = vld [vmem:[%s3641_s3 + $0x8] sm:$0xff]  }
0x10c8   :  { %v2087_v48 = vld [vmem:[#allocation4] sm:$0x3]  ;;  %2822 = vmatprep.mubr.msk.bf16.mxu0 %vm3002_vm0, %v3001_v1  ;;  %v2639_v12 = vld.sshfl [vmem:[#allocation3] sm:$0x3 pattern:$0x76325410]  ;;  %2819 = vmatpush3.bf16.msra.mxu0 %v2869_v42 }
0x10c9   :  { %v2090_v49 = vpack.c.bf16 %v2087_v48, %v2087_v48  ;;  %2820 = vmatprep.subr.bf16.mxu0 %v3001_v1 }
0x10cb   :  { %2815 = vmatmul.mubr.msk.bf16.vlgmr.msra.gmra.mrb[24].mxu1 %vm207_vm2, %v2090_v49 }
0x10cc   :  { %2830 = vmatprep.mubr.msk.bf16.mxu1 %vm3002_vm0, %v3001_v1  ;;  %v2645_v14 = vld.sshfl [vmem:[#allocation5] sm:$0x3 pattern:$0x76325410]  ;;  %2821 = vmatpush3.bf16.msra.mxu0 %v2870_v43 }
0x10cd   :  { %2827 = vmatpush3.bf16.msra.mxu1 %v2871_v44 }
0x10ce   :  { %2828 = vmatprep.subr.bf16.mxu1 %v3001_v1  ;;  %v42_v1 = vld [vmem:[%s3638_s0 + $0xe] sm:$0x1] }
0x10cf   :  { %43 = vst [vmem:[#allocation6 + $0x7] sm:$0x1] %v42_v1 }
0x10d1   :  { %2829 = vmatpush3.bf16.msra.mxu1 %v2872_v47  ;;  %v3007_v47 = vmov 1966171168  }
0x119a   :  { %v1998_v54 = vpop.f32.mrb[24].mxu0 }
0x119b   :  { %v2004_v55 = vadd.f32 %v1998_v54, %v1943_v52  ;;  %v2808_v56 = vpop.f32.mrb[25].mxu0 }
0x119c   :  { %v2001_v59 = vpop.f32.mrb[26].mxu0 }
0x119d   :  { %2969 = vtanh.f32 %v2004_v55  ;;  %v2809_v62 = vpop.f32.mrb[27].mxu0  ;;  %v2638_v15 = vmul.f32 -1.442695, %v2004_v55 }
0x119e   :  { %v2144_v0 = vpop.f32.mrb[24].mxu1 }
0x119f   :  { %v2150_v3 = vadd.f32 %v2144_v0, %v2089_v57  ;;  %v2816_v4 = vpop.f32.mrb[25].mxu1 }
0x11a0   :  { %v2147_v7 = vpop.f32.mrb[26].mxu1  ;;  %v2556_v4 = vld [vmem:[%s3639_s1 + $0x1] sm:$0x1] }
0x11a1   :  { %2971 = vtanh.f32 %v2150_v3  ;;  %v2817_v8 = vpop.f32.mrb[27].mxu1  ;;  %v2644_v16 = vmul.f32 -1.442695, %v2150_v3  ;;  %103 = vst [vmem:[#allocation7] sm:$0x1] %v2556_v4 }
0x11a2   :  { %2973 = vpow2.f32 %v2638_v15  ;;  %v2232_v7 = vld [vmem:[#allocation6 + $0x7] sm:$0x1] }
0x11a3   :  { %2975 = vpow2.f32 %v2644_v16  ;;  %v2235_v8 = vunpack.c.l.bf16 %v2232_v7 }
0x11a7   :  { %v2970_v9 = vpop.eup %2969 }
0x11a8   :  { %2025 = vrot.lane.b32.xlu0 %v2970_v9, %s3004_s6  ;;  %v2377_v9 = vld [vmem:[#allocation7] sm:$0x1] }
0x11a9   :  { %v2380_v15 = vunpack.c.l.bf16 %v2377_v9 }
0x11ab   :  { %v2972_v11 = vpop.eup %2971 }
0x11ac   :  { %2171 = vrot.lane.b32.xlu1 %v2972_v11, %s3004_s6  ;;  %2020 = vrot.lane.b32.xlu0 %v2639_v12, %s3003_s28  ;;  %v2974_v18 = vpop.eup %2973 }
0x11ad   :  { %v2008_v19 = vadd.f32 1.0, %v2974_v18  ;;  %v2976_v20 = vpop.eup %2975 }
0x11ae   :  { %v2154_v21 = vadd.f32 1.0, %v2976_v20 }
0x11af   :  { %2977 = vrcp.f32 %v2008_v19 }
0x11b0   :  { %2166 = vrot.lane.b32.xlu1 %v2645_v14, %s3003_s28  ;;  %2979 = vrcp.f32 %v2154_v21 }
0x11b9   :  { %v2978_v23 = vpop.eup %2977 }
0x11ba   :  { %v2980_v27 = vpop.eup %2979 }
0x121a   :  { %v2026_v24 = vpop.permute.xlu0 %2025 }
0x121b   :  { %v2028_v25 = vmul.f32 %v2978_v23, %v2026_v24 }
0x121d   :  { %2030 = vrot.lane.b32.xlu0 %v2028_v25, %s3003_s28 }
0x121e   :  { %v2172_v28 = vpop.permute.xlu1 %2171  ;;  %v2021_v30 = vpop.permute.xlu0 %2020 }
0x121f   :  { %v2174_v29 = vmul.f32 %v2980_v27, %v2172_v28  ;;  %v2023_v31 = vmul.f32 %v2978_v23, %v2021_v30 }
0x1221   :  { %2176 = vrot.lane.b32.xlu1 %v2174_v29, %s3003_s28 }
0x1222   :  { %v2167_v32 = vpop.permute.xlu1 %2166 }
0x1223   :  { %v2169_v36 = vmul.f32 %v2980_v27, %v2167_v32 }
0x128f   :  { %v2031_v34 = vpop.permute.xlu0 %2030 }
0x1290   :  { %v2033_v35 = vadd.f32 %v2031_v34, %v2023_v31 }
0x1292   :  { %2981 = vtanh.f32 %v2033_v35  ;;  %v2059_v51 = vrot.slane %v2033_v35, %v3103_v60 }
0x1293   :  { %v2177_v38 = vpop.permute.xlu1 %2176 }
0x1294   :  { %v2179_v39 = vadd.f32 %v2177_v38, %v2169_v36 }
0x1296   :  { %2983 = vtanh.f32 %v2179_v39  ;;  %v2205_v53 = vrot.slane %v2179_v39, %v3103_v60 }
0x129c   :  { %v2982_v40 = vpop.eup %2981 }
0x129d   :  { %2036 = vrot.lane.b32.xlu0 %v2982_v40, %s3004_s6 }
0x12a0   :  { %v2984_v41 = vpop.eup %2983 }
0x12a1   :  { %2182 = vrot.lane.b32.xlu1 %v2984_v41, %s3004_s6 }
0x130f   :  { %v2037_v45 = vpop.permute.xlu0 %2036 }
0x1310   :  { %v3428_v46 = vmul.f32 %v2978_v23, %v2037_v45 }
0x1312   :  { %v2047_v48 = vrot.slane %v3428_v46, %v3103_v60 }
0x1313   :  { %v2183_v49 = vpop.permute.xlu1 %2182 }
0x1314   :  { %v3435_v50 = vmul.f32 %v2980_v27, %v2183_v49  ;;  %2048 = vrot.lane.b32.xlu0 %v2047_v48, %s3003_s28  ;;  %v315_v48 = vunpack.c.l.s4 %v3007_v47 }
0x1316   :  { %v2193_v52 = vrot.slane %v3435_v50, %v3103_v60 }
0x1318   :  { %2194 = vrot.lane.b32.xlu1 %v2193_v52, %s3003_s28  ;;  %2060 = vrot.lane.b32.xlu0 %v2059_v51, %s3006_s17 }
0x131c   :  { %2206 = vrot.lane.b32.xlu1 %v2205_v53, %s3006_s17  ;;  %v316_v53 = vunpack.c.0.s8 %v315_v48 }
0x1386   :  { %v2049_v54 = vpop.permute.xlu0 %2048 }
0x1387   :  { %2051 = vst.msk [vmem:[#allocation2] sm:$0x3] %vm181_vm1, %v2049_v54 }
0x138a   :  { %v2195_v55 = vpop.permute.xlu1 %2194  ;;  %v2061_v56 = vpop.permute.xlu0 %2060 }
0x138b   :  { %2197 = vst.msk [vmem:[#allocation4] sm:$0x3] %vm181_vm1, %v2195_v55  ;;  %2063 = vst.msk [vmem:[#allocation3] sm:$0x3] %vm181_vm1, %v2061_v56  ;;  %v3478_v56 = vsub.s32 %v316_v53, %v3098_v58  ;;  %v750_v58 = vpack.c.bf16 %v3167_v5, %v3167_v5  ;;  %v1042_v5 = vpack.c.bf16 %v3221_v10, %v3221_v10 }
0x138c   :  { %v1480_v10 = vpack.c.bf16 %v3321_v22, %v3321_v22 }
0x138e   :  { %v2207_v57 = vpop.permute.xlu1 %2206  ;;  %v2233_v59 = vld [vmem:[#allocation2] sm:$0x3] }
0x138f   :  { %2209 = vst.msk [vmem:[#allocation5] sm:$0x3] %vm181_vm1, %v2207_v57  ;;  %v2236_v62 = vpack.c.bf16 %v2233_v59, %v2233_v59  ;;  %v312_v57 = vpack.c.bf16 %v3105_v61, %v3105_v61  ;;  %v458_v59 = vpack.c.bf16 %v3113_v2, %v3113_v2  ;;  %v896_v61 = vpack.c.bf16 %v3213_v6, %v3213_v6 }
0x1391   :  { %2823 = vmatmul.mubr.msk.bf16.vlgmr.msra.gmra.mrb[28].mxu0 %vm207_vm2, %v2236_v62  ;;  %v320_v62 = vrot.slane %v312_v57, %v3478_v56  ;;  %v466_v4 = vrot.slane %v458_v59, %v3478_v56 }
0x1392   :  { %v2378_v0 = vld [vmem:[#allocation4] sm:$0x3]  ;;  %v2651_v28 = vld.sshfl [vmem:[#allocation3] sm:$0x3 pattern:$0x76325410] }
0x1393   :  { %v2381_v3 = vpack.c.bf16 %v2378_v0, %v2378_v0  ;;  %v604_v0 = vpack.c.bf16 %v3159_v63, %v3159_v63  ;;  %v327_v2 = vrot.slane %v320_v62, %v3478_v56  ;;  %v758_v63 = vrot.slane %v750_v58, %v3478_v56 }
0x1394   :  { %v473_v9 = vrot.slane %v466_v4, %v3478_v56 }
0x1395   :  { %2831 = vmatmul.mubr.msk.bf16.vlgmr.msra.gmra.mrb[28].mxu1 %vm207_vm2, %v2381_v3  ;;  %v612_v7 = vrot.slane %v604_v0, %v3478_v56 }
0x1396   :  { %v2657_v29 = vld.sshfl [vmem:[#allocation5] sm:$0x3 pattern:$0x76325410] }
0x1397   :  { %v619_v6 = vrot.slane %v612_v7, %v3478_v56 }
0x1464   :  { %v2290_v11 = vpop.f32.mrb[28].mxu0 }
0x1465   :  { %v2296_v12 = vadd.f32 %v2290_v11, %v2235_v8  ;;  %v2824_v14 = vpop.f32.mrb[29].mxu0  ;;  %v904_v11 = vrot.slane %v896_v61, %v3478_v56 }
0x1466   :  { %v2293_v16 = vpop.f32.mrb[30].mxu0  ;;  %v1334_v14 = vpack.c.bf16 %v3275_v17, %v3275_v17  ;;  %v1626_v17 = vpack.c.bf16 %v3329_v26, %v3329_v26 }
0x1467   :  { %2985 = vtanh.f32 %v2296_v12  ;;  %v2825_v18 = vpop.f32.mrb[31].mxu0  ;;  %v2650_v30 = vmul.f32 -1.442695, %v2296_v12  ;;  %v1188_v12 = vpack.c.bf16 %v3267_v13, %v3267_v13  ;;  %v1050_v16 = vrot.slane %v1042_v5, %v3478_v56 }
0x1468   :  { %v2435_v19 = vpop.f32.mrb[28].mxu1  ;;  %v911_v13 = vrot.slane %v904_v11, %v3478_v56 }
0x1469   :  { %v2441_v20 = vadd.f32 %v2435_v19, %v2380_v15  ;;  %v2832_v21 = vpop.f32.mrb[29].mxu1  ;;  %v765_v15 = vrot.slane %v758_v63, %v3478_v56  ;;  %v1196_v18 = vrot.slane %v1188_v12, %v3478_v56  ;;  %v1342_v19 = vrot.slane %v1334_v14, %v3478_v56 }
0x146a   :  { %v2438_v23 = vpop.f32.mrb[30].mxu1  ;;  %v1488_v21 = vrot.slane %v1480_v10, %v3478_v56  ;;  %v1057_v22 = vrot.slane %v1050_v16, %v3478_v56 }
0x146b   :  { %2987 = vtanh.f32 %v2441_v20  ;;  %v2833_v24 = vpop.f32.mrb[31].mxu1  ;;  %v2656_v31 = vmul.f32 -1.442695, %v2441_v20  ;;  %v1203_v20 = vrot.slane %v1196_v18, %v3478_v56  ;;  %v1772_v23 = vpack.c.bf16 %v3375_v33, %v3375_v33 }
0x146c   :  { %2989 = vpow2.f32 %v2650_v30  ;;  %v1349_v24 = vrot.slane %v1342_v19, %v3478_v56  ;;  %v2064_v33 = vpack.c.bf16 %v3428_v46, %v3428_v46 }
0x146d   :  { %2991 = vpow2.f32 %v2656_v31  ;;  %v1780_v26 = vrot.slane %v1772_v23, %v3478_v56 }
0x146f   :  { %v1787_v30 = vrot.slane %v1780_v26, %v3478_v56 }
0x1471   :  { %v2986_v25 = vpop.eup %2985 }
0x1472   :  { %2317 = vrot.lane.b32.xlu0 %v2986_v25, %s3004_s6  ;;  %v1634_v25 = vrot.slane %v1626_v17, %v3478_v56 }
0x1475   :  { %v2988_v27 = vpop.eup %2987 }
0x1476   :  { %2462 = vrot.lane.b32.xlu1 %v2988_v27, %s3004_s6  ;;  %2312 = vrot.lane.b32.xlu0 %v2651_v28, %s3003_s28  ;;  %v2990_v32 = vpop.eup %2989  ;;  %v1495_v27 = vrot.slane %v1488_v21, %v3478_v56  ;;  %v1918_v28 = vpack.c.bf16 %v3383_v37, %v3383_v37 }
0x1477   :  { %v2300_v34 = vadd.f32 1.0, %v2990_v32  ;;  %v2992_v35 = vpop.eup %2991  ;;  %v2072_v32 = vrot.slane %v2064_v33, %v3478_v56 }
0x1478   :  { %v2445_v36 = vadd.f32 1.0, %v2992_v35  ;;  %v1926_v31 = vrot.slane %v1918_v28, %v3478_v56 }
0x1479   :  { %2993 = vrcp.f32 %v2300_v34  ;;  %v2210_v34 = vpack.c.bf16 %v3435_v50, %v3435_v50  ;;  %v2079_v46 = vrot.slane %v2072_v32, %v3478_v56 }
0x147a   :  { %2457 = vrot.lane.b32.xlu1 %v2657_v29, %s3003_s28  ;;  %2995 = vrcp.f32 %v2445_v36  ;;  %v1641_v29 = vrot.slane %v1634_v25, %v3478_v56  ;;  %v1933_v37 = vrot.slane %v1926_v31, %v3478_v56 }
0x147b   :  { %v2218_v35 = vrot.slane %v2210_v34, %v3478_v56 }
0x147d   :  { %v2225_v36 = vrot.slane %v2218_v35, %v3478_v56 }
0x1483   :  { %v3461_v38 = vpop.eup %2993 }
0x1484   :  { %v3465_v41 = vpop.eup %2995 }
0x14e4   :  { %v2318_v39 = vpop.permute.xlu0 %2317 }
0x14e5   :  { %v2320_v40 = vmul.f32 %v3461_v38, %v2318_v39 }
0x14e7   :  { %2322 = vrot.lane.b32.xlu0 %v2320_v40, %s3003_s28 }
0x14e8   :  { %v2463_v42 = vpop.permute.xlu1 %2462  ;;  %v2313_v44 = vpop.permute.xlu0 %2312 }
0x14e9   :  { %v2465_v43 = vmul.f32 %v3465_v41, %v2463_v42  ;;  %v2315_v45 = vmul.f32 %v3461_v38, %v2313_v44 }
0x14eb   :  { %2467 = vrot.lane.b32.xlu1 %v2465_v43, %s3003_s28 }
0x14ec   :  { %v2458_v49 = vpop.permute.xlu1 %2457 }
0x14ed   :  { %v2460_v52 = vmul.f32 %v3465_v41, %v2458_v49 }
0x1559   :  { %v2323_v1 = vpop.permute.xlu0 %2322 }
0x155a   :  { %v3470_v51 = vadd.f32 %v2323_v1, %v2315_v45 }
0x155c   :  { %2997 = vtanh.f32 %v3470_v51  ;;  %v2351_v50 = vrot.slane %v3470_v51, %v3103_v60 }
0x155d   :  { %v2468_v54 = vpop.permute.xlu1 %2467 }
0x155e   :  { %v3474_v55 = vadd.f32 %v2468_v54, %v2460_v52 }
0x1560   :  { %2999 = vtanh.f32 %v3474_v55 }
0x1566   :  { %v2998_v3 = vpop.eup %2997 }
0x1567   :  { %2328 = vrot.lane.b32.xlu0 %v2998_v3, %s3004_s6 }
0x156a   :  { %v3000_v8 = vpop.eup %2999 }
0x156b   :  { %2473 = vrot.lane.b32.xlu1 %v3000_v8, %s3004_s6  ;;  %328 = vrot.lane.b32.xlu0 %v327_v2, %s3003_s28 }
0x156f   :  { %474 = vrot.lane.b32.xlu1 %v473_v9, %s3003_s28  ;;  %620 = vrot.lane.b32.xlu0 %v619_v6, %s3003_s28 }
0x1573   :  { %766 = vrot.lane.b32.xlu1 %v765_v15, %s3003_s28  ;;  %912 = vrot.lane.b32.xlu0 %v911_v13, %s3003_s28 }
0x1577   :  { %1058 = vrot.lane.b32.xlu1 %v1057_v22, %s3003_s28  ;;  %1204 = vrot.lane.b32.xlu0 %v1203_v20, %s3003_s28 }
0x157b   :  { %1350 = vrot.lane.b32.xlu1 %v1349_v24, %s3003_s28  ;;  %1496 = vrot.lane.b32.xlu0 %v1495_v27, %s3003_s28 }
0x157f   :  { %1642 = vrot.lane.b32.xlu1 %v1641_v29, %s3003_s28  ;;  %1788 = vrot.lane.b32.xlu0 %v1787_v30, %s3003_s28 }
0x1583   :  { %1934 = vrot.lane.b32.xlu1 %v1933_v37, %s3003_s28  ;;  %2080 = vrot.lane.b32.xlu0 %v2079_v46, %s3003_s28 }
0x1587   :  { %2226 = vrot.lane.b32.xlu1 %v2225_v36, %s3003_s28 }
0x158b   :  { %2352 = vrot.lane.b32.xlu1 %v2351_v50, %s3006_s17 }
0x15d9   :  { %v2329_v39 = vpop.permute.xlu0 %2328 }
0x15da   :  { %v2331_v40 = vmul.f32 %v3461_v38, %v2329_v39 }
0x15dc   :  { %v2339_v42 = vrot.slane %v2331_v40, %v3103_v60  ;;  %v2356_v43 = vpack.c.bf16 %v2331_v40, %v2331_v40 }
0x15dd   :  { %v2474_v44 = vpop.permute.xlu1 %2473  ;;  %v329_v45 = vpop.permute.xlu0 %328 }
0x15de   :  { %v2364_v47 = vrot.slane %v2356_v43, %v3478_v56  ;;  %v2476_v48 = vmul.f32 %v3465_v41, %v2474_v44  ;;  %332 = vst.msk [vmem:[%s3642_s4] sm:$0x1] %vm331_vm3, %v329_v45  ;;  %2340 = vrot.lane.b32.xlu0 %v2339_v42, %s3003_s28  ;;  %v2496_v41 = vrot.slane %v3474_v55, %v3103_v60 }
0x15e0   :  { %v2371_v49 = vrot.slane %v2364_v47, %v3478_v56  ;;  %v2484_v38 = vrot.slane %v2476_v48, %v3103_v60  ;;  %v2501_v1 = vpack.c.bf16 %v2476_v48, %v2476_v48 }
0x15e1   :  { %v475_v51 = vpop.permute.xlu1 %474  ;;  %v621_v52 = vpop.permute.xlu0 %620 }
0x15e2   :  { %v2509_v53 = vrot.slane %v2501_v1, %v3478_v56  ;;  %2574 = vst.msk [vmem:[%s3643_s5 + $0x7] sm:$0x1] %vm331_vm3, %v475_v51  ;;  %2580 = vst.msk [vmem:[%s3642_s4 + $0x1] sm:$0x1] %vm331_vm3, %v621_v52  ;;  %2485 = vrot.lane.b32.xlu1 %v2484_v38, %s3003_s28  ;;  %2372 = vrot.lane.b32.xlu0 %v2371_v49, %s3003_s28 }
0x15e4   :  { %v2516_v54 = vrot.slane %v2509_v53, %v3478_v56 }
0x15e5   :  { %v767_v57 = vpop.permute.xlu1 %766  ;;  %v913_v59 = vpop.permute.xlu0 %912 }
0x15e6   :  { %2586 = vst.msk [vmem:[%s3643_s5 + $0x6] sm:$0x1] %vm331_vm3, %v767_v57  ;;  %2592 = vst.msk [vmem:[%s3642_s4 + $0x2] sm:$0x1] %vm331_vm3, %v913_v59  ;;  %2517 = vrot.lane.b32.xlu1 %v2516_v54, %s3003_s28  ;;  %2497 = vrot.lane.b32.xlu0 %v2496_v41, %s3006_s17 }
0x15e9   :  { %v1059_v62 = vpop.permute.xlu1 %1058  ;;  %v1205_v60 = vpop.permute.xlu0 %1204 }
0x15ea   :  { %2598 = vst.msk [vmem:[%s3643_s5 + $0x5] sm:$0x1] %vm331_vm3, %v1059_v62  ;;  %2604 = vst.msk [vmem:[%s3642_s4 + $0x3] sm:$0x1] %vm331_vm3, %v1205_v60 }
0x15ed   :  { %v1351_v55 = vpop.permute.xlu1 %1350  ;;  %v1497_v56 = vpop.permute.xlu0 %1496 }
0x15ee   :  { %2610 = vst.msk [vmem:[%s3643_s5 + $0x4] sm:$0x1] %vm331_vm3, %v1351_v55  ;;  %2616 = vst.msk [vmem:[%s3642_s4 + $0x4] sm:$0x1] %vm331_vm3, %v1497_v56 }
0x15f1   :  { %v1643_v0 = vpop.permute.xlu1 %1642  ;;  %v1789_v3 = vpop.permute.xlu0 %1788 }
0x15f2   :  { %2622 = vst.msk [vmem:[%s3643_s5 + $0x3] sm:$0x1] %vm331_vm3, %v1643_v0  ;;  %2628 = vst.msk [vmem:[%s3642_s4 + $0x5] sm:$0x1] %vm331_vm3, %v1789_v3 }
0x15f5   :  { %v1935_v4 = vpop.permute.xlu1 %1934  ;;  %v2081_v58 = vpop.permute.xlu0 %2080 }
0x15f6   :  { %2634 = vst.msk [vmem:[%s3643_s5 + $0x2] sm:$0x1] %vm331_vm3, %v1935_v4  ;;  %2640 = vst.msk [vmem:[%s3642_s4 + $0x6] sm:$0x1] %vm331_vm3, %v2081_v58 }
0x15f9   :  { %v2227_v7 = vpop.permute.xlu1 %2226 }
0x15fa   :  { %2646 = vst.msk [vmem:[%s3643_s5 + $0x1] sm:$0x1] %vm331_vm3, %v2227_v7 }
0x15fd   :  { %v2353_v61 = vpop.permute.xlu1 %2352 }
0x15fe   :  { %2355 = vst.msk [vmem:[#allocation3] sm:$0x3] %vm181_vm1, %v2353_v61 }
0x1650   :  { %v2341_v2 = vpop.permute.xlu0 %2340 }
0x1651   :  { %2343 = vst.msk [vmem:[#allocation2] sm:$0x3] %vm181_vm1, %v2341_v2 }
0x1654   :  { %v2486_v8 = vpop.permute.xlu1 %2485  ;;  %v2373_v63 = vpop.permute.xlu0 %2372 }
0x1655   :  { %2488 = vst.msk [vmem:[#allocation4] sm:$0x3] %vm181_vm1, %v2486_v8 }
0x1656   :  { %2652 = vst.msk [vmem:[%s3642_s4 + $0x7] sm:$0x1] %vm331_vm3, %v2373_v63 }
0x1658   :  { %v2518_v9 = vpop.permute.xlu1 %2517  ;;  %v2498_v11 = vpop.permute.xlu0 %2497 }
0x1659   :  { %2520 = vst.msk [vmem:[%s3643_s5] sm:$0x1] %vm331_vm3, %v2518_v9 }
0x165a   :  { %2500 = vst.msk [vmem:[#allocation5] sm:$0x3] %vm181_vm1, %v2498_v11 }

</bundles_post_ra>
